<compile_context>
chip_gen: v7x
topology: tpu7x:2x2x1
jax: 0.10.0
libtpu: 0.0.40
codegen_flags: <defaults>
</compile_context>

<pallas_src>
import functools

import numpy as np
import jax
import jax.numpy as jnp
from jax.experimental import pallas as pl
from jax.experimental.pallas import tpu as pltpu


# ----------------------------------------------------------------------------
# Helpers
# ----------------------------------------------------------------------------
def _round_up(n, m):
    return ((n + m - 1) // m) * m


def _g_lane_mask(bp, h):
    """Boolean [bp, 4h] mask that is True on the lanes of the 'g' gate
    (PyTorch gate order i, f, g, o packed naturally along the lane dim)."""
    lane = jax.lax.broadcasted_iota(jnp.int32, (bp, 4 * h), 1)
    return (lane >= 2 * h) & (lane < 3 * h)


def _lstm_cell(gates, c, h, g_mask):
    """PyTorch LSTM cell tail on naturally packed gates [bp, 4h] (f32).
    Full-vreg sigmoid + tanh blended by the hoisted lane mask, then static
    lane slices for the i/f/g/o quarters."""
    act = jnp.where(g_mask, jnp.tanh(gates), jax.nn.sigmoid(gates))
    i = act[:, 0 * h:1 * h]
    f = act[:, 1 * h:2 * h]
    g = act[:, 2 * h:3 * h]
    o = act[:, 3 * h:4 * h]
    c_new = f * c + i * g
    h_new = o * jnp.tanh(c_new)
    return h_new, c_new


# ----------------------------------------------------------------------------
# Kernel
# ----------------------------------------------------------------------------
def rae_kernel(x_ref,                       # [T*BP, F]  f32
               w1_ref, u1_ref, b1_ref,      # enc L1: [F,4H1] [H1,4H1] bf16, [1,4H1] f32
               w2s_ref, b2_ref,             # enc L2: [CAT2,4E] bf16, [1,4E] f32
               w3_hbm, u3_hbm, b3_ref,      # dec L1: [E,4E] [E,4E] bf16 (HBM), [1,4E] f32
               w4s_hbm, b4_ref,             # dec L2: [CAT4,4H1] bf16 (HBM), [1,4H1] f32
               wd_hbm, bd_ref,              # dense:  [H1,FP] bf16 (HBM), [1,FP] f32
               out_ref,                     # [T*BP, FP] f32 (lane-dense)
               xp_ref,                      # VMEM [T*BP, 4H1] f32  (enc L1 input proj)
               h4buf_ref,                   # VMEM [T*BP, H1] bf16  (dec L2 outputs)
               cat2_ref, cat4_ref,          # VMEM [BP, CAT*] bf16  (fused-dot inputs)
               w3_vm, u3_vm, w4s_vm, wd_vm,  # VMEM copies of decoder weights
               dma_sem,                     # DMA semaphores (4,)
               *, seq_len):
    T = seq_len
    TB = x_ref.shape[0]
    BP = TB // T
    H1 = u1_ref.shape[0]            # 2 * embedding_dim
    E = b3_ref.shape[1] // 4        # embedding_dim
    f32 = jnp.float32
    bf16 = jnp.bfloat16

    # ---- Kick off decoder-weight DMAs; they overlap the encoder recurrence.
    cp_w3 = pltpu.make_async_copy(w3_hbm, w3_vm, dma_sem.at[0])
    cp_u3 = pltpu.make_async_copy(u3_hbm, u3_vm, dma_sem.at[1])
    cp_w4 = pltpu.make_async_copy(w4s_hbm, w4s_vm, dma_sem.at[2])
    cp_wd = pltpu.make_async_copy(wd_hbm, wd_vm, dma_sem.at[3])
    cp_w3.start(); cp_u3.start(); cp_w4.start(); cp_wd.start()

    # ---- Hoisted gate-lane masks (shared by the unrolled loops) ------------
    gmask_h = _g_lane_mask(BP, H1)   # for layers 1 & 4 (gates 4*H1 wide)
    gmask_e = _g_lane_mask(BP, E)    # for layers 2 & 3 (gates 4*E wide)

    # ---- Encoder L1 input projection for the whole sequence: one matmul ----
    xp_ref[...] = jnp.dot(x_ref[...].astype(bf16), w1_ref[...],
                          preferred_element_type=f32) + b1_ref[...]

    # ---- Encoder recurrence (fully unrolled; T is small & static) ----------
    b2b = jnp.broadcast_to(b2_ref[...], (BP, 4 * E))     # hoisted bias bcast
    # cat2 lanes: [0:H1) = h1(t), [H1:H1+E) = h2(t-1), rest stays 0 so the
    # zero-padded rows of w2s contribute exactly 0 to the fused dot.
    cat2_ref[...] = jnp.zeros((BP, cat2_ref.shape[1]), bf16)
    h1_bf = jnp.zeros((BP, H1), bf16)
    c1 = jnp.zeros((BP, H1), f32)
    h2 = jnp.zeros((BP, E), f32)
    c2 = jnp.zeros((BP, E), f32)
    for t in range(T):
        g1 = xp_ref[t * BP:(t + 1) * BP, :] + jnp.dot(
            h1_bf, u1_ref[...], preferred_element_type=f32)
        h1, c1 = _lstm_cell(g1, c1, H1, gmask_h)
        h1_bf = h1.astype(bf16)
        cat2_ref[:, 0:H1] = h1_bf
        g2 = jnp.dot(cat2_ref[...], w2s_ref[...],
                     preferred_element_type=f32) + b2b
        h2, c2 = _lstm_cell(g2, c2, E, gmask_e)
        cat2_ref[:, H1:H1 + E] = h2.astype(bf16)
    emb_bf = h2.astype(bf16)                              # hidden_n[-1], [BP, E]

    # ---- Decoder weights must be resident now (DMA hidden behind encoder) --
    cp_w3.wait(); cp_u3.wait(); cp_w4.wait(); cp_wd.wait()

    # ---- Decoder: time-invariant L1 input projection, hoisted --------------
    ip3 = jnp.dot(emb_bf, w3_vm[...], preferred_element_type=f32) + b3_ref[...]
    b4b = jnp.broadcast_to(b4_ref[...], (BP, 4 * H1))
    # cat4 lanes: [0:E) = h3(t), [E:E+H1) = h4(t-1), rest stays 0.
    cat4_ref[...] = jnp.zeros((BP, cat4_ref.shape[1]), bf16)
    h3_bf = jnp.zeros((BP, E), bf16)
    c3 = jnp.zeros((BP, E), f32)
    c4 = jnp.zeros((BP, H1), f32)
    for t in range(T):
        g3 = ip3 + jnp.dot(h3_bf, u3_vm[...], preferred_element_type=f32)
        h3, c3 = _lstm_cell(g3, c3, E, gmask_e)
        h3_bf = h3.astype(bf16)
        cat4_ref[:, 0:E] = h3_bf
        g4 = jnp.dot(cat4_ref[...], w4s_vm[...],
                     preferred_element_type=f32) + b4b
        h4, c4 = _lstm_cell(g4, c4, H1, gmask_h)
        h4_bf = h4.astype(bf16)
        cat4_ref[:, E:E + H1] = h4_bf
        h4buf_ref[t * BP:(t + 1) * BP, :] = h4_bf

    # ---- Final dense over the whole sequence: one matmul, lane-dense store -
    out_ref[...] = jnp.dot(h4buf_ref[...], wd_vm[...],
                           preferred_element_type=f32) + bd_ref[...]


# ----------------------------------------------------------------------------
# Parameter preparation: bf16 weights, fused [W_ih; W_hh] stacks, lane-dense wd
# ----------------------------------------------------------------------------
def _prepare_params(params, FP):
    (w1, u1, b1, w2, u2, b2, w3, u3, b3, w4, u4, b4, wd, bd) = params
    H1 = u1.shape[0]
    E = u2.shape[0]
    bf16 = jnp.bfloat16
    CAT2 = _round_up(H1 + E, 128)    # rows of fused enc-L2 weight / cat2 lanes
    CAT4 = _round_up(E + H1, 128)    # rows of fused dec-L2 weight / cat4 lanes

    # encoder L1: F -> H1 (natural 4*H1 gate packing, no lane padding)
    w1p = w1.astype(bf16)                                  # [F, 4H1]
    u1p = u1.astype(bf16)                                  # [H1, 4H1]
    # encoder L2: H1 -> E ; fused [W_ih; W_hh; 0] for cat2 = [h1 | h2 | 0]
    w2s = jnp.zeros((CAT2, 4 * E), bf16)
    w2s = w2s.at[:H1, :].set(w2.astype(bf16))
    w2s = w2s.at[H1:H1 + E, :].set(u2.astype(bf16))
    # decoder L1: E -> E
    w3p = w3.astype(bf16)                                  # [E, 4E]
    u3p = u3.astype(bf16)                                  # [E, 4E]
    # decoder L2: E -> H1 ; fused [W_ih; W_hh; 0] for cat4 = [h3 | h4 | 0]
    w4s = jnp.zeros((CAT4, 4 * H1), bf16)
    w4s = w4s.at[:E, :].set(w4.astype(bf16))
    w4s = w4s.at[E:E + H1, :].set(u4.astype(bf16))
    # dense: H1 -> F, columns padded to FP=128 lanes (lane-dense output slab)
    wdp = jnp.zeros((H1, FP), bf16).at[:, :wd.shape[1]].set(wd.astype(bf16))
    bdp = jnp.zeros((1, FP), jnp.float32).at[:, :bd.shape[1]].set(bd)
    return (w1p, u1p, b1, w2s, b2, w3p, u3p, b3, w4s, b4, wdp, bdp)


# ----------------------------------------------------------------------------
# Wrapper
# ----------------------------------------------------------------------------
@jax.jit
def rae_forward(x, params):
    """x: [B, T, F] batch_first (PyTorch convention). Returns [B, T, F] f32."""
    B, T, F = x.shape
    H1 = params[1].shape[0]          # u1 is [H1, 4*H1]
    E = params[4].shape[0]           # u2 is [E, 4*E]
    BP = _round_up(B, 8)             # fill all 8 sublanes of each vreg
    FP = _round_up(F, 128)           # lane-dense output width
    CAT2 = _round_up(H1 + E, 128)
    CAT4 = _round_up(E + H1, 128)

    kp = _prepare_params(params, FP)
    (w1p, u1p, b1p, w2s, b2p, w3p, u3p, b3p, w4s, b4p, wdp, bdp) = kp

    # time-major, batch-padded slab: every per-step state is a full vreg
    x_t = jnp.transpose(x, (1, 0, 2))                        # [T, B, F]
    x_t = jnp.pad(x_t, ((0, 0), (0, BP - B), (0, 0)))        # [T, BP, F]
    x2d = x_t.reshape(T * BP, F).astype(jnp.float32)

    vmem = pl.BlockSpec(memory_space=pltpu.MemorySpace.VMEM)
    hbm = pl.BlockSpec(memory_space=pl.ANY)   # decoder weights: manual DMA
    in_specs = [vmem,                       # x
                vmem, vmem, vmem,           # w1, u1, b1
                vmem, vmem,                 # w2s, b2
                hbm, hbm, vmem,             # w3, u3, b3
                hbm, vmem,                  # w4s, b4
                hbm, vmem]                  # wd, bd

    kernel = functools.partial(rae_kernel, seq_len=T)
    out2d = pl.pallas_call(
        kernel,
        out_shape=jax.ShapeDtypeStruct((T * BP, FP), jnp.float32),
        in_specs=in_specs,
        out_specs=vmem,
        scratch_shapes=[
            pltpu.VMEM((T * BP, 4 * H1), jnp.float32),   # xp: enc-L1 projection
            pltpu.VMEM((T * BP, H1), jnp.bfloat16),      # h4 slab for final dense
            pltpu.VMEM((BP, CAT2), jnp.bfloat16),        # cat2 = [h1 | h2 | 0]
            pltpu.VMEM((BP, CAT4), jnp.bfloat16),        # cat4 = [h3 | h4 | 0]
            pltpu.VMEM(w3p.shape, jnp.bfloat16),         # w3 (VMEM copy)
            pltpu.VMEM(u3p.shape, jnp.bfloat16),         # u3 (VMEM copy)
            pltpu.VMEM(w4s.shape, jnp.bfloat16),         # w4s (VMEM copy)
            pltpu.VMEM(wdp.shape, jnp.bfloat16),         # wd (VMEM copy)
            pltpu.SemaphoreType.DMA((4,)),               # decoder-weight DMAs
        ],
    )(x2d, *kp)

    out = out2d[:, :F].reshape(T, BP, F)[:, :B, :]
    return jnp.transpose(out, (1, 0, 2))                     # [B, T, F]


# ----------------------------------------------------------------------------
# Deterministic parameter init (PyTorch-style U(-1/sqrt(H), 1/sqrt(H)))
# ----------------------------------------------------------------------------
def init_params(key, n_features, embedding_dim):
    E = embedding_dim
    H1 = 2 * E
    F = n_features
    keys = iter(jax.random.split(key, 20))

    def u(shape, scale):
        return jax.random.uniform(next(keys), shape, jnp.float32, -scale, scale)

    def lstm_params(in_dim, hidden):
        k = 1.0 / np.sqrt(hidden)
        w_ih = u((4 * hidden, in_dim), k)     # PyTorch weight_ih_l0
        w_hh = u((4 * hidden, hidden), k)     # PyTorch weight_hh_l0
        b_ih = u((4 * hidden,), k)
        b_hh = u((4 * hidden,), k)
        # transposed weights ([in, 4H]) and the summed bias
        return [w_ih.T, w_hh.T, (b_ih + b_hh)[None, :]]

    p = []
    p += lstm_params(F, H1)      # encoder lstm1
    p += lstm_params(H1, E)      # encoder lstm2
    p += lstm_params(E, E)       # decoder lstm1
    p += lstm_params(E, H1)      # decoder lstm2
    k = 1.0 / np.sqrt(H1)
    wd = u((F, H1), k).T         # Linear weight, transposed -> [H1, F]
    bd = u((F,), k)[None, :]     # [1, F]
    p += [wd, bd]
    return tuple(p)


# ----------------------------------------------------------------------------
# Pure-JAX f32 reference (same math, batch_first) for correctness check
# ----------------------------------------------------------------------------
def rae_reference(x, params):
    (w1, u1, b1, w2, u2, b2, w3, u3, b3, w4, u4, b4, wd, bd) = params
    B, T, F = x.shape
    H1 = u1.shape[0]
    E = u2.shape[0]

    def step(x_t, h, c, w, uu, b, H):
        g = x_t @ w + h @ uu + b
        i = jax.nn.sigmoid(g[:, :H])
        f = jax.nn.sigmoid(g[:, H:2 * H])
        gg = jnp.tanh(g[:, 2 * H:3 * H])
        o = jax.nn.sigmoid(g[:, 3 * H:])
        c = f * c + i * gg
        return o * jnp.tanh(c), c

    h1 = jnp.zeros((B, H1)); c1 = jnp.zeros((B, H1))
    h2 = jnp.zeros((B, E)); c2 = jnp.zeros((B, E))
    for t in range(T):
        h1, c1 = step(x[:, t, :], h1, c1, w1, u1, b1, H1)
        h2, c2 = step(h1, h2, c2, w2, u2, b2, E)
    emb = h2

    h3 = jnp.zeros((B, E)); c3 = jnp.zeros((B, E))
    h4 = jnp.zeros((B, H1)); c4 = jnp.zeros((B, H1))
    ys = []
    for t in range(T):
        h3, c3 = step(emb, h3, c3, w3, u3, b3, E)
        h4, c4 = step(h3, h4, c4, w4, u4, b4, H1)
        ys.append(h4 @ wd + bd)
    return jnp.stack(ys, axis=1)


if __name__ == "__main__":
    B, T, F, E = 2, 8, 4, 32     # batch, seq_len, n_features, embedding_dim
    key = jax.random.PRNGKey(0)
    kx, kp = jax.random.split(key)
    x = jax.random.normal(kx, (B, T, F), jnp.float32)
    params = init_params(kp, n_features=F, embedding_dim=E)

    out = jax.block_until_ready(rae_forward(x, params))
    ref = jax.block_until_ready(rae_reference(x, params))

    assert out.shape == (B, T, F) and out.dtype == jnp.float32
    # bf16 matmul operands (f32 accumulation/state) -> bf16-appropriate
    # tolerance; observed error through 8 recurrent steps is ~1e-3.
    np.testing.assert_allclose(np.asarray(out), np.asarray(ref),
                               rtol=2e-2, atol=2e-2)
    print("KERNEL_OK")
</pallas_src>

<mosaic_0001>
module attributes {stable_mosaic.version = 11 : i64} {
  func.func @rae_kernel(%arg0: memref<64x4xf32, #tpu.memory_space<vmem>>, %arg1: memref<4x256xbf16, #tpu.memory_space<vmem>>, %arg2: memref<64x256xbf16, #tpu.memory_space<vmem>>, %arg3: memref<1x256xf32, #tpu.memory_space<vmem>>, %arg4: memref<128x128xbf16, #tpu.memory_space<vmem>>, %arg5: memref<1x128xf32, #tpu.memory_space<vmem>>, %arg6: memref<32x128xbf16, #tpu.memory_space<any>>, %arg7: memref<32x128xbf16, #tpu.memory_space<any>>, %arg8: memref<1x128xf32, #tpu.memory_space<vmem>>, %arg9: memref<128x256xbf16, #tpu.memory_space<any>>, %arg10: memref<1x256xf32, #tpu.memory_space<vmem>>, %arg11: memref<64x128xbf16, #tpu.memory_space<any>>, %arg12: memref<1x128xf32, #tpu.memory_space<vmem>>, %arg13: memref<64x128xf32, #tpu.memory_space<vmem>>, %arg14: memref<64x256xf32, #tpu.memory_space<vmem>>, %arg15: memref<64x64xbf16, #tpu.memory_space<vmem>>, %arg16: memref<8x128xbf16, #tpu.memory_space<vmem>>, %arg17: memref<8x128xbf16, #tpu.memory_space<vmem>>, %arg18: memref<32x128xbf16, #tpu.memory_space<vmem>>, %arg19: memref<32x128xbf16, #tpu.memory_space<vmem>>, %arg20: memref<128x256xbf16, #tpu.memory_space<vmem>>, %arg21: memref<64x128xbf16, #tpu.memory_space<vmem>>, %arg22: memref<4x!tpu.dma_semaphore, #tpu.memory_space<semaphore_mem>>) attributes {dimension_semantics = [], scalar_prefetch = 0 : i64, scratch_operands = 9 : i64, tpu.core_type = #tpu.core_type<tc>} {
    %c0_i32 = arith.constant 0 : i32
    %0 = tpu.memref_slice %arg22[%c0_i32] : memref<4x!tpu.dma_semaphore, #tpu.memory_space<semaphore_mem>> -> memref<1x!tpu.dma_semaphore, #tpu.memory_space<semaphore_mem>>
    %1 = tpu.memref_squeeze %0 : memref<1x!tpu.dma_semaphore, #tpu.memory_space<semaphore_mem>> -> memref<!tpu.dma_semaphore, #tpu.memory_space<semaphore_mem>>
    tpu.enqueue_dma source(%arg6 : memref<32x128xbf16, #tpu.memory_space<any>>) target(%arg18 : memref<32x128xbf16, #tpu.memory_space<vmem>>) target_semaphore(%1 : memref<!tpu.dma_semaphore, #tpu.memory_space<semaphore_mem>>)
    %c1_i32 = arith.constant 1 : i32
    %2 = tpu.memref_slice %arg22[%c1_i32] : memref<4x!tpu.dma_semaphore, #tpu.memory_space<semaphore_mem>> -> memref<1x!tpu.dma_semaphore, #tpu.memory_space<semaphore_mem>>
    %3 = tpu.memref_squeeze %2 : memref<1x!tpu.dma_semaphore, #tpu.memory_space<semaphore_mem>> -> memref<!tpu.dma_semaphore, #tpu.memory_space<semaphore_mem>>
    tpu.enqueue_dma source(%arg7 : memref<32x128xbf16, #tpu.memory_space<any>>) target(%arg19 : memref<32x128xbf16, #tpu.memory_space<vmem>>) target_semaphore(%3 : memref<!tpu.dma_semaphore, #tpu.memory_space<semaphore_mem>>)
    %c2_i32 = arith.constant 2 : i32
    %4 = tpu.memref_slice %arg22[%c2_i32] : memref<4x!tpu.dma_semaphore, #tpu.memory_space<semaphore_mem>> -> memref<1x!tpu.dma_semaphore, #tpu.memory_space<semaphore_mem>>
    %5 = tpu.memref_squeeze %4 : memref<1x!tpu.dma_semaphore, #tpu.memory_space<semaphore_mem>> -> memref<!tpu.dma_semaphore, #tpu.memory_space<semaphore_mem>>
    tpu.enqueue_dma source(%arg9 : memref<128x256xbf16, #tpu.memory_space<any>>) target(%arg20 : memref<128x256xbf16, #tpu.memory_space<vmem>>) target_semaphore(%5 : memref<!tpu.dma_semaphore, #tpu.memory_space<semaphore_mem>>)
    %c3_i32 = arith.constant 3 : i32
    %6 = tpu.memref_slice %arg22[%c3_i32] : memref<4x!tpu.dma_semaphore, #tpu.memory_space<semaphore_mem>> -> memref<1x!tpu.dma_semaphore, #tpu.memory_space<semaphore_mem>>
    %7 = tpu.memref_squeeze %6 : memref<1x!tpu.dma_semaphore, #tpu.memory_space<semaphore_mem>> -> memref<!tpu.dma_semaphore, #tpu.memory_space<semaphore_mem>>
    tpu.enqueue_dma source(%arg11 : memref<64x128xbf16, #tpu.memory_space<any>>) target(%arg21 : memref<64x128xbf16, #tpu.memory_space<vmem>>) target_semaphore(%7 : memref<!tpu.dma_semaphore, #tpu.memory_space<semaphore_mem>>)
    %8 = tpu.iota {dimensions = array<i32: 1>} : vector<8x256xi32>
    %c128_i32 = arith.constant 128 : i32
    %9 = vector.broadcast %c128_i32 : i32 to vector<8x256xi32>
    %10 = arith.cmpi sge, %8, %9 : vector<8x256xi32>
    %c192_i32 = arith.constant 192 : i32
    %11 = vector.broadcast %c192_i32 : i32 to vector<8x256xi32>
    %12 = arith.cmpi slt, %8, %11 : vector<8x256xi32>
    %13 = arith.andi %10, %12 : vector<8x256xi1>
    %14 = tpu.iota {dimensions = array<i32: 1>} : vector<8x128xi32>
    %c64_i32 = arith.constant 64 : i32
    %15 = vector.broadcast %c64_i32 : i32 to vector<8x128xi32>
    %16 = arith.cmpi sge, %14, %15 : vector<8x128xi32>
    %c96_i32 = arith.constant 96 : i32
    %17 = vector.broadcast %c96_i32 : i32 to vector<8x128xi32>
    %18 = arith.cmpi slt, %14, %17 : vector<8x128xi32>
    %19 = arith.andi %16, %18 : vector<8x128xi1>
    %c0 = arith.constant 0 : index
    %c0_0 = arith.constant 0 : index
    %20 = vector.load %arg0[%c0, %c0_0] : memref<64x4xf32, #tpu.memory_space<vmem>>, vector<64x4xf32>
    %21 = arith.truncf %20 : vector<64x4xf32> to vector<64x4xbf16>
    %c0_1 = arith.constant 0 : index
    %c0_2 = arith.constant 0 : index
    %22 = vector.load %arg1[%c0_1, %c0_2] : memref<4x256xbf16, #tpu.memory_space<vmem>>, vector<4x256xbf16>
    %cst = arith.constant dense<0.000000e+00> : vector<64x256xf32>
    %23 = tpu.matmul %21, %22, %cst {dimension_numbers = #tpu.dot_dimension_numbers<[1], [0], [0], [1], [0, 0, 1, 1], [], []>} : vector<64x4xbf16>, vector<4x256xbf16>, vector<64x256xf32> -> vector<64x256xf32>
    %c0_3 = arith.constant 0 : index
    %c0_4 = arith.constant 0 : index
    %24 = vector.load %arg3[%c0_3, %c0_4] : memref<1x256xf32, #tpu.memory_space<vmem>>, vector<1x256xf32>
    %25 = vector.broadcast %24 : vector<1x256xf32> to vector<64x256xf32>
    %26 = arith.addf %23, %25 : vector<64x256xf32>
    %c0_5 = arith.constant 0 : index
    %c0_6 = arith.constant 0 : index
    %27 = vector.load %arg14[%c0_5, %c0_6] : memref<64x256xf32, #tpu.memory_space<vmem>>, vector<64x256xf32>
    tpu.vector_store %arg14[%c0_5, %c0_6], %26 {strides = array<i32>} : memref<64x256xf32, #tpu.memory_space<vmem>>, vector<64x256xf32>,
    %c0_7 = arith.constant 0 : index
    %c0_8 = arith.constant 0 : index
    %28 = vector.load %arg5[%c0_7, %c0_8] : memref<1x128xf32, #tpu.memory_space<vmem>>, vector<1x128xf32>
    %29 = vector.shape_cast %28 : vector<1x128xf32> to vector<1x128xf32>
    %30 = vector.broadcast %29 : vector<1x128xf32> to vector<8x128xf32>
    %cst_9 = arith.constant 0.000000e+00 : bf16
    %31 = vector.broadcast %cst_9 : bf16 to vector<8x128xbf16>
    %c0_10 = arith.constant 0 : index
    %c0_11 = arith.constant 0 : index
    %32 = vector.load %arg16[%c0_10, %c0_11] : memref<8x128xbf16, #tpu.memory_space<vmem>>, vector<8x128xbf16>
    tpu.vector_store %arg16[%c0_10, %c0_11], %31 {strides = array<i32>} : memref<8x128xbf16, #tpu.memory_space<vmem>>, vector<8x128xbf16>,
    %cst_12 = arith.constant 0.000000e+00 : bf16
    %33 = vector.broadcast %cst_12 : bf16 to vector<8x64xbf16>
    %cst_13 = arith.constant 0.000000e+00 : f32
    %34 = vector.broadcast %cst_13 : f32 to vector<8x64xf32>
    %cst_14 = arith.constant 0.000000e+00 : f32
    %35 = vector.broadcast %cst_14 : f32 to vector<8x32xf32>
    %c0_15 = arith.constant 0 : index
    %c0_16 = arith.constant 0 : index
    %36 = vector.load %arg14[%c0_15, %c0_16] : memref<64x256xf32, #tpu.memory_space<vmem>>, vector<8x256xf32>
    %c0_17 = arith.constant 0 : index
    %c0_18 = arith.constant 0 : index
    %37 = vector.load %arg2[%c0_17, %c0_18] : memref<64x256xbf16, #tpu.memory_space<vmem>>, vector<64x256xbf16>
    %cst_19 = arith.constant dense<0.000000e+00> : vector<8x256xf32>
    %38 = tpu.matmul %33, %37, %cst_19 {dimension_numbers = #tpu.dot_dimension_numbers<[1], [0], [0], [1], [0, 0, 1, 1], [], []>} : vector<8x64xbf16>, vector<64x256xbf16>, vector<8x256xf32> -> vector<8x256xf32>
    %39 = arith.addf %36, %38 : vector<8x256xf32>
    %40 = math.tanh %39 : vector<8x256xf32>
    %41 = arith.negf %39 : vector<8x256xf32>
    %42 = math.exp %41 : vector<8x256xf32>
    %cst_20 = arith.constant 1.000000e+00 : f32
    %43 = vector.broadcast %cst_20 : f32 to vector<8x256xf32>
    %44 = arith.addf %43, %42 : vector<8x256xf32>
    %45 = arith.divf %43, %44 : vector<8x256xf32>
    %46 = arith.select %13, %40, %45 : vector<8x256xi1>, vector<8x256xf32>
    %47 = vector.extract_strided_slice %46 {offsets = [0, 0], sizes = [8, 64], strides = [1, 1]} : vector<8x256xf32> to vector<8x64xf32>
    %48 = vector.extract_strided_slice %46 {offsets = [0, 64], sizes = [8, 64], strides = [1, 1]} : vector<8x256xf32> to vector<8x64xf32>
    %49 = vector.extract_strided_slice %46 {offsets = [0, 128], sizes = [8, 64], strides = [1, 1]} : vector<8x256xf32> to vector<8x64xf32>
    %50 = vector.extract_strided_slice %46 {offsets = [0, 192], sizes = [8, 64], strides = [1, 1]} : vector<8x256xf32> to vector<8x64xf32>
    %51 = arith.mulf %48, %34 : vector<8x64xf32>
    %52 = arith.mulf %47, %49 : vector<8x64xf32>
    %53 = arith.addf %51, %52 : vector<8x64xf32>
    %54 = math.tanh %53 : vector<8x64xf32>
    %55 = arith.mulf %50, %54 : vector<8x64xf32>
    %56 = arith.truncf %55 : vector<8x64xf32> to vector<8x64xbf16>
    %c0_21 = arith.constant 0 : index
    %c0_22 = arith.constant 0 : index
    %57 = vector.load %arg16[%c0_21, %c0_22] : memref<8x128xbf16, #tpu.memory_space<vmem>>, vector<8x64xbf16>
    tpu.vector_store %arg16[%c0_21, %c0_22], %56 {strides = array<i32>} : memref<8x128xbf16, #tpu.memory_space<vmem>>, vector<8x64xbf16>,
    %c0_23 = arith.constant 0 : index
    %c0_24 = arith.constant 0 : index
    %58 = vector.load %arg16[%c0_23, %c0_24] : memref<8x128xbf16, #tpu.memory_space<vmem>>, vector<8x128xbf16>
    %c0_25 = arith.constant 0 : index
    %c0_26 = arith.constant 0 : index
    %59 = vector.load %arg4[%c0_25, %c0_26] : memref<128x128xbf16, #tpu.memory_space<vmem>>, vector<128x128xbf16>
    %cst_27 = arith.constant dense<0.000000e+00> : vector<8x128xf32>
    %60 = tpu.matmul %58, %59, %cst_27 {dimension_numbers = #tpu.dot_dimension_numbers<[1], [0], [0], [1], [0, 0, 1, 1], [], []>} : vector<8x128xbf16>, vector<128x128xbf16>, vector<8x128xf32> -> vector<8x128xf32>
    %61 = arith.addf %60, %30 : vector<8x128xf32>
    %62 = math.tanh %61 : vector<8x128xf32>
    %63 = arith.negf %61 : vector<8x128xf32>
    %64 = math.exp %63 : vector<8x128xf32>
    %cst_28 = arith.constant 1.000000e+00 : f32
    %65 = vector.broadcast %cst_28 : f32 to vector<8x128xf32>
    %66 = arith.addf %65, %64 : vector<8x128xf32>
    %67 = arith.divf %65, %66 : vector<8x128xf32>
    %68 = arith.select %19, %62, %67 : vector<8x128xi1>, vector<8x128xf32>
    %69 = vector.extract_strided_slice %68 {offsets = [0, 0], sizes = [8, 32], strides = [1, 1]} : vector<8x128xf32> to vector<8x32xf32>
    %70 = vector.extract_strided_slice %68 {offsets = [0, 32], sizes = [8, 32], strides = [1, 1]} : vector<8x128xf32> to vector<8x32xf32>
    %71 = vector.extract_strided_slice %68 {offsets = [0, 64], sizes = [8, 32], strides = [1, 1]} : vector<8x128xf32> to vector<8x32xf32>
    %72 = vector.extract_strided_slice %68 {offsets = [0, 96], sizes = [8, 32], strides = [1, 1]} : vector<8x128xf32> to vector<8x32xf32>
    %73 = arith.mulf %70, %35 : vector<8x32xf32>
    %74 = arith.mulf %69, %71 : vector<8x32xf32>
    %75 = arith.addf %73, %74 : vector<8x32xf32>
    %76 = math.tanh %75 : vector<8x32xf32>
    %77 = arith.mulf %72, %76 : vector<8x32xf32>
    %78 = arith.truncf %77 : vector<8x32xf32> to vector<8x32xbf16>
    %c0_29 = arith.constant 0 : index
    %c64 = arith.constant 64 : index
    %79 = vector.load %arg16[%c0_29, %c64] : memref<8x128xbf16, #tpu.memory_space<vmem>>, vector<8x32xbf16>
    tpu.vector_store %arg16[%c0_29, %c64], %78 {strides = array<i32>} : memref<8x128xbf16, #tpu.memory_space<vmem>>, vector<8x32xbf16>,
    %c8 = arith.constant 8 : index
    %c0_30 = arith.constant 0 : index
    %80 = vector.load %arg14[%c8, %c0_30] : memref<64x256xf32, #tpu.memory_space<vmem>>, vector<8x256xf32>
    %c0_31 = arith.constant 0 : index
    %c0_32 = arith.constant 0 : index
    %81 = vector.load %arg2[%c0_31, %c0_32] : memref<64x256xbf16, #tpu.memory_space<vmem>>, vector<64x256xbf16>
    %cst_33 = arith.constant dense<0.000000e+00> : vector<8x256xf32>
    %82 = tpu.matmul %56, %81, %cst_33 {dimension_numbers = #tpu.dot_dimension_numbers<[1], [0], [0], [1], [0, 0, 1, 1], [], []>} : vector<8x64xbf16>, vector<64x256xbf16>, vector<8x256xf32> -> vector<8x256xf32>
    %83 = arith.addf %80, %82 : vector<8x256xf32>
    %84 = math.tanh %83 : vector<8x256xf32>
    %85 = arith.negf %83 : vector<8x256xf32>
    %86 = math.exp %85 : vector<8x256xf32>
    %cst_34 = arith.constant 1.000000e+00 : f32
    %87 = vector.broadcast %cst_34 : f32 to vector<8x256xf32>
    %88 = arith.addf %87, %86 : vector<8x256xf32>
    %89 = arith.divf %87, %88 : vector<8x256xf32>
    %90 = arith.select %13, %84, %89 : vector<8x256xi1>, vector<8x256xf32>
    %91 = vector.extract_strided_slice %90 {offsets = [0, 0], sizes = [8, 64], strides = [1, 1]} : vector<8x256xf32> to vector<8x64xf32>
    %92 = vector.extract_strided_slice %90 {offsets = [0, 64], sizes = [8, 64], strides = [1, 1]} : vector<8x256xf32> to vector<8x64xf32>
    %93 = vector.extract_strided_slice %90 {offsets = [0, 128], sizes = [8, 64], strides = [1, 1]} : vector<8x256xf32> to vector<8x64xf32>
    %94 = vector.extract_strided_slice %90 {offsets = [0, 192], sizes = [8, 64], strides = [1, 1]} : vector<8x256xf32> to vector<8x64xf32>
    %95 = arith.mulf %92, %53 : vector<8x64xf32>
    %96 = arith.mulf %91, %93 : vector<8x64xf32>
    %97 = arith.addf %95, %96 : vector<8x64xf32>
    %98 = math.tanh %97 : vector<8x64xf32>
    %99 = arith.mulf %94, %98 : vector<8x64xf32>
    %100 = arith.truncf %99 : vector<8x64xf32> to vector<8x64xbf16>
    %c0_35 = arith.constant 0 : index
    %c0_36 = arith.constant 0 : index
    %101 = vector.load %arg16[%c0_35, %c0_36] : memref<8x128xbf16, #tpu.memory_space<vmem>>, vector<8x64xbf16>
    tpu.vector_store %arg16[%c0_35, %c0_36], %100 {strides = array<i32>} : memref<8x128xbf16, #tpu.memory_space<vmem>>, vector<8x64xbf16>,
    %c0_37 = arith.constant 0 : index
    %c0_38 = arith.constant 0 : index
    %102 = vector.load %arg16[%c0_37, %c0_38] : memref<8x128xbf16, #tpu.memory_space<vmem>>, vector<8x128xbf16>
    %c0_39 = arith.constant 0 : index
    %c0_40 = arith.constant 0 : index
    %103 = vector.load %arg4[%c0_39, %c0_40] : memref<128x128xbf16, #tpu.memory_space<vmem>>, vector<128x128xbf16>
    %cst_41 = arith.constant dense<0.000000e+00> : vector<8x128xf32>
    %104 = tpu.matmul %102, %103, %cst_41 {dimension_numbers = #tpu.dot_dimension_numbers<[1], [0], [0], [1], [0, 0, 1, 1], [], []>} : vector<8x128xbf16>, vector<128x128xbf16>, vector<8x128xf32> -> vector<8x128xf32>
    %105 = arith.addf %104, %30 : vector<8x128xf32>
    %106 = math.tanh %105 : vector<8x128xf32>
    %107 = arith.negf %105 : vector<8x128xf32>
    %108 = math.exp %107 : vector<8x128xf32>
    %cst_42 = arith.constant 1.000000e+00 : f32
    %109 = vector.broadcast %cst_42 : f32 to vector<8x128xf32>
    %110 = arith.addf %109, %108 : vector<8x128xf32>
    %111 = arith.divf %109, %110 : vector<8x128xf32>
    %112 = arith.select %19, %106, %111 : vector<8x128xi1>, vector<8x128xf32>
    %113 = vector.extract_strided_slice %112 {offsets = [0, 0], sizes = [8, 32], strides = [1, 1]} : vector<8x128xf32> to vector<8x32xf32>
    %114 = vector.extract_strided_slice %112 {offsets = [0, 32], sizes = [8, 32], strides = [1, 1]} : vector<8x128xf32> to vector<8x32xf32>
    %115 = vector.extract_strided_slice %112 {offsets = [0, 64], sizes = [8, 32], strides = [1, 1]} : vector<8x128xf32> to vector<8x32xf32>
    %116 = vector.extract_strided_slice %112 {offsets = [0, 96], sizes = [8, 32], strides = [1, 1]} : vector<8x128xf32> to vector<8x32xf32>
    %117 = arith.mulf %114, %75 : vector<8x32xf32>
    %118 = arith.mulf %113, %115 : vector<8x32xf32>
    %119 = arith.addf %117, %118 : vector<8x32xf32>
    %120 = math.tanh %119 : vector<8x32xf32>
    %121 = arith.mulf %116, %120 : vector<8x32xf32>
    %122 = arith.truncf %121 : vector<8x32xf32> to vector<8x32xbf16>
    %c0_43 = arith.constant 0 : index
    %c64_44 = arith.constant 64 : index
    %123 = vector.load %arg16[%c0_43, %c64_44] : memref<8x128xbf16, #tpu.memory_space<vmem>>, vector<8x32xbf16>
    tpu.vector_store %arg16[%c0_43, %c64_44], %122 {strides = array<i32>} : memref<8x128xbf16, #tpu.memory_space<vmem>>, vector<8x32xbf16>,
    %c16 = arith.constant 16 : index
    %c0_45 = arith.constant 0 : index
    %124 = vector.load %arg14[%c16, %c0_45] : memref<64x256xf32, #tpu.memory_space<vmem>>, vector<8x256xf32>
    %c0_46 = arith.constant 0 : index
    %c0_47 = arith.constant 0 : index
    %125 = vector.load %arg2[%c0_46, %c0_47] : memref<64x256xbf16, #tpu.memory_space<vmem>>, vector<64x256xbf16>
    %cst_48 = arith.constant dense<0.000000e+00> : vector<8x256xf32>
    %126 = tpu.matmul %100, %125, %cst_48 {dimension_numbers = #tpu.dot_dimension_numbers<[1], [0], [0], [1], [0, 0, 1, 1], [], []>} : vector<8x64xbf16>, vector<64x256xbf16>, vector<8x256xf32> -> vector<8x256xf32>
    %127 = arith.addf %124, %126 : vector<8x256xf32>
    %128 = math.tanh %127 : vector<8x256xf32>
    %129 = arith.negf %127 : vector<8x256xf32>
    %130 = math.exp %129 : vector<8x256xf32>
    %cst_49 = arith.constant 1.000000e+00 : f32
    %131 = vector.broadcast %cst_49 : f32 to vector<8x256xf32>
    %132 = arith.addf %131, %130 : vector<8x256xf32>
    %133 = arith.divf %131, %132 : vector<8x256xf32>
    %134 = arith.select %13, %128, %133 : vector<8x256xi1>, vector<8x256xf32>
    %135 = vector.extract_strided_slice %134 {offsets = [0, 0], sizes = [8, 64], strides = [1, 1]} : vector<8x256xf32> to vector<8x64xf32>
    %136 = vector.extract_strided_slice %134 {offsets = [0, 64], sizes = [8, 64], strides = [1, 1]} : vector<8x256xf32> to vector<8x64xf32>
    %137 = vector.extract_strided_slice %134 {offsets = [0, 128], sizes = [8, 64], strides = [1, 1]} : vector<8x256xf32> to vector<8x64xf32>
    %138 = vector.extract_strided_slice %134 {offsets = [0, 192], sizes = [8, 64], strides = [1, 1]} : vector<8x256xf32> to vector<8x64xf32>
    %139 = arith.mulf %136, %97 : vector<8x64xf32>
    %140 = arith.mulf %135, %137 : vector<8x64xf32>
    %141 = arith.addf %139, %140 : vector<8x64xf32>
    %142 = math.tanh %141 : vector<8x64xf32>
    %143 = arith.mulf %138, %142 : vector<8x64xf32>
    %144 = arith.truncf %143 : vector<8x64xf32> to vector<8x64xbf16>
    %c0_50 = arith.constant 0 : index
    %c0_51 = arith.constant 0 : index
    %145 = vector.load %arg16[%c0_50, %c0_51] : memref<8x128xbf16, #tpu.memory_space<vmem>>, vector<8x64xbf16>
    tpu.vector_store %arg16[%c0_50, %c0_51], %144 {strides = array<i32>} : memref<8x128xbf16, #tpu.memory_space<vmem>>, vector<8x64xbf16>,
    %c0_52 = arith.constant 0 : index
    %c0_53 = arith.constant 0 : index
    %146 = vector.load %arg16[%c0_52, %c0_53] : memref<8x128xbf16, #tpu.memory_space<vmem>>, vector<8x128xbf16>
    %c0_54 = arith.constant 0 : index
    %c0_55 = arith.constant 0 : index
    %147 = vector.load %arg4[%c0_54, %c0_55] : memref<128x128xbf16, #tpu.memory_space<vmem>>, vector<128x128xbf16>
    %cst_56 = arith.constant dense<0.000000e+00> : vector<8x128xf32>
    %148 = tpu.matmul %146, %147, %cst_56 {dimension_numbers = #tpu.dot_dimension_numbers<[1], [0], [0], [1], [0, 0, 1, 1], [], []>} : vector<8x128xbf16>, vector<128x128xbf16>, vector<8x128xf32> -> vector<8x128xf32>
    %149 = arith.addf %148, %30 : vector<8x128xf32>
    %150 = math.tanh %149 : vector<8x128xf32>
    %151 = arith.negf %149 : vector<8x128xf32>
    %152 = math.exp %151 : vector<8x128xf32>
    %cst_57 = arith.constant 1.000000e+00 : f32
    %153 = vector.broadcast %cst_57 : f32 to vector<8x128xf32>
    %154 = arith.addf %153, %152 : vector<8x128xf32>
    %155 = arith.divf %153, %154 : vector<8x128xf32>
    %156 = arith.select %19, %150, %155 : vector<8x128xi1>, vector<8x128xf32>
    %157 = vector.extract_strided_slice %156 {offsets = [0, 0], sizes = [8, 32], strides = [1, 1]} : vector<8x128xf32> to vector<8x32xf32>
    %158 = vector.extract_strided_slice %156 {offsets = [0, 32], sizes = [8, 32], strides = [1, 1]} : vector<8x128xf32> to vector<8x32xf32>
    %159 = vector.extract_strided_slice %156 {offsets = [0, 64], sizes = [8, 32], strides = [1, 1]} : vector<8x128xf32> to vector<8x32xf32>
    %160 = vector.extract_strided_slice %156 {offsets = [0, 96], sizes = [8, 32], strides = [1, 1]} : vector<8x128xf32> to vector<8x32xf32>
    %161 = arith.mulf %158, %119 : vector<8x32xf32>
    %162 = arith.mulf %157, %159 : vector<8x32xf32>
    %163 = arith.addf %161, %162 : vector<8x32xf32>
    %164 = math.tanh %163 : vector<8x32xf32>
    %165 = arith.mulf %160, %164 : vector<8x32xf32>
    %166 = arith.truncf %165 : vector<8x32xf32> to vector<8x32xbf16>
    %c0_58 = arith.constant 0 : index
    %c64_59 = arith.constant 64 : index
    %167 = vector.load %arg16[%c0_58, %c64_59] : memref<8x128xbf16, #tpu.memory_space<vmem>>, vector<8x32xbf16>
    tpu.vector_store %arg16[%c0_58, %c64_59], %166 {strides = array<i32>} : memref<8x128xbf16, #tpu.memory_space<vmem>>, vector<8x32xbf16>,
    %c24 = arith.constant 24 : index
    %c0_60 = arith.constant 0 : index
    %168 = vector.load %arg14[%c24, %c0_60] : memref<64x256xf32, #tpu.memory_space<vmem>>, vector<8x256xf32>
    %c0_61 = arith.constant 0 : index
    %c0_62 = arith.constant 0 : index
    %169 = vector.load %arg2[%c0_61, %c0_62] : memref<64x256xbf16, #tpu.memory_space<vmem>>, vector<64x256xbf16>
    %cst_63 = arith.constant dense<0.000000e+00> : vector<8x256xf32>
    %170 = tpu.matmul %144, %169, %cst_63 {dimension_numbers = #tpu.dot_dimension_numbers<[1], [0], [0], [1], [0, 0, 1, 1], [], []>} : vector<8x64xbf16>, vector<64x256xbf16>, vector<8x256xf32> -> vector<8x256xf32>
    %171 = arith.addf %168, %170 : vector<8x256xf32>
    %172 = math.tanh %171 : vector<8x256xf32>
    %173 = arith.negf %171 : vector<8x256xf32>
    %174 = math.exp %173 : vector<8x256xf32>
    %cst_64 = arith.constant 1.000000e+00 : f32
    %175 = vector.broadcast %cst_64 : f32 to vector<8x256xf32>
    %176 = arith.addf %175, %174 : vector<8x256xf32>
    %177 = arith.divf %175, %176 : vector<8x256xf32>
    %178 = arith.select %13, %172, %177 : vector<8x256xi1>, vector<8x256xf32>
    %179 = vector.extract_strided_slice %178 {offsets = [0, 0], sizes = [8, 64], strides = [1, 1]} : vector<8x256xf32> to vector<8x64xf32>
    %180 = vector.extract_strided_slice %178 {offsets = [0, 64], sizes = [8, 64], strides = [1, 1]} : vector<8x256xf32> to vector<8x64xf32>
    %181 = vector.extract_strided_slice %178 {offsets = [0, 128], sizes = [8, 64], strides = [1, 1]} : vector<8x256xf32> to vector<8x64xf32>
    %182 = vector.extract_strided_slice %178 {offsets = [0, 192], sizes = [8, 64], strides = [1, 1]} : vector<8x256xf32> to vector<8x64xf32>
    %183 = arith.mulf %180, %141 : vector<8x64xf32>
    %184 = arith.mulf %179, %181 : vector<8x64xf32>
    %185 = arith.addf %183, %184 : vector<8x64xf32>
    %186 = math.tanh %185 : vector<8x64xf32>
    %187 = arith.mulf %182, %186 : vector<8x64xf32>
    %188 = arith.truncf %187 : vector<8x64xf32> to vector<8x64xbf16>
    %c0_65 = arith.constant 0 : index
    %c0_66 = arith.constant 0 : index
    %189 = vector.load %arg16[%c0_65, %c0_66] : memref<8x128xbf16, #tpu.memory_space<vmem>>, vector<8x64xbf16>
    tpu.vector_store %arg16[%c0_65, %c0_66], %188 {strides = array<i32>} : memref<8x128xbf16, #tpu.memory_space<vmem>>, vector<8x64xbf16>,
    %c0_67 = arith.constant 0 : index
    %c0_68 = arith.constant 0 : index
    %190 = vector.load %arg16[%c0_67, %c0_68] : memref<8x128xbf16, #tpu.memory_space<vmem>>, vector<8x128xbf16>
    %c0_69 = arith.constant 0 : index
    %c0_70 = arith.constant 0 : index
    %191 = vector.load %arg4[%c0_69, %c0_70] : memref<128x128xbf16, #tpu.memory_space<vmem>>, vector<128x128xbf16>
    %cst_71 = arith.constant dense<0.000000e+00> : vector<8x128xf32>
    %192 = tpu.matmul %190, %191, %cst_71 {dimension_numbers = #tpu.dot_dimension_numbers<[1], [0], [0], [1], [0, 0, 1, 1], [], []>} : vector<8x128xbf16>, vector<128x128xbf16>, vector<8x128xf32> -> vector<8x128xf32>
    %193 = arith.addf %192, %30 : vector<8x128xf32>
    %194 = math.tanh %193 : vector<8x128xf32>
    %195 = arith.negf %193 : vector<8x128xf32>
    %196 = math.exp %195 : vector<8x128xf32>
    %cst_72 = arith.constant 1.000000e+00 : f32
    %197 = vector.broadcast %cst_72 : f32 to vector<8x128xf32>
    %198 = arith.addf %197, %196 : vector<8x128xf32>
    %199 = arith.divf %197, %198 : vector<8x128xf32>
    %200 = arith.select %19, %194, %199 : vector<8x128xi1>, vector<8x128xf32>
    %201 = vector.extract_strided_slice %200 {offsets = [0, 0], sizes = [8, 32], strides = [1, 1]} : vector<8x128xf32> to vector<8x32xf32>
    %202 = vector.extract_strided_slice %200 {offsets = [0, 32], sizes = [8, 32], strides = [1, 1]} : vector<8x128xf32> to vector<8x32xf32>
    %203 = vector.extract_strided_slice %200 {offsets = [0, 64], sizes = [8, 32], strides = [1, 1]} : vector<8x128xf32> to vector<8x32xf32>
    %204 = vector.extract_strided_slice %200 {offsets = [0, 96], sizes = [8, 32], strides = [1, 1]} : vector<8x128xf32> to vector<8x32xf32>
    %205 = arith.mulf %202, %163 : vector<8x32xf32>
    %206 = arith.mulf %201, %203 : vector<8x32xf32>
    %207 = arith.addf %205, %206 : vector<8x32xf32>
    %208 = math.tanh %207 : vector<8x32xf32>
    %209 = arith.mulf %204, %208 : vector<8x32xf32>
    %210 = arith.truncf %209 : vector<8x32xf32> to vector<8x32xbf16>
    %c0_73 = arith.constant 0 : index
    %c64_74 = arith.constant 64 : index
    %211 = vector.load %arg16[%c0_73, %c64_74] : memref<8x128xbf16, #tpu.memory_space<vmem>>, vector<8x32xbf16>
    tpu.vector_store %arg16[%c0_73, %c64_74], %210 {strides = array<i32>} : memref<8x128xbf16, #tpu.memory_space<vmem>>, vector<8x32xbf16>,
    %c32 = arith.constant 32 : index
    %c0_75 = arith.constant 0 : index
    %212 = vector.load %arg14[%c32, %c0_75] : memref<64x256xf32, #tpu.memory_space<vmem>>, vector<8x256xf32>
    %c0_76 = arith.constant 0 : index
    %c0_77 = arith.constant 0 : index
    %213 = vector.load %arg2[%c0_76, %c0_77] : memref<64x256xbf16, #tpu.memory_space<vmem>>, vector<64x256xbf16>
    %cst_78 = arith.constant dense<0.000000e+00> : vector<8x256xf32>
    %214 = tpu.matmul %188, %213, %cst_78 {dimension_numbers = #tpu.dot_dimension_numbers<[1], [0], [0], [1], [0, 0, 1, 1], [], []>} : vector<8x64xbf16>, vector<64x256xbf16>, vector<8x256xf32> -> vector<8x256xf32>
    %215 = arith.addf %212, %214 : vector<8x256xf32>
    %216 = math.tanh %215 : vector<8x256xf32>
    %217 = arith.negf %215 : vector<8x256xf32>
    %218 = math.exp %217 : vector<8x256xf32>
    %cst_79 = arith.constant 1.000000e+00 : f32
    %219 = vector.broadcast %cst_79 : f32 to vector<8x256xf32>
    %220 = arith.addf %219, %218 : vector<8x256xf32>
    %221 = arith.divf %219, %220 : vector<8x256xf32>
    %222 = arith.select %13, %216, %221 : vector<8x256xi1>, vector<8x256xf32>
    %223 = vector.extract_strided_slice %222 {offsets = [0, 0], sizes = [8, 64], strides = [1, 1]} : vector<8x256xf32> to vector<8x64xf32>
    %224 = vector.extract_strided_slice %222 {offsets = [0, 64], sizes = [8, 64], strides = [1, 1]} : vector<8x256xf32> to vector<8x64xf32>
    %225 = vector.extract_strided_slice %222 {offsets = [0, 128], sizes = [8, 64], strides = [1, 1]} : vector<8x256xf32> to vector<8x64xf32>
    %226 = vector.extract_strided_slice %222 {offsets = [0, 192], sizes = [8, 64], strides = [1, 1]} : vector<8x256xf32> to vector<8x64xf32>
    %227 = arith.mulf %224, %185 : vector<8x64xf32>
    %228 = arith.mulf %223, %225 : vector<8x64xf32>
    %229 = arith.addf %227, %228 : vector<8x64xf32>
    %230 = math.tanh %229 : vector<8x64xf32>
    %231 = arith.mulf %226, %230 : vector<8x64xf32>
    %232 = arith.truncf %231 : vector<8x64xf32> to vector<8x64xbf16>
    %c0_80 = arith.constant 0 : index
    %c0_81 = arith.constant 0 : index
    %233 = vector.load %arg16[%c0_80, %c0_81] : memref<8x128xbf16, #tpu.memory_space<vmem>>, vector<8x64xbf16>
    tpu.vector_store %arg16[%c0_80, %c0_81], %232 {strides = array<i32>} : memref<8x128xbf16, #tpu.memory_space<vmem>>, vector<8x64xbf16>,
    %c0_82 = arith.constant 0 : index
    %c0_83 = arith.constant 0 : index
    %234 = vector.load %arg16[%c0_82, %c0_83] : memref<8x128xbf16, #tpu.memory_space<vmem>>, vector<8x128xbf16>
    %c0_84 = arith.constant 0 : index
    %c0_85 = arith.constant 0 : index
    %235 = vector.load %arg4[%c0_84, %c0_85] : memref<128x128xbf16, #tpu.memory_space<vmem>>, vector<128x128xbf16>
    %cst_86 = arith.constant dense<0.000000e+00> : vector<8x128xf32>
    %236 = tpu.matmul %234, %235, %cst_86 {dimension_numbers = #tpu.dot_dimension_numbers<[1], [0], [0], [1], [0, 0, 1, 1], [], []>} : vector<8x128xbf16>, vector<128x128xbf16>, vector<8x128xf32> -> vector<8x128xf32>
    %237 = arith.addf %236, %30 : vector<8x128xf32>
    %238 = math.tanh %237 : vector<8x128xf32>
    %239 = arith.negf %237 : vector<8x128xf32>
    %240 = math.exp %239 : vector<8x128xf32>
    %cst_87 = arith.constant 1.000000e+00 : f32
    %241 = vector.broadcast %cst_87 : f32 to vector<8x128xf32>
    %242 = arith.addf %241, %240 : vector<8x128xf32>
    %243 = arith.divf %241, %242 : vector<8x128xf32>
    %244 = arith.select %19, %238, %243 : vector<8x128xi1>, vector<8x128xf32>
    %245 = vector.extract_strided_slice %244 {offsets = [0, 0], sizes = [8, 32], strides = [1, 1]} : vector<8x128xf32> to vector<8x32xf32>
    %246 = vector.extract_strided_slice %244 {offsets = [0, 32], sizes = [8, 32], strides = [1, 1]} : vector<8x128xf32> to vector<8x32xf32>
    %247 = vector.extract_strided_slice %244 {offsets = [0, 64], sizes = [8, 32], strides = [1, 1]} : vector<8x128xf32> to vector<8x32xf32>
    %248 = vector.extract_strided_slice %244 {offsets = [0, 96], sizes = [8, 32], strides = [1, 1]} : vector<8x128xf32> to vector<8x32xf32>
    %249 = arith.mulf %246, %207 : vector<8x32xf32>
    %250 = arith.mulf %245, %247 : vector<8x32xf32>
    %251 = arith.addf %249, %250 : vector<8x32xf32>
    %252 = math.tanh %251 : vector<8x32xf32>
    %253 = arith.mulf %248, %252 : vector<8x32xf32>
    %254 = arith.truncf %253 : vector<8x32xf32> to vector<8x32xbf16>
    %c0_88 = arith.constant 0 : index
    %c64_89 = arith.constant 64 : index
    %255 = vector.load %arg16[%c0_88, %c64_89] : memref<8x128xbf16, #tpu.memory_space<vmem>>, vector<8x32xbf16>
    tpu.vector_store %arg16[%c0_88, %c64_89], %254 {strides = array<i32>} : memref<8x128xbf16, #tpu.memory_space<vmem>>, vector<8x32xbf16>,
    %c40 = arith.constant 40 : index
    %c0_90 = arith.constant 0 : index
    %256 = vector.load %arg14[%c40, %c0_90] : memref<64x256xf32, #tpu.memory_space<vmem>>, vector<8x256xf32>
    %c0_91 = arith.constant 0 : index
    %c0_92 = arith.constant 0 : index
    %257 = vector.load %arg2[%c0_91, %c0_92] : memref<64x256xbf16, #tpu.memory_space<vmem>>, vector<64x256xbf16>
    %cst_93 = arith.constant dense<0.000000e+00> : vector<8x256xf32>
    %258 = tpu.matmul %232, %257, %cst_93 {dimension_numbers = #tpu.dot_dimension_numbers<[1], [0], [0], [1], [0, 0, 1, 1], [], []>} : vector<8x64xbf16>, vector<64x256xbf16>, vector<8x256xf32> -> vector<8x256xf32>
    %259 = arith.addf %256, %258 : vector<8x256xf32>
    %260 = math.tanh %259 : vector<8x256xf32>
    %261 = arith.negf %259 : vector<8x256xf32>
    %262 = math.exp %261 : vector<8x256xf32>
    %cst_94 = arith.constant 1.000000e+00 : f32
    %263 = vector.broadcast %cst_94 : f32 to vector<8x256xf32>
    %264 = arith.addf %263, %262 : vector<8x256xf32>
    %265 = arith.divf %263, %264 : vector<8x256xf32>
    %266 = arith.select %13, %260, %265 : vector<8x256xi1>, vector<8x256xf32>
    %267 = vector.extract_strided_slice %266 {offsets = [0, 0], sizes = [8, 64], strides = [1, 1]} : vector<8x256xf32> to vector<8x64xf32>
    %268 = vector.extract_strided_slice %266 {offsets = [0, 64], sizes = [8, 64], strides = [1, 1]} : vector<8x256xf32> to vector<8x64xf32>
    %269 = vector.extract_strided_slice %266 {offsets = [0, 128], sizes = [8, 64], strides = [1, 1]} : vector<8x256xf32> to vector<8x64xf32>
    %270 = vector.extract_strided_slice %266 {offsets = [0, 192], sizes = [8, 64], strides = [1, 1]} : vector<8x256xf32> to vector<8x64xf32>
    %271 = arith.mulf %268, %229 : vector<8x64xf32>
    %272 = arith.mulf %267, %269 : vector<8x64xf32>
    %273 = arith.addf %271, %272 : vector<8x64xf32>
    %274 = math.tanh %273 : vector<8x64xf32>
    %275 = arith.mulf %270, %274 : vector<8x64xf32>
    %276 = arith.truncf %275 : vector<8x64xf32> to vector<8x64xbf16>
    %c0_95 = arith.constant 0 : index
    %c0_96 = arith.constant 0 : index
    %277 = vector.load %arg16[%c0_95, %c0_96] : memref<8x128xbf16, #tpu.memory_space<vmem>>, vector<8x64xbf16>
    tpu.vector_store %arg16[%c0_95, %c0_96], %276 {strides = array<i32>} : memref<8x128xbf16, #tpu.memory_space<vmem>>, vector<8x64xbf16>,
    %c0_97 = arith.constant 0 : index
    %c0_98 = arith.constant 0 : index
    %278 = vector.load %arg16[%c0_97, %c0_98] : memref<8x128xbf16, #tpu.memory_space<vmem>>, vector<8x128xbf16>
    %c0_99 = arith.constant 0 : index
    %c0_100 = arith.constant 0 : index
    %279 = vector.load %arg4[%c0_99, %c0_100] : memref<128x128xbf16, #tpu.memory_space<vmem>>, vector<128x128xbf16>
    %cst_101 = arith.constant dense<0.000000e+00> : vector<8x128xf32>
    %280 = tpu.matmul %278, %279, %cst_101 {dimension_numbers = #tpu.dot_dimension_numbers<[1], [0], [0], [1], [0, 0, 1, 1], [], []>} : vector<8x128xbf16>, vector<128x128xbf16>, vector<8x128xf32> -> vector<8x128xf32>
    %281 = arith.addf %280, %30 : vector<8x128xf32>
    %282 = math.tanh %281 : vector<8x128xf32>
    %283 = arith.negf %281 : vector<8x128xf32>
    %284 = math.exp %283 : vector<8x128xf32>
    %cst_102 = arith.constant 1.000000e+00 : f32
    %285 = vector.broadcast %cst_102 : f32 to vector<8x128xf32>
    %286 = arith.addf %285, %284 : vector<8x128xf32>
    %287 = arith.divf %285, %286 : vector<8x128xf32>
    %288 = arith.select %19, %282, %287 : vector<8x128xi1>, vector<8x128xf32>
    %289 = vector.extract_strided_slice %288 {offsets = [0, 0], sizes = [8, 32], strides = [1, 1]} : vector<8x128xf32> to vector<8x32xf32>
    %290 = vector.extract_strided_slice %288 {offsets = [0, 32], sizes = [8, 32], strides = [1, 1]} : vector<8x128xf32> to vector<8x32xf32>
    %291 = vector.extract_strided_slice %288 {offsets = [0, 64], sizes = [8, 32], strides = [1, 1]} : vector<8x128xf32> to vector<8x32xf32>
    %292 = vector.extract_strided_slice %288 {offsets = [0, 96], sizes = [8, 32], strides = [1, 1]} : vector<8x128xf32> to vector<8x32xf32>
    %293 = arith.mulf %290, %251 : vector<8x32xf32>
    %294 = arith.mulf %289, %291 : vector<8x32xf32>
    %295 = arith.addf %293, %294 : vector<8x32xf32>
    %296 = math.tanh %295 : vector<8x32xf32>
    %297 = arith.mulf %292, %296 : vector<8x32xf32>
    %298 = arith.truncf %297 : vector<8x32xf32> to vector<8x32xbf16>
    %c0_103 = arith.constant 0 : index
    %c64_104 = arith.constant 64 : index
    %299 = vector.load %arg16[%c0_103, %c64_104] : memref<8x128xbf16, #tpu.memory_space<vmem>>, vector<8x32xbf16>
    tpu.vector_store %arg16[%c0_103, %c64_104], %298 {strides = array<i32>} : memref<8x128xbf16, #tpu.memory_space<vmem>>, vector<8x32xbf16>,
    %c48 = arith.constant 48 : index
    %c0_105 = arith.constant 0 : index
    %300 = vector.load %arg14[%c48, %c0_105] : memref<64x256xf32, #tpu.memory_space<vmem>>, vector<8x256xf32>
    %c0_106 = arith.constant 0 : index
    %c0_107 = arith.constant 0 : index
    %301 = vector.load %arg2[%c0_106, %c0_107] : memref<64x256xbf16, #tpu.memory_space<vmem>>, vector<64x256xbf16>
    %cst_108 = arith.constant dense<0.000000e+00> : vector<8x256xf32>
    %302 = tpu.matmul %276, %301, %cst_108 {dimension_numbers = #tpu.dot_dimension_numbers<[1], [0], [0], [1], [0, 0, 1, 1], [], []>} : vector<8x64xbf16>, vector<64x256xbf16>, vector<8x256xf32> -> vector<8x256xf32>
    %303 = arith.addf %300, %302 : vector<8x256xf32>
    %304 = math.tanh %303 : vector<8x256xf32>
    %305 = arith.negf %303 : vector<8x256xf32>
    %306 = math.exp %305 : vector<8x256xf32>
    %cst_109 = arith.constant 1.000000e+00 : f32
    %307 = vector.broadcast %cst_109 : f32 to vector<8x256xf32>
    %308 = arith.addf %307, %306 : vector<8x256xf32>
    %309 = arith.divf %307, %308 : vector<8x256xf32>
    %310 = arith.select %13, %304, %309 : vector<8x256xi1>, vector<8x256xf32>
    %311 = vector.extract_strided_slice %310 {offsets = [0, 0], sizes = [8, 64], strides = [1, 1]} : vector<8x256xf32> to vector<8x64xf32>
    %312 = vector.extract_strided_slice %310 {offsets = [0, 64], sizes = [8, 64], strides = [1, 1]} : vector<8x256xf32> to vector<8x64xf32>
    %313 = vector.extract_strided_slice %310 {offsets = [0, 128], sizes = [8, 64], strides = [1, 1]} : vector<8x256xf32> to vector<8x64xf32>
    %314 = vector.extract_strided_slice %310 {offsets = [0, 192], sizes = [8, 64], strides = [1, 1]} : vector<8x256xf32> to vector<8x64xf32>
    %315 = arith.mulf %312, %273 : vector<8x64xf32>
    %316 = arith.mulf %311, %313 : vector<8x64xf32>
    %317 = arith.addf %315, %316 : vector<8x64xf32>
    %318 = math.tanh %317 : vector<8x64xf32>
    %319 = arith.mulf %314, %318 : vector<8x64xf32>
    %320 = arith.truncf %319 : vector<8x64xf32> to vector<8x64xbf16>
    %c0_110 = arith.constant 0 : index
    %c0_111 = arith.constant 0 : index
    %321 = vector.load %arg16[%c0_110, %c0_111] : memref<8x128xbf16, #tpu.memory_space<vmem>>, vector<8x64xbf16>
    tpu.vector_store %arg16[%c0_110, %c0_111], %320 {strides = array<i32>} : memref<8x128xbf16, #tpu.memory_space<vmem>>, vector<8x64xbf16>,
    %c0_112 = arith.constant 0 : index
    %c0_113 = arith.constant 0 : index
    %322 = vector.load %arg16[%c0_112, %c0_113] : memref<8x128xbf16, #tpu.memory_space<vmem>>, vector<8x128xbf16>
    %c0_114 = arith.constant 0 : index
    %c0_115 = arith.constant 0 : index
    %323 = vector.load %arg4[%c0_114, %c0_115] : memref<128x128xbf16, #tpu.memory_space<vmem>>, vector<128x128xbf16>
    %cst_116 = arith.constant dense<0.000000e+00> : vector<8x128xf32>
    %324 = tpu.matmul %322, %323, %cst_116 {dimension_numbers = #tpu.dot_dimension_numbers<[1], [0], [0], [1], [0, 0, 1, 1], [], []>} : vector<8x128xbf16>, vector<128x128xbf16>, vector<8x128xf32> -> vector<8x128xf32>
    %325 = arith.addf %324, %30 : vector<8x128xf32>
    %326 = math.tanh %325 : vector<8x128xf32>
    %327 = arith.negf %325 : vector<8x128xf32>
    %328 = math.exp %327 : vector<8x128xf32>
    %cst_117 = arith.constant 1.000000e+00 : f32
    %329 = vector.broadcast %cst_117 : f32 to vector<8x128xf32>
    %330 = arith.addf %329, %328 : vector<8x128xf32>
    %331 = arith.divf %329, %330 : vector<8x128xf32>
    %332 = arith.select %19, %326, %331 : vector<8x128xi1>, vector<8x128xf32>
    %333 = vector.extract_strided_slice %332 {offsets = [0, 0], sizes = [8, 32], strides = [1, 1]} : vector<8x128xf32> to vector<8x32xf32>
    %334 = vector.extract_strided_slice %332 {offsets = [0, 32], sizes = [8, 32], strides = [1, 1]} : vector<8x128xf32> to vector<8x32xf32>
    %335 = vector.extract_strided_slice %332 {offsets = [0, 64], sizes = [8, 32], strides = [1, 1]} : vector<8x128xf32> to vector<8x32xf32>
    %336 = vector.extract_strided_slice %332 {offsets = [0, 96], sizes = [8, 32], strides = [1, 1]} : vector<8x128xf32> to vector<8x32xf32>
    %337 = arith.mulf %334, %295 : vector<8x32xf32>
    %338 = arith.mulf %333, %335 : vector<8x32xf32>
    %339 = arith.addf %337, %338 : vector<8x32xf32>
    %340 = math.tanh %339 : vector<8x32xf32>
    %341 = arith.mulf %336, %340 : vector<8x32xf32>
    %342 = arith.truncf %341 : vector<8x32xf32> to vector<8x32xbf16>
    %c0_118 = arith.constant 0 : index
    %c64_119 = arith.constant 64 : index
    %343 = vector.load %arg16[%c0_118, %c64_119] : memref<8x128xbf16, #tpu.memory_space<vmem>>, vector<8x32xbf16>
    tpu.vector_store %arg16[%c0_118, %c64_119], %342 {strides = array<i32>} : memref<8x128xbf16, #tpu.memory_space<vmem>>, vector<8x32xbf16>,
    %c56 = arith.constant 56 : index
    %c0_120 = arith.constant 0 : index
    %344 = vector.load %arg14[%c56, %c0_120] : memref<64x256xf32, #tpu.memory_space<vmem>>, vector<8x256xf32>
    %c0_121 = arith.constant 0 : index
    %c0_122 = arith.constant 0 : index
    %345 = vector.load %arg2[%c0_121, %c0_122] : memref<64x256xbf16, #tpu.memory_space<vmem>>, vector<64x256xbf16>
    %cst_123 = arith.constant dense<0.000000e+00> : vector<8x256xf32>
    %346 = tpu.matmul %320, %345, %cst_123 {dimension_numbers = #tpu.dot_dimension_numbers<[1], [0], [0], [1], [0, 0, 1, 1], [], []>} : vector<8x64xbf16>, vector<64x256xbf16>, vector<8x256xf32> -> vector<8x256xf32>
    %347 = arith.addf %344, %346 : vector<8x256xf32>
    %348 = math.tanh %347 : vector<8x256xf32>
    %349 = arith.negf %347 : vector<8x256xf32>
    %350 = math.exp %349 : vector<8x256xf32>
    %cst_124 = arith.constant 1.000000e+00 : f32
    %351 = vector.broadcast %cst_124 : f32 to vector<8x256xf32>
    %352 = arith.addf %351, %350 : vector<8x256xf32>
    %353 = arith.divf %351, %352 : vector<8x256xf32>
    %354 = arith.select %13, %348, %353 : vector<8x256xi1>, vector<8x256xf32>
    %355 = vector.extract_strided_slice %354 {offsets = [0, 0], sizes = [8, 64], strides = [1, 1]} : vector<8x256xf32> to vector<8x64xf32>
    %356 = vector.extract_strided_slice %354 {offsets = [0, 64], sizes = [8, 64], strides = [1, 1]} : vector<8x256xf32> to vector<8x64xf32>
    %357 = vector.extract_strided_slice %354 {offsets = [0, 128], sizes = [8, 64], strides = [1, 1]} : vector<8x256xf32> to vector<8x64xf32>
    %358 = vector.extract_strided_slice %354 {offsets = [0, 192], sizes = [8, 64], strides = [1, 1]} : vector<8x256xf32> to vector<8x64xf32>
    %359 = arith.mulf %356, %317 : vector<8x64xf32>
    %360 = arith.mulf %355, %357 : vector<8x64xf32>
    %361 = arith.addf %359, %360 : vector<8x64xf32>
    %362 = math.tanh %361 : vector<8x64xf32>
    %363 = arith.mulf %358, %362 : vector<8x64xf32>
    %364 = arith.truncf %363 : vector<8x64xf32> to vector<8x64xbf16>
    %c0_125 = arith.constant 0 : index
    %c0_126 = arith.constant 0 : index
    %365 = vector.load %arg16[%c0_125, %c0_126] : memref<8x128xbf16, #tpu.memory_space<vmem>>, vector<8x64xbf16>
    tpu.vector_store %arg16[%c0_125, %c0_126], %364 {strides = array<i32>} : memref<8x128xbf16, #tpu.memory_space<vmem>>, vector<8x64xbf16>,
    %c0_127 = arith.constant 0 : index
    %c0_128 = arith.constant 0 : index
    %366 = vector.load %arg16[%c0_127, %c0_128] : memref<8x128xbf16, #tpu.memory_space<vmem>>, vector<8x128xbf16>
    %c0_129 = arith.constant 0 : index
    %c0_130 = arith.constant 0 : index
    %367 = vector.load %arg4[%c0_129, %c0_130] : memref<128x128xbf16, #tpu.memory_space<vmem>>, vector<128x128xbf16>
    %cst_131 = arith.constant dense<0.000000e+00> : vector<8x128xf32>
    %368 = tpu.matmul %366, %367, %cst_131 {dimension_numbers = #tpu.dot_dimension_numbers<[1], [0], [0], [1], [0, 0, 1, 1], [], []>} : vector<8x128xbf16>, vector<128x128xbf16>, vector<8x128xf32> -> vector<8x128xf32>
    %369 = arith.addf %368, %30 : vector<8x128xf32>
    %370 = math.tanh %369 : vector<8x128xf32>
    %371 = arith.negf %369 : vector<8x128xf32>
    %372 = math.exp %371 : vector<8x128xf32>
    %cst_132 = arith.constant 1.000000e+00 : f32
    %373 = vector.broadcast %cst_132 : f32 to vector<8x128xf32>
    %374 = arith.addf %373, %372 : vector<8x128xf32>
    %375 = arith.divf %373, %374 : vector<8x128xf32>
    %376 = arith.select %19, %370, %375 : vector<8x128xi1>, vector<8x128xf32>
    %377 = vector.extract_strided_slice %376 {offsets = [0, 0], sizes = [8, 32], strides = [1, 1]} : vector<8x128xf32> to vector<8x32xf32>
    %378 = vector.extract_strided_slice %376 {offsets = [0, 32], sizes = [8, 32], strides = [1, 1]} : vector<8x128xf32> to vector<8x32xf32>
    %379 = vector.extract_strided_slice %376 {offsets = [0, 64], sizes = [8, 32], strides = [1, 1]} : vector<8x128xf32> to vector<8x32xf32>
    %380 = vector.extract_strided_slice %376 {offsets = [0, 96], sizes = [8, 32], strides = [1, 1]} : vector<8x128xf32> to vector<8x32xf32>
    %381 = arith.mulf %378, %339 : vector<8x32xf32>
    %382 = arith.mulf %377, %379 : vector<8x32xf32>
    %383 = arith.addf %381, %382 : vector<8x32xf32>
    %384 = math.tanh %383 : vector<8x32xf32>
    %385 = arith.mulf %380, %384 : vector<8x32xf32>
    %386 = arith.truncf %385 : vector<8x32xf32> to vector<8x32xbf16>
    %c0_133 = arith.constant 0 : index
    %c64_134 = arith.constant 64 : index
    %387 = vector.load %arg16[%c0_133, %c64_134] : memref<8x128xbf16, #tpu.memory_space<vmem>>, vector<8x32xbf16>
    tpu.vector_store %arg16[%c0_133, %c64_134], %386 {strides = array<i32>} : memref<8x128xbf16, #tpu.memory_space<vmem>>, vector<8x32xbf16>,
    %388 = arith.truncf %385 : vector<8x32xf32> to vector<8x32xbf16>
    %c0_i32_135 = arith.constant 0 : i32
    %389 = tpu.memref_slice %arg22[%c0_i32_135] : memref<4x!tpu.dma_semaphore, #tpu.memory_space<semaphore_mem>> -> memref<1x!tpu.dma_semaphore, #tpu.memory_space<semaphore_mem>>
    %390 = tpu.memref_squeeze %389 : memref<1x!tpu.dma_semaphore, #tpu.memory_space<semaphore_mem>> -> memref<!tpu.dma_semaphore, #tpu.memory_space<semaphore_mem>>
    tpu.wait_dma2 semaphore(%390 : memref<!tpu.dma_semaphore, #tpu.memory_space<semaphore_mem>>) src(%arg6 : memref<32x128xbf16, #tpu.memory_space<any>>) dst(%arg18 : memref<32x128xbf16, #tpu.memory_space<vmem>>)
    %c1_i32_136 = arith.constant 1 : i32
    %391 = tpu.memref_slice %arg22[%c1_i32_136] : memref<4x!tpu.dma_semaphore, #tpu.memory_space<semaphore_mem>> -> memref<1x!tpu.dma_semaphore, #tpu.memory_space<semaphore_mem>>
    %392 = tpu.memref_squeeze %391 : memref<1x!tpu.dma_semaphore, #tpu.memory_space<semaphore_mem>> -> memref<!tpu.dma_semaphore, #tpu.memory_space<semaphore_mem>>
    tpu.wait_dma2 semaphore(%392 : memref<!tpu.dma_semaphore, #tpu.memory_space<semaphore_mem>>) src(%arg7 : memref<32x128xbf16, #tpu.memory_space<any>>) dst(%arg19 : memref<32x128xbf16, #tpu.memory_space<vmem>>)
    %c2_i32_137 = arith.constant 2 : i32
    %393 = tpu.memref_slice %arg22[%c2_i32_137] : memref<4x!tpu.dma_semaphore, #tpu.memory_space<semaphore_mem>> -> memref<1x!tpu.dma_semaphore, #tpu.memory_space<semaphore_mem>>
    %394 = tpu.memref_squeeze %393 : memref<1x!tpu.dma_semaphore, #tpu.memory_space<semaphore_mem>> -> memref<!tpu.dma_semaphore, #tpu.memory_space<semaphore_mem>>
    tpu.wait_dma2 semaphore(%394 : memref<!tpu.dma_semaphore, #tpu.memory_space<semaphore_mem>>) src(%arg9 : memref<128x256xbf16, #tpu.memory_space<any>>) dst(%arg20 : memref<128x256xbf16, #tpu.memory_space<vmem>>)
    %c3_i32_138 = arith.constant 3 : i32
    %395 = tpu.memref_slice %arg22[%c3_i32_138] : memref<4x!tpu.dma_semaphore, #tpu.memory_space<semaphore_mem>> -> memref<1x!tpu.dma_semaphore, #tpu.memory_space<semaphore_mem>>
    %396 = tpu.memref_squeeze %395 : memref<1x!tpu.dma_semaphore, #tpu.memory_space<semaphore_mem>> -> memref<!tpu.dma_semaphore, #tpu.memory_space<semaphore_mem>>
    tpu.wait_dma2 semaphore(%396 : memref<!tpu.dma_semaphore, #tpu.memory_space<semaphore_mem>>) src(%arg11 : memref<64x128xbf16, #tpu.memory_space<any>>) dst(%arg21 : memref<64x128xbf16, #tpu.memory_space<vmem>>)
    %c0_139 = arith.constant 0 : index
    %c0_140 = arith.constant 0 : index
    %397 = vector.load %arg18[%c0_139, %c0_140] : memref<32x128xbf16, #tpu.memory_space<vmem>>, vector<32x128xbf16>
    %cst_141 = arith.constant dense<0.000000e+00> : vector<8x128xf32>
    %398 = tpu.matmul %388, %397, %cst_141 {dimension_numbers = #tpu.dot_dimension_numbers<[1], [0], [0], [1], [0, 0, 1, 1], [], []>} : vector<8x32xbf16>, vector<32x128xbf16>, vector<8x128xf32> -> vector<8x128xf32>
    %c0_142 = arith.constant 0 : index
    %c0_143 = arith.constant 0 : index
    %399 = vector.load %arg8[%c0_142, %c0_143] : memref<1x128xf32, #tpu.memory_space<vmem>>, vector<1x128xf32>
    %400 = vector.broadcast %399 : vector<1x128xf32> to vector<8x128xf32>
    %401 = arith.addf %398, %400 : vector<8x128xf32>
    %c0_144 = arith.constant 0 : index
    %c0_145 = arith.constant 0 : index
    %402 = vector.load %arg10[%c0_144, %c0_145] : memref<1x256xf32, #tpu.memory_space<vmem>>, vector<1x256xf32>
    %403 = vector.shape_cast %402 : vector<1x256xf32> to vector<1x256xf32>
    %404 = vector.broadcast %403 : vector<1x256xf32> to vector<8x256xf32>
    %cst_146 = arith.constant 0.000000e+00 : bf16
    %405 = vector.broadcast %cst_146 : bf16 to vector<8x128xbf16>
    %c0_147 = arith.constant 0 : index
    %c0_148 = arith.constant 0 : index
    %406 = vector.load %arg17[%c0_147, %c0_148] : memref<8x128xbf16, #tpu.memory_space<vmem>>, vector<8x128xbf16>
    tpu.vector_store %arg17[%c0_147, %c0_148], %405 {strides = array<i32>} : memref<8x128xbf16, #tpu.memory_space<vmem>>, vector<8x128xbf16>,
    %cst_149 = arith.constant 0.000000e+00 : bf16
    %407 = vector.broadcast %cst_149 : bf16 to vector<8x32xbf16>
    %cst_150 = arith.constant 0.000000e+00 : f32
    %408 = vector.broadcast %cst_150 : f32 to vector<8x32xf32>
    %cst_151 = arith.constant 0.000000e+00 : f32
    %409 = vector.broadcast %cst_151 : f32 to vector<8x64xf32>
    %c0_152 = arith.constant 0 : index
    %c0_153 = arith.constant 0 : index
    %410 = vector.load %arg19[%c0_152, %c0_153] : memref<32x128xbf16, #tpu.memory_space<vmem>>, vector<32x128xbf16>
    %cst_154 = arith.constant dense<0.000000e+00> : vector<8x128xf32>
    %411 = tpu.matmul %407, %410, %cst_154 {dimension_numbers = #tpu.dot_dimension_numbers<[1], [0], [0], [1], [0, 0, 1, 1], [], []>} : vector<8x32xbf16>, vector<32x128xbf16>, vector<8x128xf32> -> vector<8x128xf32>
    %412 = arith.addf %401, %411 : vector<8x128xf32>
    %413 = math.tanh %412 : vector<8x128xf32>
    %414 = arith.negf %412 : vector<8x128xf32>
    %415 = math.exp %414 : vector<8x128xf32>
    %cst_155 = arith.constant 1.000000e+00 : f32
    %416 = vector.broadcast %cst_155 : f32 to vector<8x128xf32>
    %417 = arith.addf %416, %415 : vector<8x128xf32>
    %418 = arith.divf %416, %417 : vector<8x128xf32>
    %419 = arith.select %19, %413, %418 : vector<8x128xi1>, vector<8x128xf32>
    %420 = vector.extract_strided_slice %419 {offsets = [0, 0], sizes = [8, 32], strides = [1, 1]} : vector<8x128xf32> to vector<8x32xf32>
    %421 = vector.extract_strided_slice %419 {offsets = [0, 32], sizes = [8, 32], strides = [1, 1]} : vector<8x128xf32> to vector<8x32xf32>
    %422 = vector.extract_strided_slice %419 {offsets = [0, 64], sizes = [8, 32], strides = [1, 1]} : vector<8x128xf32> to vector<8x32xf32>
    %423 = vector.extract_strided_slice %419 {offsets = [0, 96], sizes = [8, 32], strides = [1, 1]} : vector<8x128xf32> to vector<8x32xf32>
    %424 = arith.mulf %421, %408 : vector<8x32xf32>
    %425 = arith.mulf %420, %422 : vector<8x32xf32>
    %426 = arith.addf %424, %425 : vector<8x32xf32>
    %427 = math.tanh %426 : vector<8x32xf32>
    %428 = arith.mulf %423, %427 : vector<8x32xf32>
    %429 = arith.truncf %428 : vector<8x32xf32> to vector<8x32xbf16>
    %c0_156 = arith.constant 0 : index
    %c0_157 = arith.constant 0 : index
    %430 = vector.load %arg17[%c0_156, %c0_157] : memref<8x128xbf16, #tpu.memory_space<vmem>>, vector<8x32xbf16>
    tpu.vector_store %arg17[%c0_156, %c0_157], %429 {strides = array<i32>} : memref<8x128xbf16, #tpu.memory_space<vmem>>, vector<8x32xbf16>,
    %c0_158 = arith.constant 0 : index
    %c0_159 = arith.constant 0 : index
    %431 = vector.load %arg17[%c0_158, %c0_159] : memref<8x128xbf16, #tpu.memory_space<vmem>>, vector<8x128xbf16>
    %c0_160 = arith.constant 0 : index
    %c0_161 = arith.constant 0 : index
    %432 = vector.load %arg20[%c0_160, %c0_161] : memref<128x256xbf16, #tpu.memory_space<vmem>>, vector<128x256xbf16>
    %cst_162 = arith.constant dense<0.000000e+00> : vector<8x256xf32>
    %433 = tpu.matmul %431, %432, %cst_162 {dimension_numbers = #tpu.dot_dimension_numbers<[1], [0], [0], [1], [0, 0, 1, 1], [], []>} : vector<8x128xbf16>, vector<128x256xbf16>, vector<8x256xf32> -> vector<8x256xf32>
    %434 = arith.addf %433, %404 : vector<8x256xf32>
    %435 = math.tanh %434 : vector<8x256xf32>
    %436 = arith.negf %434 : vector<8x256xf32>
    %437 = math.exp %436 : vector<8x256xf32>
    %cst_163 = arith.constant 1.000000e+00 : f32
    %438 = vector.broadcast %cst_163 : f32 to vector<8x256xf32>
    %439 = arith.addf %438, %437 : vector<8x256xf32>
    %440 = arith.divf %438, %439 : vector<8x256xf32>
    %441 = arith.select %13, %435, %440 : vector<8x256xi1>, vector<8x256xf32>
    %442 = vector.extract_strided_slice %441 {offsets = [0, 0], sizes = [8, 64], strides = [1, 1]} : vector<8x256xf32> to vector<8x64xf32>
    %443 = vector.extract_strided_slice %441 {offsets = [0, 64], sizes = [8, 64], strides = [1, 1]} : vector<8x256xf32> to vector<8x64xf32>
    %444 = vector.extract_strided_slice %441 {offsets = [0, 128], sizes = [8, 64], strides = [1, 1]} : vector<8x256xf32> to vector<8x64xf32>
    %445 = vector.extract_strided_slice %441 {offsets = [0, 192], sizes = [8, 64], strides = [1, 1]} : vector<8x256xf32> to vector<8x64xf32>
    %446 = arith.mulf %443, %409 : vector<8x64xf32>
    %447 = arith.mulf %442, %444 : vector<8x64xf32>
    %448 = arith.addf %446, %447 : vector<8x64xf32>
    %449 = math.tanh %448 : vector<8x64xf32>
    %450 = arith.mulf %445, %449 : vector<8x64xf32>
    %451 = arith.truncf %450 : vector<8x64xf32> to vector<8x64xbf16>
    %c0_164 = arith.constant 0 : index
    %c32_165 = arith.constant 32 : index
    %452 = vector.load %arg17[%c0_164, %c32_165] : memref<8x128xbf16, #tpu.memory_space<vmem>>, vector<8x64xbf16>
    tpu.vector_store %arg17[%c0_164, %c32_165], %451 {strides = array<i32>} : memref<8x128xbf16, #tpu.memory_space<vmem>>, vector<8x64xbf16>,
    %c0_166 = arith.constant 0 : index
    %c0_167 = arith.constant 0 : index
    %453 = vector.load %arg15[%c0_166, %c0_167] : memref<64x64xbf16, #tpu.memory_space<vmem>>, vector<8x64xbf16>
    tpu.vector_store %arg15[%c0_166, %c0_167], %451 {strides = array<i32>} : memref<64x64xbf16, #tpu.memory_space<vmem>>, vector<8x64xbf16>,
    %c0_168 = arith.constant 0 : index
    %c0_169 = arith.constant 0 : index
    %454 = vector.load %arg19[%c0_168, %c0_169] : memref<32x128xbf16, #tpu.memory_space<vmem>>, vector<32x128xbf16>
    %cst_170 = arith.constant dense<0.000000e+00> : vector<8x128xf32>
    %455 = tpu.matmul %429, %454, %cst_170 {dimension_numbers = #tpu.dot_dimension_numbers<[1], [0], [0], [1], [0, 0, 1, 1], [], []>} : vector<8x32xbf16>, vector<32x128xbf16>, vector<8x128xf32> -> vector<8x128xf32>
    %456 = arith.addf %401, %455 : vector<8x128xf32>
    %457 = math.tanh %456 : vector<8x128xf32>
    %458 = arith.negf %456 : vector<8x128xf32>
    %459 = math.exp %458 : vector<8x128xf32>
    %cst_171 = arith.constant 1.000000e+00 : f32
    %460 = vector.broadcast %cst_171 : f32 to vector<8x128xf32>
    %461 = arith.addf %460, %459 : vector<8x128xf32>
    %462 = arith.divf %460, %461 : vector<8x128xf32>
    %463 = arith.select %19, %457, %462 : vector<8x128xi1>, vector<8x128xf32>
    %464 = vector.extract_strided_slice %463 {offsets = [0, 0], sizes = [8, 32], strides = [1, 1]} : vector<8x128xf32> to vector<8x32xf32>
    %465 = vector.extract_strided_slice %463 {offsets = [0, 32], sizes = [8, 32], strides = [1, 1]} : vector<8x128xf32> to vector<8x32xf32>
    %466 = vector.extract_strided_slice %463 {offsets = [0, 64], sizes = [8, 32], strides = [1, 1]} : vector<8x128xf32> to vector<8x32xf32>
    %467 = vector.extract_strided_slice %463 {offsets = [0, 96], sizes = [8, 32], strides = [1, 1]} : vector<8x128xf32> to vector<8x32xf32>
    %468 = arith.mulf %465, %426 : vector<8x32xf32>
    %469 = arith.mulf %464, %466 : vector<8x32xf32>
    %470 = arith.addf %468, %469 : vector<8x32xf32>
    %471 = math.tanh %470 : vector<8x32xf32>
    %472 = arith.mulf %467, %471 : vector<8x32xf32>
    %473 = arith.truncf %472 : vector<8x32xf32> to vector<8x32xbf16>
    %c0_172 = arith.constant 0 : index
    %c0_173 = arith.constant 0 : index
    %474 = vector.load %arg17[%c0_172, %c0_173] : memref<8x128xbf16, #tpu.memory_space<vmem>>, vector<8x32xbf16>
    tpu.vector_store %arg17[%c0_172, %c0_173], %473 {strides = array<i32>} : memref<8x128xbf16, #tpu.memory_space<vmem>>, vector<8x32xbf16>,
    %c0_174 = arith.constant 0 : index
    %c0_175 = arith.constant 0 : index
    %475 = vector.load %arg17[%c0_174, %c0_175] : memref<8x128xbf16, #tpu.memory_space<vmem>>, vector<8x128xbf16>
    %c0_176 = arith.constant 0 : index
    %c0_177 = arith.constant 0 : index
    %476 = vector.load %arg20[%c0_176, %c0_177] : memref<128x256xbf16, #tpu.memory_space<vmem>>, vector<128x256xbf16>
    %cst_178 = arith.constant dense<0.000000e+00> : vector<8x256xf32>
    %477 = tpu.matmul %475, %476, %cst_178 {dimension_numbers = #tpu.dot_dimension_numbers<[1], [0], [0], [1], [0, 0, 1, 1], [], []>} : vector<8x128xbf16>, vector<128x256xbf16>, vector<8x256xf32> -> vector<8x256xf32>
    %478 = arith.addf %477, %404 : vector<8x256xf32>
    %479 = math.tanh %478 : vector<8x256xf32>
    %480 = arith.negf %478 : vector<8x256xf32>
    %481 = math.exp %480 : vector<8x256xf32>
    %cst_179 = arith.constant 1.000000e+00 : f32
    %482 = vector.broadcast %cst_179 : f32 to vector<8x256xf32>
    %483 = arith.addf %482, %481 : vector<8x256xf32>
    %484 = arith.divf %482, %483 : vector<8x256xf32>
    %485 = arith.select %13, %479, %484 : vector<8x256xi1>, vector<8x256xf32>
    %486 = vector.extract_strided_slice %485 {offsets = [0, 0], sizes = [8, 64], strides = [1, 1]} : vector<8x256xf32> to vector<8x64xf32>
    %487 = vector.extract_strided_slice %485 {offsets = [0, 64], sizes = [8, 64], strides = [1, 1]} : vector<8x256xf32> to vector<8x64xf32>
    %488 = vector.extract_strided_slice %485 {offsets = [0, 128], sizes = [8, 64], strides = [1, 1]} : vector<8x256xf32> to vector<8x64xf32>
    %489 = vector.extract_strided_slice %485 {offsets = [0, 192], sizes = [8, 64], strides = [1, 1]} : vector<8x256xf32> to vector<8x64xf32>
    %490 = arith.mulf %487, %448 : vector<8x64xf32>
    %491 = arith.mulf %486, %488 : vector<8x64xf32>
    %492 = arith.addf %490, %491 : vector<8x64xf32>
    %493 = math.tanh %492 : vector<8x64xf32>
    %494 = arith.mulf %489, %493 : vector<8x64xf32>
    %495 = arith.truncf %494 : vector<8x64xf32> to vector<8x64xbf16>
    %c0_180 = arith.constant 0 : index
    %c32_181 = arith.constant 32 : index
    %496 = vector.load %arg17[%c0_180, %c32_181] : memref<8x128xbf16, #tpu.memory_space<vmem>>, vector<8x64xbf16>
    tpu.vector_store %arg17[%c0_180, %c32_181], %495 {strides = array<i32>} : memref<8x128xbf16, #tpu.memory_space<vmem>>, vector<8x64xbf16>,
    %c8_182 = arith.constant 8 : index
    %c0_183 = arith.constant 0 : index
    %497 = vector.load %arg15[%c8_182, %c0_183] : memref<64x64xbf16, #tpu.memory_space<vmem>>, vector<8x64xbf16>
    tpu.vector_store %arg15[%c8_182, %c0_183], %495 {strides = array<i32>} : memref<64x64xbf16, #tpu.memory_space<vmem>>, vector<8x64xbf16>,
    %c0_184 = arith.constant 0 : index
    %c0_185 = arith.constant 0 : index
    %498 = vector.load %arg19[%c0_184, %c0_185] : memref<32x128xbf16, #tpu.memory_space<vmem>>, vector<32x128xbf16>
    %cst_186 = arith.constant dense<0.000000e+00> : vector<8x128xf32>
    %499 = tpu.matmul %473, %498, %cst_186 {dimension_numbers = #tpu.dot_dimension_numbers<[1], [0], [0], [1], [0, 0, 1, 1], [], []>} : vector<8x32xbf16>, vector<32x128xbf16>, vector<8x128xf32> -> vector<8x128xf32>
    %500 = arith.addf %401, %499 : vector<8x128xf32>
    %501 = math.tanh %500 : vector<8x128xf32>
    %502 = arith.negf %500 : vector<8x128xf32>
    %503 = math.exp %502 : vector<8x128xf32>
    %cst_187 = arith.constant 1.000000e+00 : f32
    %504 = vector.broadcast %cst_187 : f32 to vector<8x128xf32>
    %505 = arith.addf %504, %503 : vector<8x128xf32>
    %506 = arith.divf %504, %505 : vector<8x128xf32>
    %507 = arith.select %19, %501, %506 : vector<8x128xi1>, vector<8x128xf32>
    %508 = vector.extract_strided_slice %507 {offsets = [0, 0], sizes = [8, 32], strides = [1, 1]} : vector<8x128xf32> to vector<8x32xf32>
    %509 = vector.extract_strided_slice %507 {offsets = [0, 32], sizes = [8, 32], strides = [1, 1]} : vector<8x128xf32> to vector<8x32xf32>
    %510 = vector.extract_strided_slice %507 {offsets = [0, 64], sizes = [8, 32], strides = [1, 1]} : vector<8x128xf32> to vector<8x32xf32>
    %511 = vector.extract_strided_slice %507 {offsets = [0, 96], sizes = [8, 32], strides = [1, 1]} : vector<8x128xf32> to vector<8x32xf32>
    %512 = arith.mulf %509, %470 : vector<8x32xf32>
    %513 = arith.mulf %508, %510 : vector<8x32xf32>
    %514 = arith.addf %512, %513 : vector<8x32xf32>
    %515 = math.tanh %514 : vector<8x32xf32>
    %516 = arith.mulf %511, %515 : vector<8x32xf32>
    %517 = arith.truncf %516 : vector<8x32xf32> to vector<8x32xbf16>
    %c0_188 = arith.constant 0 : index
    %c0_189 = arith.constant 0 : index
    %518 = vector.load %arg17[%c0_188, %c0_189] : memref<8x128xbf16, #tpu.memory_space<vmem>>, vector<8x32xbf16>
    tpu.vector_store %arg17[%c0_188, %c0_189], %517 {strides = array<i32>} : memref<8x128xbf16, #tpu.memory_space<vmem>>, vector<8x32xbf16>,
    %c0_190 = arith.constant 0 : index
    %c0_191 = arith.constant 0 : index
    %519 = vector.load %arg17[%c0_190, %c0_191] : memref<8x128xbf16, #tpu.memory_space<vmem>>, vector<8x128xbf16>
    %c0_192 = arith.constant 0 : index
    %c0_193 = arith.constant 0 : index
    %520 = vector.load %arg20[%c0_192, %c0_193] : memref<128x256xbf16, #tpu.memory_space<vmem>>, vector<128x256xbf16>
    %cst_194 = arith.constant dense<0.000000e+00> : vector<8x256xf32>
    %521 = tpu.matmul %519, %520, %cst_194 {dimension_numbers = #tpu.dot_dimension_numbers<[1], [0], [0], [1], [0, 0, 1, 1], [], []>} : vector<8x128xbf16>, vector<128x256xbf16>, vector<8x256xf32> -> vector<8x256xf32>
    %522 = arith.addf %521, %404 : vector<8x256xf32>
    %523 = math.tanh %522 : vector<8x256xf32>
    %524 = arith.negf %522 : vector<8x256xf32>
    %525 = math.exp %524 : vector<8x256xf32>
    %cst_195 = arith.constant 1.000000e+00 : f32
    %526 = vector.broadcast %cst_195 : f32 to vector<8x256xf32>
    %527 = arith.addf %526, %525 : vector<8x256xf32>
    %528 = arith.divf %526, %527 : vector<8x256xf32>
    %529 = arith.select %13, %523, %528 : vector<8x256xi1>, vector<8x256xf32>
    %530 = vector.extract_strided_slice %529 {offsets = [0, 0], sizes = [8, 64], strides = [1, 1]} : vector<8x256xf32> to vector<8x64xf32>
    %531 = vector.extract_strided_slice %529 {offsets = [0, 64], sizes = [8, 64], strides = [1, 1]} : vector<8x256xf32> to vector<8x64xf32>
    %532 = vector.extract_strided_slice %529 {offsets = [0, 128], sizes = [8, 64], strides = [1, 1]} : vector<8x256xf32> to vector<8x64xf32>
    %533 = vector.extract_strided_slice %529 {offsets = [0, 192], sizes = [8, 64], strides = [1, 1]} : vector<8x256xf32> to vector<8x64xf32>
    %534 = arith.mulf %531, %492 : vector<8x64xf32>
    %535 = arith.mulf %530, %532 : vector<8x64xf32>
    %536 = arith.addf %534, %535 : vector<8x64xf32>
    %537 = math.tanh %536 : vector<8x64xf32>
    %538 = arith.mulf %533, %537 : vector<8x64xf32>
    %539 = arith.truncf %538 : vector<8x64xf32> to vector<8x64xbf16>
    %c0_196 = arith.constant 0 : index
    %c32_197 = arith.constant 32 : index
    %540 = vector.load %arg17[%c0_196, %c32_197] : memref<8x128xbf16, #tpu.memory_space<vmem>>, vector<8x64xbf16>
    tpu.vector_store %arg17[%c0_196, %c32_197], %539 {strides = array<i32>} : memref<8x128xbf16, #tpu.memory_space<vmem>>, vector<8x64xbf16>,
    %c16_198 = arith.constant 16 : index
    %c0_199 = arith.constant 0 : index
    %541 = vector.load %arg15[%c16_198, %c0_199] : memref<64x64xbf16, #tpu.memory_space<vmem>>, vector<8x64xbf16>
    tpu.vector_store %arg15[%c16_198, %c0_199], %539 {strides = array<i32>} : memref<64x64xbf16, #tpu.memory_space<vmem>>, vector<8x64xbf16>,
    %c0_200 = arith.constant 0 : index
    %c0_201 = arith.constant 0 : index
    %542 = vector.load %arg19[%c0_200, %c0_201] : memref<32x128xbf16, #tpu.memory_space<vmem>>, vector<32x128xbf16>
    %cst_202 = arith.constant dense<0.000000e+00> : vector<8x128xf32>
    %543 = tpu.matmul %517, %542, %cst_202 {dimension_numbers = #tpu.dot_dimension_numbers<[1], [0], [0], [1], [0, 0, 1, 1], [], []>} : vector<8x32xbf16>, vector<32x128xbf16>, vector<8x128xf32> -> vector<8x128xf32>
    %544 = arith.addf %401, %543 : vector<8x128xf32>
    %545 = math.tanh %544 : vector<8x128xf32>
    %546 = arith.negf %544 : vector<8x128xf32>
    %547 = math.exp %546 : vector<8x128xf32>
    %cst_203 = arith.constant 1.000000e+00 : f32
    %548 = vector.broadcast %cst_203 : f32 to vector<8x128xf32>
    %549 = arith.addf %548, %547 : vector<8x128xf32>
    %550 = arith.divf %548, %549 : vector<8x128xf32>
    %551 = arith.select %19, %545, %550 : vector<8x128xi1>, vector<8x128xf32>
    %552 = vector.extract_strided_slice %551 {offsets = [0, 0], sizes = [8, 32], strides = [1, 1]} : vector<8x128xf32> to vector<8x32xf32>
    %553 = vector.extract_strided_slice %551 {offsets = [0, 32], sizes = [8, 32], strides = [1, 1]} : vector<8x128xf32> to vector<8x32xf32>
    %554 = vector.extract_strided_slice %551 {offsets = [0, 64], sizes = [8, 32], strides = [1, 1]} : vector<8x128xf32> to vector<8x32xf32>
    %555 = vector.extract_strided_slice %551 {offsets = [0, 96], sizes = [8, 32], strides = [1, 1]} : vector<8x128xf32> to vector<8x32xf32>
    %556 = arith.mulf %553, %514 : vector<8x32xf32>
    %557 = arith.mulf %552, %554 : vector<8x32xf32>
    %558 = arith.addf %556, %557 : vector<8x32xf32>
    %559 = math.tanh %558 : vector<8x32xf32>
    %560 = arith.mulf %555, %559 : vector<8x32xf32>
    %561 = arith.truncf %560 : vector<8x32xf32> to vector<8x32xbf16>
    %c0_204 = arith.constant 0 : index
    %c0_205 = arith.constant 0 : index
    %562 = vector.load %arg17[%c0_204, %c0_205] : memref<8x128xbf16, #tpu.memory_space<vmem>>, vector<8x32xbf16>
    tpu.vector_store %arg17[%c0_204, %c0_205], %561 {strides = array<i32>} : memref<8x128xbf16, #tpu.memory_space<vmem>>, vector<8x32xbf16>,
    %c0_206 = arith.constant 0 : index
    %c0_207 = arith.constant 0 : index
    %563 = vector.load %arg17[%c0_206, %c0_207] : memref<8x128xbf16, #tpu.memory_space<vmem>>, vector<8x128xbf16>
    %c0_208 = arith.constant 0 : index
    %c0_209 = arith.constant 0 : index
    %564 = vector.load %arg20[%c0_208, %c0_209] : memref<128x256xbf16, #tpu.memory_space<vmem>>, vector<128x256xbf16>
    %cst_210 = arith.constant dense<0.000000e+00> : vector<8x256xf32>
    %565 = tpu.matmul %563, %564, %cst_210 {dimension_numbers = #tpu.dot_dimension_numbers<[1], [0], [0], [1], [0, 0, 1, 1], [], []>} : vector<8x128xbf16>, vector<128x256xbf16>, vector<8x256xf32> -> vector<8x256xf32>
    %566 = arith.addf %565, %404 : vector<8x256xf32>
    %567 = math.tanh %566 : vector<8x256xf32>
    %568 = arith.negf %566 : vector<8x256xf32>
    %569 = math.exp %568 : vector<8x256xf32>
    %cst_211 = arith.constant 1.000000e+00 : f32
    %570 = vector.broadcast %cst_211 : f32 to vector<8x256xf32>
    %571 = arith.addf %570, %569 : vector<8x256xf32>
    %572 = arith.divf %570, %571 : vector<8x256xf32>
    %573 = arith.select %13, %567, %572 : vector<8x256xi1>, vector<8x256xf32>
    %574 = vector.extract_strided_slice %573 {offsets = [0, 0], sizes = [8, 64], strides = [1, 1]} : vector<8x256xf32> to vector<8x64xf32>
    %575 = vector.extract_strided_slice %573 {offsets = [0, 64], sizes = [8, 64], strides = [1, 1]} : vector<8x256xf32> to vector<8x64xf32>
    %576 = vector.extract_strided_slice %573 {offsets = [0, 128], sizes = [8, 64], strides = [1, 1]} : vector<8x256xf32> to vector<8x64xf32>
    %577 = vector.extract_strided_slice %573 {offsets = [0, 192], sizes = [8, 64], strides = [1, 1]} : vector<8x256xf32> to vector<8x64xf32>
    %578 = arith.mulf %575, %536 : vector<8x64xf32>
    %579 = arith.mulf %574, %576 : vector<8x64xf32>
    %580 = arith.addf %578, %579 : vector<8x64xf32>
    %581 = math.tanh %580 : vector<8x64xf32>
    %582 = arith.mulf %577, %581 : vector<8x64xf32>
    %583 = arith.truncf %582 : vector<8x64xf32> to vector<8x64xbf16>
    %c0_212 = arith.constant 0 : index
    %c32_213 = arith.constant 32 : index
    %584 = vector.load %arg17[%c0_212, %c32_213] : memref<8x128xbf16, #tpu.memory_space<vmem>>, vector<8x64xbf16>
    tpu.vector_store %arg17[%c0_212, %c32_213], %583 {strides = array<i32>} : memref<8x128xbf16, #tpu.memory_space<vmem>>, vector<8x64xbf16>,
    %c24_214 = arith.constant 24 : index
    %c0_215 = arith.constant 0 : index
    %585 = vector.load %arg15[%c24_214, %c0_215] : memref<64x64xbf16, #tpu.memory_space<vmem>>, vector<8x64xbf16>
    tpu.vector_store %arg15[%c24_214, %c0_215], %583 {strides = array<i32>} : memref<64x64xbf16, #tpu.memory_space<vmem>>, vector<8x64xbf16>,
    %c0_216 = arith.constant 0 : index
    %c0_217 = arith.constant 0 : index
    %586 = vector.load %arg19[%c0_216, %c0_217] : memref<32x128xbf16, #tpu.memory_space<vmem>>, vector<32x128xbf16>
    %cst_218 = arith.constant dense<0.000000e+00> : vector<8x128xf32>
    %587 = tpu.matmul %561, %586, %cst_218 {dimension_numbers = #tpu.dot_dimension_numbers<[1], [0], [0], [1], [0, 0, 1, 1], [], []>} : vector<8x32xbf16>, vector<32x128xbf16>, vector<8x128xf32> -> vector<8x128xf32>
    %588 = arith.addf %401, %587 : vector<8x128xf32>
    %589 = math.tanh %588 : vector<8x128xf32>
    %590 = arith.negf %588 : vector<8x128xf32>
    %591 = math.exp %590 : vector<8x128xf32>
    %cst_219 = arith.constant 1.000000e+00 : f32
    %592 = vector.broadcast %cst_219 : f32 to vector<8x128xf32>
    %593 = arith.addf %592, %591 : vector<8x128xf32>
    %594 = arith.divf %592, %593 : vector<8x128xf32>
    %595 = arith.select %19, %589, %594 : vector<8x128xi1>, vector<8x128xf32>
    %596 = vector.extract_strided_slice %595 {offsets = [0, 0], sizes = [8, 32], strides = [1, 1]} : vector<8x128xf32> to vector<8x32xf32>
    %597 = vector.extract_strided_slice %595 {offsets = [0, 32], sizes = [8, 32], strides = [1, 1]} : vector<8x128xf32> to vector<8x32xf32>
    %598 = vector.extract_strided_slice %595 {offsets = [0, 64], sizes = [8, 32], strides = [1, 1]} : vector<8x128xf32> to vector<8x32xf32>
    %599 = vector.extract_strided_slice %595 {offsets = [0, 96], sizes = [8, 32], strides = [1, 1]} : vector<8x128xf32> to vector<8x32xf32>
    %600 = arith.mulf %597, %558 : vector<8x32xf32>
    %601 = arith.mulf %596, %598 : vector<8x32xf32>
    %602 = arith.addf %600, %601 : vector<8x32xf32>
    %603 = math.tanh %602 : vector<8x32xf32>
    %604 = arith.mulf %599, %603 : vector<8x32xf32>
    %605 = arith.truncf %604 : vector<8x32xf32> to vector<8x32xbf16>
    %c0_220 = arith.constant 0 : index
    %c0_221 = arith.constant 0 : index
    %606 = vector.load %arg17[%c0_220, %c0_221] : memref<8x128xbf16, #tpu.memory_space<vmem>>, vector<8x32xbf16>
    tpu.vector_store %arg17[%c0_220, %c0_221], %605 {strides = array<i32>} : memref<8x128xbf16, #tpu.memory_space<vmem>>, vector<8x32xbf16>,
    %c0_222 = arith.constant 0 : index
    %c0_223 = arith.constant 0 : index
    %607 = vector.load %arg17[%c0_222, %c0_223] : memref<8x128xbf16, #tpu.memory_space<vmem>>, vector<8x128xbf16>
    %c0_224 = arith.constant 0 : index
    %c0_225 = arith.constant 0 : index
    %608 = vector.load %arg20[%c0_224, %c0_225] : memref<128x256xbf16, #tpu.memory_space<vmem>>, vector<128x256xbf16>
    %cst_226 = arith.constant dense<0.000000e+00> : vector<8x256xf32>
    %609 = tpu.matmul %607, %608, %cst_226 {dimension_numbers = #tpu.dot_dimension_numbers<[1], [0], [0], [1], [0, 0, 1, 1], [], []>} : vector<8x128xbf16>, vector<128x256xbf16>, vector<8x256xf32> -> vector<8x256xf32>
    %610 = arith.addf %609, %404 : vector<8x256xf32>
    %611 = math.tanh %610 : vector<8x256xf32>
    %612 = arith.negf %610 : vector<8x256xf32>
    %613 = math.exp %612 : vector<8x256xf32>
    %cst_227 = arith.constant 1.000000e+00 : f32
    %614 = vector.broadcast %cst_227 : f32 to vector<8x256xf32>
    %615 = arith.addf %614, %613 : vector<8x256xf32>
    %616 = arith.divf %614, %615 : vector<8x256xf32>
    %617 = arith.select %13, %611, %616 : vector<8x256xi1>, vector<8x256xf32>
    %618 = vector.extract_strided_slice %617 {offsets = [0, 0], sizes = [8, 64], strides = [1, 1]} : vector<8x256xf32> to vector<8x64xf32>
    %619 = vector.extract_strided_slice %617 {offsets = [0, 64], sizes = [8, 64], strides = [1, 1]} : vector<8x256xf32> to vector<8x64xf32>
    %620 = vector.extract_strided_slice %617 {offsets = [0, 128], sizes = [8, 64], strides = [1, 1]} : vector<8x256xf32> to vector<8x64xf32>
    %621 = vector.extract_strided_slice %617 {offsets = [0, 192], sizes = [8, 64], strides = [1, 1]} : vector<8x256xf32> to vector<8x64xf32>
    %622 = arith.mulf %619, %580 : vector<8x64xf32>
    %623 = arith.mulf %618, %620 : vector<8x64xf32>
    %624 = arith.addf %622, %623 : vector<8x64xf32>
    %625 = math.tanh %624 : vector<8x64xf32>
    %626 = arith.mulf %621, %625 : vector<8x64xf32>
    %627 = arith.truncf %626 : vector<8x64xf32> to vector<8x64xbf16>
    %c0_228 = arith.constant 0 : index
    %c32_229 = arith.constant 32 : index
    %628 = vector.load %arg17[%c0_228, %c32_229] : memref<8x128xbf16, #tpu.memory_space<vmem>>, vector<8x64xbf16>
    tpu.vector_store %arg17[%c0_228, %c32_229], %627 {strides = array<i32>} : memref<8x128xbf16, #tpu.memory_space<vmem>>, vector<8x64xbf16>,
    %c32_230 = arith.constant 32 : index
    %c0_231 = arith.constant 0 : index
    %629 = vector.load %arg15[%c32_230, %c0_231] : memref<64x64xbf16, #tpu.memory_space<vmem>>, vector<8x64xbf16>
    tpu.vector_store %arg15[%c32_230, %c0_231], %627 {strides = array<i32>} : memref<64x64xbf16, #tpu.memory_space<vmem>>, vector<8x64xbf16>,
    %c0_232 = arith.constant 0 : index
    %c0_233 = arith.constant 0 : index
    %630 = vector.load %arg19[%c0_232, %c0_233] : memref<32x128xbf16, #tpu.memory_space<vmem>>, vector<32x128xbf16>
    %cst_234 = arith.constant dense<0.000000e+00> : vector<8x128xf32>
    %631 = tpu.matmul %605, %630, %cst_234 {dimension_numbers = #tpu.dot_dimension_numbers<[1], [0], [0], [1], [0, 0, 1, 1], [], []>} : vector<8x32xbf16>, vector<32x128xbf16>, vector<8x128xf32> -> vector<8x128xf32>
    %632 = arith.addf %401, %631 : vector<8x128xf32>
    %633 = math.tanh %632 : vector<8x128xf32>
    %634 = arith.negf %632 : vector<8x128xf32>
    %635 = math.exp %634 : vector<8x128xf32>
    %cst_235 = arith.constant 1.000000e+00 : f32
    %636 = vector.broadcast %cst_235 : f32 to vector<8x128xf32>
    %637 = arith.addf %636, %635 : vector<8x128xf32>
    %638 = arith.divf %636, %637 : vector<8x128xf32>
    %639 = arith.select %19, %633, %638 : vector<8x128xi1>, vector<8x128xf32>
    %640 = vector.extract_strided_slice %639 {offsets = [0, 0], sizes = [8, 32], strides = [1, 1]} : vector<8x128xf32> to vector<8x32xf32>
    %641 = vector.extract_strided_slice %639 {offsets = [0, 32], sizes = [8, 32], strides = [1, 1]} : vector<8x128xf32> to vector<8x32xf32>
    %642 = vector.extract_strided_slice %639 {offsets = [0, 64], sizes = [8, 32], strides = [1, 1]} : vector<8x128xf32> to vector<8x32xf32>
    %643 = vector.extract_strided_slice %639 {offsets = [0, 96], sizes = [8, 32], strides = [1, 1]} : vector<8x128xf32> to vector<8x32xf32>
    %644 = arith.mulf %641, %602 : vector<8x32xf32>
    %645 = arith.mulf %640, %642 : vector<8x32xf32>
    %646 = arith.addf %644, %645 : vector<8x32xf32>
    %647 = math.tanh %646 : vector<8x32xf32>
    %648 = arith.mulf %643, %647 : vector<8x32xf32>
    %649 = arith.truncf %648 : vector<8x32xf32> to vector<8x32xbf16>
    %c0_236 = arith.constant 0 : index
    %c0_237 = arith.constant 0 : index
    %650 = vector.load %arg17[%c0_236, %c0_237] : memref<8x128xbf16, #tpu.memory_space<vmem>>, vector<8x32xbf16>
    tpu.vector_store %arg17[%c0_236, %c0_237], %649 {strides = array<i32>} : memref<8x128xbf16, #tpu.memory_space<vmem>>, vector<8x32xbf16>,
    %c0_238 = arith.constant 0 : index
    %c0_239 = arith.constant 0 : index
    %651 = vector.load %arg17[%c0_238, %c0_239] : memref<8x128xbf16, #tpu.memory_space<vmem>>, vector<8x128xbf16>
    %c0_240 = arith.constant 0 : index
    %c0_241 = arith.constant 0 : index
    %652 = vector.load %arg20[%c0_240, %c0_241] : memref<128x256xbf16, #tpu.memory_space<vmem>>, vector<128x256xbf16>
    %cst_242 = arith.constant dense<0.000000e+00> : vector<8x256xf32>
    %653 = tpu.matmul %651, %652, %cst_242 {dimension_numbers = #tpu.dot_dimension_numbers<[1], [0], [0], [1], [0, 0, 1, 1], [], []>} : vector<8x128xbf16>, vector<128x256xbf16>, vector<8x256xf32> -> vector<8x256xf32>
    %654 = arith.addf %653, %404 : vector<8x256xf32>
    %655 = math.tanh %654 : vector<8x256xf32>
    %656 = arith.negf %654 : vector<8x256xf32>
    %657 = math.exp %656 : vector<8x256xf32>
    %cst_243 = arith.constant 1.000000e+00 : f32
    %658 = vector.broadcast %cst_243 : f32 to vector<8x256xf32>
    %659 = arith.addf %658, %657 : vector<8x256xf32>
    %660 = arith.divf %658, %659 : vector<8x256xf32>
    %661 = arith.select %13, %655, %660 : vector<8x256xi1>, vector<8x256xf32>
    %662 = vector.extract_strided_slice %661 {offsets = [0, 0], sizes = [8, 64], strides = [1, 1]} : vector<8x256xf32> to vector<8x64xf32>
    %663 = vector.extract_strided_slice %661 {offsets = [0, 64], sizes = [8, 64], strides = [1, 1]} : vector<8x256xf32> to vector<8x64xf32>
    %664 = vector.extract_strided_slice %661 {offsets = [0, 128], sizes = [8, 64], strides = [1, 1]} : vector<8x256xf32> to vector<8x64xf32>
    %665 = vector.extract_strided_slice %661 {offsets = [0, 192], sizes = [8, 64], strides = [1, 1]} : vector<8x256xf32> to vector<8x64xf32>
    %666 = arith.mulf %663, %624 : vector<8x64xf32>
    %667 = arith.mulf %662, %664 : vector<8x64xf32>
    %668 = arith.addf %666, %667 : vector<8x64xf32>
    %669 = math.tanh %668 : vector<8x64xf32>
    %670 = arith.mulf %665, %669 : vector<8x64xf32>
    %671 = arith.truncf %670 : vector<8x64xf32> to vector<8x64xbf16>
    %c0_244 = arith.constant 0 : index
    %c32_245 = arith.constant 32 : index
    %672 = vector.load %arg17[%c0_244, %c32_245] : memref<8x128xbf16, #tpu.memory_space<vmem>>, vector<8x64xbf16>
    tpu.vector_store %arg17[%c0_244, %c32_245], %671 {strides = array<i32>} : memref<8x128xbf16, #tpu.memory_space<vmem>>, vector<8x64xbf16>,
    %c40_246 = arith.constant 40 : index
    %c0_247 = arith.constant 0 : index
    %673 = vector.load %arg15[%c40_246, %c0_247] : memref<64x64xbf16, #tpu.memory_space<vmem>>, vector<8x64xbf16>
    tpu.vector_store %arg15[%c40_246, %c0_247], %671 {strides = array<i32>} : memref<64x64xbf16, #tpu.memory_space<vmem>>, vector<8x64xbf16>,
    %c0_248 = arith.constant 0 : index
    %c0_249 = arith.constant 0 : index
    %674 = vector.load %arg19[%c0_248, %c0_249] : memref<32x128xbf16, #tpu.memory_space<vmem>>, vector<32x128xbf16>
    %cst_250 = arith.constant dense<0.000000e+00> : vector<8x128xf32>
    %675 = tpu.matmul %649, %674, %cst_250 {dimension_numbers = #tpu.dot_dimension_numbers<[1], [0], [0], [1], [0, 0, 1, 1], [], []>} : vector<8x32xbf16>, vector<32x128xbf16>, vector<8x128xf32> -> vector<8x128xf32>
    %676 = arith.addf %401, %675 : vector<8x128xf32>
    %677 = math.tanh %676 : vector<8x128xf32>
    %678 = arith.negf %676 : vector<8x128xf32>
    %679 = math.exp %678 : vector<8x128xf32>
    %cst_251 = arith.constant 1.000000e+00 : f32
    %680 = vector.broadcast %cst_251 : f32 to vector<8x128xf32>
    %681 = arith.addf %680, %679 : vector<8x128xf32>
    %682 = arith.divf %680, %681 : vector<8x128xf32>
    %683 = arith.select %19, %677, %682 : vector<8x128xi1>, vector<8x128xf32>
    %684 = vector.extract_strided_slice %683 {offsets = [0, 0], sizes = [8, 32], strides = [1, 1]} : vector<8x128xf32> to vector<8x32xf32>
    %685 = vector.extract_strided_slice %683 {offsets = [0, 32], sizes = [8, 32], strides = [1, 1]} : vector<8x128xf32> to vector<8x32xf32>
    %686 = vector.extract_strided_slice %683 {offsets = [0, 64], sizes = [8, 32], strides = [1, 1]} : vector<8x128xf32> to vector<8x32xf32>
    %687 = vector.extract_strided_slice %683 {offsets = [0, 96], sizes = [8, 32], strides = [1, 1]} : vector<8x128xf32> to vector<8x32xf32>
    %688 = arith.mulf %685, %646 : vector<8x32xf32>
    %689 = arith.mulf %684, %686 : vector<8x32xf32>
    %690 = arith.addf %688, %689 : vector<8x32xf32>
    %691 = math.tanh %690 : vector<8x32xf32>
    %692 = arith.mulf %687, %691 : vector<8x32xf32>
    %693 = arith.truncf %692 : vector<8x32xf32> to vector<8x32xbf16>
    %c0_252 = arith.constant 0 : index
    %c0_253 = arith.constant 0 : index
    %694 = vector.load %arg17[%c0_252, %c0_253] : memref<8x128xbf16, #tpu.memory_space<vmem>>, vector<8x32xbf16>
    tpu.vector_store %arg17[%c0_252, %c0_253], %693 {strides = array<i32>} : memref<8x128xbf16, #tpu.memory_space<vmem>>, vector<8x32xbf16>,
    %c0_254 = arith.constant 0 : index
    %c0_255 = arith.constant 0 : index
    %695 = vector.load %arg17[%c0_254, %c0_255] : memref<8x128xbf16, #tpu.memory_space<vmem>>, vector<8x128xbf16>
    %c0_256 = arith.constant 0 : index
    %c0_257 = arith.constant 0 : index
    %696 = vector.load %arg20[%c0_256, %c0_257] : memref<128x256xbf16, #tpu.memory_space<vmem>>, vector<128x256xbf16>
    %cst_258 = arith.constant dense<0.000000e+00> : vector<8x256xf32>
    %697 = tpu.matmul %695, %696, %cst_258 {dimension_numbers = #tpu.dot_dimension_numbers<[1], [0], [0], [1], [0, 0, 1, 1], [], []>} : vector<8x128xbf16>, vector<128x256xbf16>, vector<8x256xf32> -> vector<8x256xf32>
    %698 = arith.addf %697, %404 : vector<8x256xf32>
    %699 = math.tanh %698 : vector<8x256xf32>
    %700 = arith.negf %698 : vector<8x256xf32>
    %701 = math.exp %700 : vector<8x256xf32>
    %cst_259 = arith.constant 1.000000e+00 : f32
    %702 = vector.broadcast %cst_259 : f32 to vector<8x256xf32>
    %703 = arith.addf %702, %701 : vector<8x256xf32>
    %704 = arith.divf %702, %703 : vector<8x256xf32>
    %705 = arith.select %13, %699, %704 : vector<8x256xi1>, vector<8x256xf32>
    %706 = vector.extract_strided_slice %705 {offsets = [0, 0], sizes = [8, 64], strides = [1, 1]} : vector<8x256xf32> to vector<8x64xf32>
    %707 = vector.extract_strided_slice %705 {offsets = [0, 64], sizes = [8, 64], strides = [1, 1]} : vector<8x256xf32> to vector<8x64xf32>
    %708 = vector.extract_strided_slice %705 {offsets = [0, 128], sizes = [8, 64], strides = [1, 1]} : vector<8x256xf32> to vector<8x64xf32>
    %709 = vector.extract_strided_slice %705 {offsets = [0, 192], sizes = [8, 64], strides = [1, 1]} : vector<8x256xf32> to vector<8x64xf32>
    %710 = arith.mulf %707, %668 : vector<8x64xf32>
    %711 = arith.mulf %706, %708 : vector<8x64xf32>
    %712 = arith.addf %710, %711 : vector<8x64xf32>
    %713 = math.tanh %712 : vector<8x64xf32>
    %714 = arith.mulf %709, %713 : vector<8x64xf32>
    %715 = arith.truncf %714 : vector<8x64xf32> to vector<8x64xbf16>
    %c0_260 = arith.constant 0 : index
    %c32_261 = arith.constant 32 : index
    %716 = vector.load %arg17[%c0_260, %c32_261] : memref<8x128xbf16, #tpu.memory_space<vmem>>, vector<8x64xbf16>
    tpu.vector_store %arg17[%c0_260, %c32_261], %715 {strides = array<i32>} : memref<8x128xbf16, #tpu.memory_space<vmem>>, vector<8x64xbf16>,
    %c48_262 = arith.constant 48 : index
    %c0_263 = arith.constant 0 : index
    %717 = vector.load %arg15[%c48_262, %c0_263] : memref<64x64xbf16, #tpu.memory_space<vmem>>, vector<8x64xbf16>
    tpu.vector_store %arg15[%c48_262, %c0_263], %715 {strides = array<i32>} : memref<64x64xbf16, #tpu.memory_space<vmem>>, vector<8x64xbf16>,
    %c0_264 = arith.constant 0 : index
    %c0_265 = arith.constant 0 : index
    %718 = vector.load %arg19[%c0_264, %c0_265] : memref<32x128xbf16, #tpu.memory_space<vmem>>, vector<32x128xbf16>
    %cst_266 = arith.constant dense<0.000000e+00> : vector<8x128xf32>
    %719 = tpu.matmul %693, %718, %cst_266 {dimension_numbers = #tpu.dot_dimension_numbers<[1], [0], [0], [1], [0, 0, 1, 1], [], []>} : vector<8x32xbf16>, vector<32x128xbf16>, vector<8x128xf32> -> vector<8x128xf32>
    %720 = arith.addf %401, %719 : vector<8x128xf32>
    %721 = math.tanh %720 : vector<8x128xf32>
    %722 = arith.negf %720 : vector<8x128xf32>
    %723 = math.exp %722 : vector<8x128xf32>
    %cst_267 = arith.constant 1.000000e+00 : f32
    %724 = vector.broadcast %cst_267 : f32 to vector<8x128xf32>
    %725 = arith.addf %724, %723 : vector<8x128xf32>
    %726 = arith.divf %724, %725 : vector<8x128xf32>
    %727 = arith.select %19, %721, %726 : vector<8x128xi1>, vector<8x128xf32>
    %728 = vector.extract_strided_slice %727 {offsets = [0, 0], sizes = [8, 32], strides = [1, 1]} : vector<8x128xf32> to vector<8x32xf32>
    %729 = vector.extract_strided_slice %727 {offsets = [0, 32], sizes = [8, 32], strides = [1, 1]} : vector<8x128xf32> to vector<8x32xf32>
    %730 = vector.extract_strided_slice %727 {offsets = [0, 64], sizes = [8, 32], strides = [1, 1]} : vector<8x128xf32> to vector<8x32xf32>
    %731 = vector.extract_strided_slice %727 {offsets = [0, 96], sizes = [8, 32], strides = [1, 1]} : vector<8x128xf32> to vector<8x32xf32>
    %732 = arith.mulf %729, %690 : vector<8x32xf32>
    %733 = arith.mulf %728, %730 : vector<8x32xf32>
    %734 = arith.addf %732, %733 : vector<8x32xf32>
    %735 = math.tanh %734 : vector<8x32xf32>
    %736 = arith.mulf %731, %735 : vector<8x32xf32>
    %737 = arith.truncf %736 : vector<8x32xf32> to vector<8x32xbf16>
    %c0_268 = arith.constant 0 : index
    %c0_269 = arith.constant 0 : index
    %738 = vector.load %arg17[%c0_268, %c0_269] : memref<8x128xbf16, #tpu.memory_space<vmem>>, vector<8x32xbf16>
    tpu.vector_store %arg17[%c0_268, %c0_269], %737 {strides = array<i32>} : memref<8x128xbf16, #tpu.memory_space<vmem>>, vector<8x32xbf16>,
    %c0_270 = arith.constant 0 : index
    %c0_271 = arith.constant 0 : index
    %739 = vector.load %arg17[%c0_270, %c0_271] : memref<8x128xbf16, #tpu.memory_space<vmem>>, vector<8x128xbf16>
    %c0_272 = arith.constant 0 : index
    %c0_273 = arith.constant 0 : index
    %740 = vector.load %arg20[%c0_272, %c0_273] : memref<128x256xbf16, #tpu.memory_space<vmem>>, vector<128x256xbf16>
    %cst_274 = arith.constant dense<0.000000e+00> : vector<8x256xf32>
    %741 = tpu.matmul %739, %740, %cst_274 {dimension_numbers = #tpu.dot_dimension_numbers<[1], [0], [0], [1], [0, 0, 1, 1], [], []>} : vector<8x128xbf16>, vector<128x256xbf16>, vector<8x256xf32> -> vector<8x256xf32>
    %742 = arith.addf %741, %404 : vector<8x256xf32>
    %743 = math.tanh %742 : vector<8x256xf32>
    %744 = arith.negf %742 : vector<8x256xf32>
    %745 = math.exp %744 : vector<8x256xf32>
    %cst_275 = arith.constant 1.000000e+00 : f32
    %746 = vector.broadcast %cst_275 : f32 to vector<8x256xf32>
    %747 = arith.addf %746, %745 : vector<8x256xf32>
    %748 = arith.divf %746, %747 : vector<8x256xf32>
    %749 = arith.select %13, %743, %748 : vector<8x256xi1>, vector<8x256xf32>
    %750 = vector.extract_strided_slice %749 {offsets = [0, 0], sizes = [8, 64], strides = [1, 1]} : vector<8x256xf32> to vector<8x64xf32>
    %751 = vector.extract_strided_slice %749 {offsets = [0, 64], sizes = [8, 64], strides = [1, 1]} : vector<8x256xf32> to vector<8x64xf32>
    %752 = vector.extract_strided_slice %749 {offsets = [0, 128], sizes = [8, 64], strides = [1, 1]} : vector<8x256xf32> to vector<8x64xf32>
    %753 = vector.extract_strided_slice %749 {offsets = [0, 192], sizes = [8, 64], strides = [1, 1]} : vector<8x256xf32> to vector<8x64xf32>
    %754 = arith.mulf %751, %712 : vector<8x64xf32>
    %755 = arith.mulf %750, %752 : vector<8x64xf32>
    %756 = arith.addf %754, %755 : vector<8x64xf32>
    %757 = math.tanh %756 : vector<8x64xf32>
    %758 = arith.mulf %753, %757 : vector<8x64xf32>
    %759 = arith.truncf %758 : vector<8x64xf32> to vector<8x64xbf16>
    %c0_276 = arith.constant 0 : index
    %c32_277 = arith.constant 32 : index
    %760 = vector.load %arg17[%c0_276, %c32_277] : memref<8x128xbf16, #tpu.memory_space<vmem>>, vector<8x64xbf16>
    tpu.vector_store %arg17[%c0_276, %c32_277], %759 {strides = array<i32>} : memref<8x128xbf16, #tpu.memory_space<vmem>>, vector<8x64xbf16>,
    %c56_278 = arith.constant 56 : index
    %c0_279 = arith.constant 0 : index
    %761 = vector.load %arg15[%c56_278, %c0_279] : memref<64x64xbf16, #tpu.memory_space<vmem>>, vector<8x64xbf16>
    tpu.vector_store %arg15[%c56_278, %c0_279], %759 {strides = array<i32>} : memref<64x64xbf16, #tpu.memory_space<vmem>>, vector<8x64xbf16>,
    %c0_280 = arith.constant 0 : index
    %c0_281 = arith.constant 0 : index
    %762 = vector.load %arg15[%c0_280, %c0_281] : memref<64x64xbf16, #tpu.memory_space<vmem>>, vector<64x64xbf16>
    %c0_282 = arith.constant 0 : index
    %c0_283 = arith.constant 0 : index
    %763 = vector.load %arg21[%c0_282, %c0_283] : memref<64x128xbf16, #tpu.memory_space<vmem>>, vector<64x128xbf16>
    %cst_284 = arith.constant dense<0.000000e+00> : vector<64x128xf32>
    %764 = tpu.matmul %762, %763, %cst_284 {dimension_numbers = #tpu.dot_dimension_numbers<[1], [0], [0], [1], [0, 0, 1, 1], [], []>} : vector<64x64xbf16>, vector<64x128xbf16>, vector<64x128xf32> -> vector<64x128xf32>
    %c0_285 = arith.constant 0 : index
    %c0_286 = arith.constant 0 : index
    %765 = vector.load %arg12[%c0_285, %c0_286] : memref<1x128xf32, #tpu.memory_space<vmem>>, vector<1x128xf32>
    %766 = vector.broadcast %765 : vector<1x128xf32> to vector<64x128xf32>
    %767 = arith.addf %764, %766 : vector<64x128xf32>
    %c0_287 = arith.constant 0 : index
    %c0_288 = arith.constant 0 : index
    %768 = vector.load %arg13[%c0_287, %c0_288] : memref<64x128xf32, #tpu.memory_space<vmem>>, vector<64x128xf32>
    tpu.vector_store %arg13[%c0_287, %c0_288], %767 {strides = array<i32>} : memref<64x128xf32, #tpu.memory_space<vmem>>, vector<64x128xf32>,
    return
  }
}

</mosaic_0001>

<bundles_post_ra>
// kernel: rae_forward.1
= control target key start
LH: loop header
LB: loop body
LE: loop exit
PB: predicated region body
PF: predicated region fallthrough
CT: control target
= control target key end

     0   :  { %s6805_s0 = inlined_call_operand.vmem [shape: f32[64,4], index: 0, kind: input, shape index: {}]   ;;  %s6806_s1 = inlined_call_operand.vmem [shape: bf16[4,256], index: 1, kind: input, shape index: {}]   ;;  %s6807_s2 = inlined_call_operand.vmem [shape: bf16[64,256], index: 2, kind: input, shape index: {}]   ;;  %s6808_s3 = inlined_call_operand.vmem [shape: f32[1,256], index: 3, kind: input, shape index: {}]   ;;  %s6809_s4 = inlined_call_operand.vmem [shape: bf16[128,128], index: 4, kind: input, shape index: {}]   ;;  %s6810_s5 = inlined_call_operand.vmem [shape: f32[1,128], index: 5, kind: input, shape index: {}]   ;;  %s6811_s6 = inlined_call_operand.vmem [shape: bf16[32,128], index: 6, kind: input, shape index: {}]   ;;  %s6812_s7 = inlined_call_operand.vmem [shape: bf16[32,128], index: 7, kind: input, shape index: {}]   ;;  %s6813_s8 = inlined_call_operand.vmem [shape: f32[1,128], index: 8, kind: input, shape index: {}]   ;;  %s6814_s9 = inlined_call_operand.vmem [shape: bf16[128,256], index: 9, kind: input, shape index: {}]   ;;  %s6815_s10 = inlined_call_operand.vmem [shape: f32[1,256], index: 10, kind: input, shape index: {}]   ;;  %s6816_s11 = inlined_call_operand.vmem [shape: bf16[64,128], index: 11, kind: input, shape index: {}]   ;;  %s6817_s12 = inlined_call_operand.vmem [shape: f32[1,128], index: 12, kind: input, shape index: {}]   ;;  %s6818_s13 = inlined_call_operand.vmem [shape: f32[64,128], index: 13, kind: output, shape index: {}]  }
   0x1   :  { %v5460_v0 = vld [vmem:[%s6811_s6] sm:$0xff]  ;;  %v5465_v1 = vld [vmem:[%s6811_s6 + $0x8] sm:$0xff] }
   0x2   :  { %80 = vsyncadd [#allocation10], 256  ;;  %v5470_v2 = vld [vmem:[%s6812_s7] sm:$0xff]  ;;  %v5475_v3 = vld [vmem:[%s6812_s7 + $0x8] sm:$0xff] }
   0x3   :  { %125 = vsyncadd [#allocation10 + $0x1], 256  ;;  %v144_v4 = vld [vmem:[%s6814_s9] sm:$0xf]  ;;  %v146_v5 = vld [vmem:[%s6814_s9 + $0x8] sm:$0xf] }
   0x4   :  { %145 = vst [vmem:[#allocation8] sm:$0xf] %v144_v4  ;;  %147 = vst [vmem:[#allocation8 + $0x4] sm:$0xf] %v146_v5  ;;  %v148_v6 = vld [vmem:[%s6814_s9 + $0x4] sm:$0xf] }
   0x5   :  { %v150_v7 = vld [vmem:[%s6814_s9 + $0xc] sm:$0xff]   ;;  %v154_v8 = vld [vmem:[%s6814_s9 + $0x18] sm:$0xf]  ;;  %149 = vst [vmem:[#allocation8 + $0x8] sm:$0xf] %v148_v6  ;;  %v158_v10 = vld [vmem:[%s6814_s9 + $0x1c] sm:$0xff]  }
   0x6   :  { %151 = vst [vmem:[#allocation8 + $0xc] sm:$0xff] %v150_v7   ;;  %155 = vst [vmem:[#allocation8 + $0x14] sm:$0xf] %v154_v8  ;;  %v156_v9 = vld [vmem:[%s6814_s9 + $0x14] sm:$0xf]  ;;  %v166_v13 = vld [vmem:[%s6814_s9 + $0x2c] sm:$0xff]  }
   0x7   :  { %v162_v11 = vld [vmem:[%s6814_s9 + $0x28] sm:$0xf]  ;;  %157 = vst [vmem:[#allocation8 + $0x18] sm:$0xf] %v156_v9  ;;  %159 = vst [vmem:[#allocation8 + $0x1c] sm:$0xff] %v158_v10   ;;  %v174_v16 = vld [vmem:[%s6814_s9 + $0x3c] sm:$0xff]  }
   0x8   :  { %163 = vst [vmem:[#allocation8 + $0x24] sm:$0xf] %v162_v11  ;;  %v164_v12 = vld [vmem:[%s6814_s9 + $0x24] sm:$0xf]  ;;  %v170_v14 = vld [vmem:[%s6814_s9 + $0x38] sm:$0xf] }
   0x9   :  { %165 = vst [vmem:[#allocation8 + $0x28] sm:$0xf] %v164_v12  ;;  %167 = vst [vmem:[#allocation8 + $0x2c] sm:$0xff] %v166_v13   ;;  %v172_v15 = vld [vmem:[%s6814_s9 + $0x34] sm:$0xf]  ;;  %v182_v19 = vld [vmem:[%s6814_s9 + $0x4c] sm:$0xff]  }
   0xa   :  { %171 = vst [vmem:[#allocation8 + $0x34] sm:$0xf] %v170_v14  ;;  %v178_v17 = vld [vmem:[%s6814_s9 + $0x48] sm:$0xf]  ;;  %173 = vst [vmem:[#allocation8 + $0x38] sm:$0xf] %v172_v15 }
   0xb   :  { %175 = vst [vmem:[#allocation8 + $0x3c] sm:$0xff] %v174_v16   ;;  %179 = vst [vmem:[#allocation8 + $0x44] sm:$0xf] %v178_v17  ;;  %v180_v18 = vld [vmem:[%s6814_s9 + $0x44] sm:$0xf]  ;;  %v190_v22 = vld [vmem:[%s6814_s9 + $0x5c] sm:$0xff]  }
   0xc   :  { %v186_v20 = vld [vmem:[%s6814_s9 + $0x58] sm:$0xf]  ;;  %181 = vst [vmem:[#allocation8 + $0x48] sm:$0xf] %v180_v18  ;;  %183 = vst [vmem:[#allocation8 + $0x4c] sm:$0xff] %v182_v19   ;;  %v198_v25 = vld [vmem:[%s6814_s9 + $0x6c] sm:$0xff]  }
   0xd   :  { %187 = vst [vmem:[#allocation8 + $0x54] sm:$0xf] %v186_v20  ;;  %v188_v21 = vld [vmem:[%s6814_s9 + $0x54] sm:$0xf]  ;;  %v194_v23 = vld [vmem:[%s6814_s9 + $0x68] sm:$0xf] }
   0xe   :  { %189 = vst [vmem:[#allocation8 + $0x58] sm:$0xf] %v188_v21  ;;  %191 = vst [vmem:[#allocation8 + $0x5c] sm:$0xff] %v190_v22   ;;  %v196_v24 = vld [vmem:[%s6814_s9 + $0x64] sm:$0xf] }
   0xf   :  { %195 = vst [vmem:[#allocation8 + $0x64] sm:$0xf] %v194_v23  ;;  %v202_v26 = vld [vmem:[%s6814_s9 + $0x78] sm:$0xf]  ;;  %197 = vst [vmem:[#allocation8 + $0x68] sm:$0xf] %v196_v24 }
  0x10   :  { %199 = vst [vmem:[#allocation8 + $0x6c] sm:$0xff] %v198_v25   ;;  %203 = vst [vmem:[#allocation8 + $0x74] sm:$0xf] %v202_v26  ;;  %v204_v27 = vld [vmem:[%s6814_s9 + $0x74] sm:$0xf] }
  0x11   :  { %v206_v28 = vld [vmem:[%s6814_s9 + $0x7c] sm:$0xf]  ;;  %205 = vst [vmem:[#allocation8 + $0x78] sm:$0xf] %v204_v27 }
  0x12   :  { %207 = vst [vmem:[#allocation8 + $0x7c] sm:$0xf] %v206_v28 }
  0x13   :  { %302 = vsyncadd [#allocation10 + $0x2], 2048  ;;  %v5555_v29 = vld [vmem:[%s6816_s11] sm:$0xff]  ;;  %v5560_v30 = vld [vmem:[%s6816_s11 + $0x8] sm:$0xff]  ;;  %vm411_vm0 = vcmask 1041408   ;;  %v5381_v35 = vmov 0  }
  0x14   :  { %v5565_v31 = vld [vmem:[%s6816_s11 + $0x10] sm:$0xff]  ;;  %v5570_v32 = vld [vmem:[%s6816_s11 + $0x18] sm:$0xff]  ;;  %v5575_v33 = vld [vmem:[%s6807_s2 + $0x4] ss:$8 sps:$4 sm:$0xff]   ;;  %450 = vmatprep.mubr.bf16.mxu0 %v5381_v35  ;;  %514 = vst [vmem:[#allocation4] sm:$0xf] %v5381_v35  ;;  %601 = vmatprep.mubr.bf16.mxu1 %v5381_v35 }
  0x15   :  { %v5580_v34 = vld [vmem:[%s6807_s2] ss:$8 sps:$4 sm:$0xff]   ;;  %569 = vmatprep.subr.bf16.mxu1 %v5575_v33  ;;  %v5589_v36 = vld [vmem:[%s6807_s2 + $0x14] ss:$8 sps:$4 sm:$0xff]   ;;  %v5594_v37 = vld [vmem:[%s6807_s2 + $0x10] ss:$8 sps:$4 sm:$0xff]  }
  0x16   :  { %351 = vsyncadd [#allocation10 + $0x3], 512  ;;  %570 = vmatpush1.bf16.msra.mxu1 %v5580_v34  ;;  %v4331_v38 = vld.sshfl [vmem:[%s6806_s1] sm:$0x33 pattern:$0x76325410]  ;;  %v352_v48 = vlaneseq }
  0x17   :  { %571 = vmatprep.subr.bf16.mxu1 %v5589_v36  ;;  %v397_v39 = vcombine.high %v4331_v38, %v4331_v38  ;;  %v413_v40 = vsel %vm411_vm0, %v4331_v38, 0  ;;  %v5605_v41 = vld [vmem:[%s6807_s2 + $0x24] ss:$8 sps:$4 sm:$0xff]   ;;  %v5617_v44 = vld [vmem:[%s6807_s2 + $0x20] ss:$8 sps:$4 sm:$0xff]   ;;  %vm398_vm1 = vcmask 31744  }
  0x18   :  { %v364_v42 = vld [vmem:[%s6805_s0] sm:$0xff]  ;;  %v365_v43 = vld [vmem:[%s6805_s0 + $0x8] sm:$0xff]  ;;  %v5622_v46 = vld [vmem:[%s6807_s2 + $0x34] ss:$8 sps:$4 sm:$0xff]   ;;  %v5646_v49 = vshrl.u32 %v352_v48, 7  ;;  %v5667_v13 = vand.u32 127, %v352_v48 }
  0x19   :  { %4332 = vmatprep.subr.msk.bf16.mxu0 %vm411_vm0, %v397_v39  ;;  %v372_v45 = vpack.c.bf16 %v365_v43, %v364_v42  ;;  %v5629_v47 = vld [vmem:[%s6807_s2 + $0x30] ss:$8 sps:$4 sm:$0xff]   ;;  %v377_v51 = vld [vmem:[%s6808_s3] sm:$0x3]  ;;  %s5382_s3 = smov 64   ;;  %v5383_v22 = vmov 0.0  }
  0x1a   :  { %572 = vmatpush1.bf16.msra.mxu1 %v5594_v37  ;;  %419 = vmatpush1.bf16.msra.mxu0 %v413_v40  ;;  %v381_v50 = vsub.s32 0, %v5646_v49  ;;  %v385_v52 = vsub.s32 1, %v5646_v49  ;;  %v5670_v14 = vadd.s32 128, %v5667_v13  ;;  %v4976_v20 = vld [vmem:[%s6809_s4] sm:$0xff]   ;;  %v366_v21 = vld [vmem:[%s6805_s0 + $0x10] sm:$0xff]  ;;  %v367_v23 = vld [vmem:[%s6805_s0 + $0x18] sm:$0xff] }
  0x1b   :  { %573 = vmatprep.subr.bf16.mxu1 %v5605_v41  ;;  %4710 = vmatprep.subr.bf16.mxu0 %v5383_v22  ;;  %v4977_v24 = vld [vmem:[%s6809_s4 + $0x8] sm:$0xff]   ;;  %v373_v25 = vpack.c.bf16 %v367_v23, %v366_v21  ;;  %v368_v26 = vld [vmem:[%s6805_s0 + $0x20] sm:$0xff]  ;;  %v4978_v28 = vld [vmem:[%s6809_s4 + $0x10] sm:$0xff]   ;;  %vm5384_vm3 = vmmov 0   ;;  %vm644_vm4 = vcmask 519168   ;;  %vm565_vm5 = vcmask 523264  }
  0x1c   :  { %v5655_v54 = vrot.slane %v377_v51, %v381_v50  ;;  %v5659_v56 = vrot.slane %v377_v51, %v385_v52  ;;  %vm358_vm2 = vcmp.lt.s32.totalorder %v5670_v14, 192  ;;  %v369_v27 = vld [vmem:[%s6805_s0 + $0x28] sm:$0xff]  ;;  %v4979_v39 = vld [vmem:[%s6809_s4 + $0x18] sm:$0xff]   ;;  %v370_v40 = vld [vmem:[%s6805_s0 + $0x30] sm:$0xff]  ;;  %vm361_vm6 = vcmp.ge.s32.totalorder %v5667_v13, 64  ;;  %s5385_s7 = smov 32  }
  0x1d   :  { %4333 = vmatmul.mubr.msk.bf16.vlgmr.msra.gmra.mrb[0].mxu0 %vm398_vm1, %v372_v45  ;;  %v374_v38 = vpack.c.bf16 %v369_v27, %v368_v26  ;;  %v371_v42 = vld [vmem:[%s6805_s0 + $0x38] sm:$0xff]  ;;  %v4980_v43 = vld [vmem:[%s6809_s4 + $0x20] sm:$0xff]   ;;  %v4981_v48 = vld [vmem:[%s6809_s4 + $0x28] sm:$0xff]   ;;  %vm362_vm7 = vcmp.lt.s32.totalorder %v5667_v13, 96  ;;  %s5386_s0 = smov 96   ;;  %vm783_vm9 = vcmask 781824  }
  0x1e   :  { %574 = vmatpush1.bf16.msra.mxu1 %v5617_v44  ;;  %460 = vmatprep.mubr.bf16.mxu0 %v5381_v35  ;;  %v375_v45 = vpack.c.bf16 %v371_v42, %v370_v40  ;;  %v5784_v40 = vld [vmem:[%s6810_s5] ss:$0 sm:$0xff]  ;;  %vm5789_vm8 = vmand %vm361_vm6, %vm362_vm7 }
  0x1f   :  { %575 = vmatprep.subr.bf16.mxu1 %v5622_v46  ;;  %4711 = vmatpush3.bf16.msra.mxu0 %v4976_v20 }
  0x20   :  { %4712 = vmatprep.subr.bf16.mxu0 %v5383_v22 }
  0x22   :  { %576 = vmatpush1.bf16.msra.mxu1 %v5629_v47 }
  0x23   :  { %840 = vmatprep.subr.bf16.mxu1 %v5575_v33  ;;  %4713 = vmatpush3.bf16.msra.mxu0 %v4977_v24 }
  0x24   :  { %4714 = vmatprep.subr.bf16.mxu0 %v5383_v22 }
  0x25   :  { %602 = vmatmul.mubr.bf16.vlgmr.msra.gmra.mrb[0].mxu1 %v5381_v35  ;;  %4334 = vmatmul.mubr.msk.bf16.gmra.mrb[4].mxu0 %vm398_vm1, %v373_v25 }
  0x26   :  { %841 = vmatpush1.bf16.msra.mxu1 %v5580_v34  ;;  %872 = vmatprep.mubr.bf16.mxu1 %v5381_v35 }
  0x27   :  { %842 = vmatprep.subr.bf16.mxu1 %v5589_v36  ;;  %470 = vmatprep.mubr.bf16.mxu0 %v5381_v35 }
  0x28   :  { %4715 = vmatpush3.bf16.msra.mxu0 %v4978_v28 }
  0x29   :  { %4716 = vmatprep.subr.bf16.mxu0 %v5383_v22 }
  0x2a   :  { %843 = vmatpush1.bf16.msra.mxu1 %v5594_v37 }
  0x2b   :  { %844 = vmatprep.subr.bf16.mxu1 %v5605_v41 }
  0x2c   :  { %4717 = vmatpush3.bf16.msra.mxu0 %v4979_v39 }
  0x2d   :  { %4335 = vmatmul.mubr.msk.bf16.gmra.mrb[8].mxu0 %vm398_vm1, %v374_v38  ;;  %4718 = vmatprep.subr.bf16.mxu0 %v5383_v22 }
  0x2e   :  { %845 = vmatpush1.bf16.msra.mxu1 %v5617_v44  ;;  %480 = vmatprep.mubr.bf16.mxu0 %v5381_v35 }
  0x2f   :  { %846 = vmatprep.subr.bf16.mxu1 %v5622_v46 }
  0x30   :  { %4719 = vmatpush3.bf16.msra.mxu0 %v4980_v43 }
  0x31   :  { %4720 = vmatprep.subr.bf16.mxu0 %v5383_v22 }
  0x32   :  { %847 = vmatpush1.bf16.msra.mxu1 %v5629_v47 }
  0x33   :  { %4730 = vmatprep.subr.bf16.mxu1 %v5383_v22 }
  0x34   :  { %4721 = vmatpush3.bf16.msra.mxu0 %v4981_v48 }
  0x35   :  { %4336 = vmatmul.mubr.msk.bf16.gmra.mrb[12].mxu0 %vm398_vm1, %v375_v45  ;;  %4722 = vmatprep.subr.bf16.mxu0 %v5383_v22 }
  0x36   :  { %4726 = vmatprep.mubr.msk.bf16.mxu0 %vm5384_vm3, %v5383_v22 }
  0xf0   :  { %v452_v53 = vpop.f32.mrb[0].mxu0 }
  0xf1   :  { %v454_v55 = vpop.f32.mrb[1].mxu0  ;;  %v453_v59 = vadd.f32 %v452_v53, %v5655_v54 }
  0xf2   :  { %v5661_v57 = vpop.f32.mrb[2].mxu0  ;;  %v455_v60 = vadd.f32 %v454_v55, %v5659_v56 }
  0xf3   :  { %v5663_v58 = vpop.f32.mrb[3].mxu0  ;;  %v457_v21 = vadd.f32 %v5661_v57, %v5655_v54 }
  0xf4   :  { %v459_v23 = vadd.f32 %v5663_v58, %v5659_v56 }
  0xf8   :  { %v603_v61 = vpop.f32.mrb[0].mxu1 }
  0xf9   :  { %v610_v62 = vadd.f32 %v603_v61, %v453_v59  ;;  %v605_v63 = vpop.f32.mrb[1].mxu1  ;;  %v4982_v59 = vld [vmem:[%s6809_s4 + $0x30] sm:$0xff]  }
  0xfa   :  { %v611_v4 = vadd.f32 %v605_v63, %v455_v60  ;;  %v607_v5 = vpop.f32.mrb[2].mxu1  ;;  %4723 = vmatpush3.bf16.msra.mxu0 %v4982_v59  ;;  %v4983_v60 = vld [vmem:[%s6809_s4 + $0x38] sm:$0xff]  }
  0xfb   :  { %v4346_v6 = vmul.f32 -1.442695, %v610_v62  ;;  %v608_v7 = vpop.f32.mrb[3].mxu1  ;;  %4724 = vmatprep.subr.bf16.mxu0 %v5383_v22 }
  0xfc   :  { %v4347_v8 = vmul.f32 -1.442695, %v611_v4 }
  0xfd   :  { %5052 = vpow2.f32 %v4346_v6 }
  0xfe   :  { %5054 = vpow2.f32 %v4347_v8  ;;  %4725 = vmatpush3.bf16.msra.mxu0 %v4983_v60 }
  0xff   :  { %5056 = vtanh.f32 %v611_v4  ;;  %1109 = vmatprep.subr.bf16.mxu0 %v5575_v33  ;;  %v5740_v4 = vpop.f32.mrb[4].mxu0 }
 0x100   :  { %v5742_v5 = vpop.f32.mrb[5].mxu0 }
 0x101   :  { %v5744_v6 = vpop.f32.mrb[6].mxu0 }
 0x102   :  { %v5746_v7 = vpop.f32.mrb[7].mxu0 }
 0x103   :  { %v5748_v8 = vpop.f32.mrb[8].mxu0 }
 0x107   :  { %v5053_v9 = vpop.eup %5052 }
 0x108   :  { %v5055_v10 = vpop.eup %5054  ;;  %v620_v11 = vadd.f32 1.0, %v5053_v9  ;;  %v5750_v9 = vpop.f32.mrb[9].mxu0 }
 0x109   :  { %v621_v12 = vadd.f32 1.0, %v5055_v10  ;;  %v5057_v15 = vpop.eup %5056  ;;  %v5752_v10 = vpop.f32.mrb[10].mxu0 }
 0x10b   :  { %5058 = vrcp.f32 %v621_v12 }
 0x10c   :  { %5060 = vrcp.f32 %v620_v11  ;;  %v5754_v11 = vpop.f32.mrb[11].mxu0 }
 0x10d   :  { %v5756_v12 = vpop.f32.mrb[12].mxu0 }
 0x115   :  { %v5059_v16 = vpop.eup %5058 }
 0x116   :  { %v5061_v17 = vpop.eup %5060  ;;  %v627_v18 = vsel %vm358_vm2, %v5057_v15, %v5059_v16  ;;  %v5758_v15 = vpop.f32.mrb[13].mxu0 }
 0x117   :  { %v629_v19 = vmul.f32 %v5061_v17, %v627_v18  ;;  %v628_v51 = vmul.f32 0.0, %v5061_v17  ;;  %v5760_v16 = vpop.f32.mrb[14].mxu0 }
 0x118   :  { %v5762_v17 = vpop.f32.mrb[15].mxu0 }
 0x119   :  { %631 = vrot.lane.b32.xlu0 %v629_v19, %s5382_s3 }
 0x18b   :  { %v632_v53 = vpop.permute.xlu0 %631 }
 0x18c   :  { %v5725_v55 = vadd.f32 %v632_v53, %v628_v51 }
 0x18e   :  { %5062 = vtanh.f32 %v5725_v55 }
 0x198   :  { %v5063_v61 = vpop.eup %5062 }
 0x199   :  { %v636_v62 = vmul.f32 %v5063_v61, %v627_v18 }
 0x19b   :  { %v637_v63 = vpack.c.bf16 %v636_v62, %v636_v62 }
 0x19d   :  { %795 = vrot.lane.b32.xlu1 %v637_v63, %s5382_s3  ;;  %641 = vrot.lane.b32.xlu0 %v637_v63, %s5382_s3 }
 0x20f   :  { %v796_v18 = vpop.permute.xlu1 %795  ;;  %v642_v19 = vpop.permute.xlu0 %641 }
 0x210   :  { %645 = vst.msk [vmem:[#allocation4] sm:$0xf] %vm644_vm4, %v642_v19  ;;  %4367 = vmatmul.mubr.msk.bf16.vlgmr.msra.gmra.mrb[4].mxu1 %vm565_vm5, %v796_v18 }
 0x211   :  { %4746 = vmatprep.mubr.msk.bf16.mxu1 %vm5384_vm3, %v5383_v22 }
 0x217   :  { %v646_v20 = vld [vmem:[#allocation4] sm:$0xf] }
 0x218   :  { %4727 = vmatmul.mubr.bf16.vlgmr.msra.gmra.mrb[16].mxu0 %v646_v20 }
 0x219   :  { %1110 = vmatpush1.bf16.msra.mxu0 %v5580_v34  ;;  %1141 = vmatprep.mubr.bf16.mxu0 %v5381_v35 }
 0x21a   :  { %1111 = vmatprep.subr.bf16.mxu0 %v5589_v36 }
 0x21d   :  { %1112 = vmatpush1.bf16.msra.mxu0 %v5594_v37 }
 0x21e   :  { %1113 = vmatprep.subr.bf16.mxu0 %v5605_v41 }
 0x221   :  { %1114 = vmatpush1.bf16.msra.mxu0 %v5617_v44 }
 0x222   :  { %1115 = vmatprep.subr.bf16.mxu0 %v5622_v46 }
 0x225   :  { %1116 = vmatpush1.bf16.msra.mxu0 %v5629_v47 }
 0x226   :  { %4750 = vmatprep.subr.bf16.mxu0 %v5383_v22 }
 0x2e3   :  { %v874_v24 = vpop.f32.mrb[4].mxu1 }
 0x2e4   :  { %v881_v25 = vadd.f32 %v874_v24, %v457_v21  ;;  %v876_v26 = vpop.f32.mrb[5].mxu1 }
 0x2e5   :  { %v882_v27 = vadd.f32 %v876_v26, %v459_v23  ;;  %v878_v28 = vpop.f32.mrb[6].mxu1 }
 0x2e6   :  { %v879_v38 = vpop.f32.mrb[7].mxu1  ;;  %v4368_v42 = vmul.f32 -1.442695, %v881_v25 }
 0x2e7   :  { %v4369_v39 = vmul.f32 -1.442695, %v882_v27 }
 0x2e9   :  { %5064 = vpow2.f32 %v4369_v39 }
 0x2ea   :  { %5066 = vpow2.f32 %v4368_v42 }
 0x2eb   :  { %v745_v43 = vpop.f32.mrb[16].mxu0 }
 0x2ec   :  { %v746_v57 = vadd.f32 %v5784_v40, %v745_v43  ;;  %v4728_v45 = vpop.f32.mrb[17].mxu0 }
 0x2ed   :  { %v748_v48 = vpop.f32.mrb[18].mxu0 }
 0x2ee   :  { %v4357_v58 = vmul.f32 -1.442695, %v746_v57  ;;  %v4729_v51 = vpop.f32.mrb[19].mxu0 }
 0x2f0   :  { %5068 = vpow2.f32 %v4357_v58  ;;  %v4984_v58 = vld [vmem:[%s6809_s4] sm:$0xff]  }
 0x2f1   :  { %5070 = vtanh.f32 %v882_v27  ;;  %4731 = vmatpush3.bf16.msra.mxu1 %v4984_v58 }
 0x2f2   :  { %4732 = vmatprep.subr.bf16.mxu1 %v5383_v22 }
 0x2f3   :  { %v5065_v53 = vpop.eup %5064 }
 0x2f4   :  { %v892_v59 = vadd.f32 1.0, %v5065_v53  ;;  %v5067_v60 = vpop.eup %5066 }
 0x2f5   :  { %v891_v63 = vadd.f32 1.0, %v5067_v60 }
 0x2f6   :  { %5072 = vrcp.f32 %v892_v59  ;;  %v4986_v59 = vld [vmem:[%s6809_s4 + $0x10] sm:$0xff]  }
 0x2f7   :  { %5074 = vtanh.f32 %v746_v57 }
 0x2fa   :  { %v5069_v61 = vpop.eup %5068 }
 0x2fb   :  { %v755_v62 = vadd.f32 1.0, %v5069_v61  ;;  %v5071_v18 = vpop.eup %5070  ;;  %v4987_v61 = vld [vmem:[%s6809_s4 + $0x18] sm:$0xff]  }
 0x2fd   :  { %5076 = vrcp.f32 %v755_v62  ;;  %v4988_v62 = vld [vmem:[%s6809_s4 + $0x20] sm:$0xff]  }
 0x2fe   :  { %5078 = vrcp.f32 %v891_v63  ;;  %v4989_v63 = vld [vmem:[%s6809_s4 + $0x28] sm:$0xff]  }
 0x300   :  { %v5073_v19 = vpop.eup %5072 }
 0x301   :  { %v5075_v21 = vpop.eup %5074  ;;  %v898_v25 = vsel %vm358_vm2, %v5071_v18, %v5073_v19  ;;  %v4990_v18 = vld [vmem:[%s6809_s4 + $0x30] sm:$0xff]   ;;  %v4991_v19 = vld [vmem:[%s6809_s4 + $0x38] sm:$0xff]  }
 0x307   :  { %v5077_v23 = vpop.eup %5076 }
 0x308   :  { %v758_v24 = vsel %vm5789_vm8, %v5075_v21, %v5077_v23  ;;  %v5079_v26 = vpop.eup %5078 }
 0x309   :  { %761 = vrot.lane.b32.xlu1 %v758_v24, %s5382_s3  ;;  %v900_v27 = vmul.f32 %v5079_v26, %v898_v25  ;;  %v899_v39 = vmul.f32 %v5079_v26, %v5725_v55  ;;  %v759_v43 = vmul.f32 0.0, %v758_v24  ;;  %v4985_v55 = vld [vmem:[%s6809_s4 + $0x8] sm:$0xff]  }
 0x30a   :  { %4733 = vmatpush3.bf16.msra.mxu1 %v4985_v55 }
 0x30b   :  { %4734 = vmatprep.subr.bf16.mxu1 %v5383_v22 }
 0x30d   :  { %902 = vrot.lane.b32.xlu1 %v900_v27, %s5382_s3 }
 0x30e   :  { %4735 = vmatpush3.bf16.msra.mxu1 %v4986_v59 }
 0x30f   :  { %4736 = vmatprep.subr.bf16.mxu1 %v5383_v22 }
 0x312   :  { %4737 = vmatpush3.bf16.msra.mxu1 %v4987_v61 }
 0x313   :  { %4738 = vmatprep.subr.bf16.mxu1 %v5383_v22 }
 0x316   :  { %4739 = vmatpush3.bf16.msra.mxu1 %v4988_v62 }
 0x317   :  { %4740 = vmatprep.subr.bf16.mxu1 %v5383_v22 }
 0x31a   :  { %4741 = vmatpush3.bf16.msra.mxu1 %v4989_v63 }
 0x31b   :  { %4742 = vmatprep.subr.bf16.mxu1 %v5383_v22 }
 0x31e   :  { %4743 = vmatpush3.bf16.msra.mxu1 %v4990_v18 }
 0x31f   :  { %4744 = vmatprep.subr.bf16.mxu1 %v5383_v22 }
 0x322   :  { %4745 = vmatpush3.bf16.msra.mxu1 %v4991_v19 }
 0x323   :  { %1378 = vmatprep.subr.bf16.mxu1 %v5575_v33 }
 0x37b   :  { %v762_v13 = vpop.permute.xlu1 %761 }
 0x37c   :  { %v764_v28 = vmul.f32 %v762_v13, %v758_v24 }
 0x37e   :  { %766 = vrot.lane.b32.xlu0 %v764_v28, %s5385_s7 }
 0x37f   :  { %v903_v38 = vpop.permute.xlu1 %902 }
 0x380   :  { %v5801_v42 = vadd.f32 %v903_v38, %v899_v39 }
 0x382   :  { %5080 = vtanh.f32 %v5801_v42 }
 0x38c   :  { %v5081_v48 = vpop.eup %5080 }
 0x38d   :  { %v907_v51 = vmul.f32 %v5081_v48, %v898_v25 }
 0x38f   :  { %v908_v60 = vpack.c.bf16 %v907_v51, %v907_v51 }
 0x3f0   :  { %v767_v57 = vpop.permute.xlu0 %766 }
 0x3f1   :  { %v5804_v45 = vadd.f32 %v767_v57, %v759_v43 }
 0x3f3   :  { %5082 = vtanh.f32 %v5804_v45 }
 0x3fd   :  { %v5083_v53 = vpop.eup %5082 }
 0x3fe   :  { %772 = vrot.lane.b32.xlu0 %v5083_v53, %s5382_s3 }
 0x402   :  { %912 = vrot.lane.b32.xlu0 %v908_v60, %s5382_s3 }
 0x470   :  { %v773_v21 = vpop.permute.xlu0 %772 }
 0x471   :  { %v775_v23 = vmul.f32 %v773_v21, %v758_v24  ;;  %v463_v24 = vadd.f32 %v5740_v4, %v5655_v54 }
 0x473   :  { %v4572_v25 = vpack.c.bf16 %v775_v23, %v775_v23 }
 0x474   :  { %v913_v27 = vpop.permute.xlu0 %912 }
 0x475   :  { %780 = vrot.lane.b32.xlu1 %v4572_v25, %s5386_s0 }
 0x479   :  { %1064 = vrot.lane.b32.xlu1 %v908_v60, %s5382_s3 }
 0x4e7   :  { %v781_v26 = vpop.permute.xlu1 %780 }
 0x4e8   :  { %784 = vst.msk [vmem:[#allocation4] sm:$0xf] %vm783_vm9, %v781_v26 }
 0x4e9   :  { %915 = vst.msk [vmem:[#allocation4] sm:$0xf] %vm644_vm4, %v913_v27 }
 0x4eb   :  { %v1065_v13 = vpop.permute.xlu1 %1064 }
 0x4ec   :  { %4389 = vmatmul.mubr.msk.bf16.vlgmr.msra.gmra.mrb[20].mxu0 %vm565_vm5, %v1065_v13 }
 0x4ed   :  { %4766 = vmatprep.mubr.msk.bf16.mxu0 %vm5384_vm3, %v5383_v22 }
 0x4f0   :  { %v916_v33 = vld [vmem:[#allocation4] sm:$0xf] }
 0x4f1   :  { %4747 = vmatmul.mubr.bf16.vlgmr.msra.gmra.mrb[8].mxu1 %v916_v33 }
 0x4f2   :  { %1379 = vmatpush1.bf16.msra.mxu1 %v5580_v34  ;;  %1410 = vmatprep.mubr.bf16.mxu1 %v5381_v35  ;;  %v465_v34 = vadd.f32 %v5742_v5, %v5659_v56 }
 0x4f3   :  { %1380 = vmatprep.subr.bf16.mxu1 %v5589_v36 }
 0x4f6   :  { %1381 = vmatpush1.bf16.msra.mxu1 %v5594_v37 }
 0x4f7   :  { %1382 = vmatprep.subr.bf16.mxu1 %v5605_v41 }
 0x4fa   :  { %1383 = vmatpush1.bf16.msra.mxu1 %v5617_v44 }
 0x4fb   :  { %1384 = vmatprep.subr.bf16.mxu1 %v5622_v46 }
 0x4fe   :  { %1385 = vmatpush1.bf16.msra.mxu1 %v5629_v47 }
 0x4ff   :  { %4770 = vmatprep.subr.bf16.mxu1 %v5383_v22 }
 0x5bf   :  { %v1143_v28 = vpop.f32.mrb[20].mxu0 }
 0x5c0   :  { %v1150_v36 = vadd.f32 %v1143_v28, %v463_v24  ;;  %v1145_v38 = vpop.f32.mrb[21].mxu0 }
 0x5c1   :  { %v1151_v37 = vadd.f32 %v1145_v38, %v465_v34  ;;  %v1147_v39 = vpop.f32.mrb[22].mxu0 }
 0x5c2   :  { %v1148_v41 = vpop.f32.mrb[23].mxu0  ;;  %v4390_v44 = vmul.f32 -1.442695, %v1150_v36 }
 0x5c3   :  { %v4391_v43 = vmul.f32 -1.442695, %v1151_v37 }
 0x5c4   :  { %v1015_v57 = vpop.f32.mrb[8].mxu1 }
 0x5c5   :  { %5084 = vpow2.f32 %v4391_v43  ;;  %v1016_v46 = vadd.f32 %v5784_v40, %v1015_v57  ;;  %v4748_v47 = vpop.f32.mrb[9].mxu1  ;;  %v4996_v57 = vld [vmem:[%s6809_s4 + $0x20] sm:$0xff]  }
 0x5c6   :  { %v1018_v48 = vpop.f32.mrb[10].mxu1  ;;  %5086 = vpow2.f32 %v4390_v44  ;;  %v4995_v44 = vld [vmem:[%s6809_s4 + $0x18] sm:$0xff]   ;;  %v4998_v47 = vld [vmem:[%s6809_s4 + $0x30] sm:$0xff]  }
 0x5c7   :  { %v4379_v58 = vmul.f32 -1.442695, %v1016_v46  ;;  %v4749_v55 = vpop.f32.mrb[11].mxu1  ;;  %v4999_v48 = vld [vmem:[%s6809_s4 + $0x38] sm:$0xff]  }
 0x5c9   :  { %5088 = vpow2.f32 %v4379_v58 }
 0x5ca   :  { %5090 = vtanh.f32 %v1151_v37  ;;  %v4992_v37 = vld [vmem:[%s6809_s4] sm:$0xff]  }
 0x5cb   :  { %4751 = vmatpush3.bf16.msra.mxu0 %v4992_v37 }
 0x5cc   :  { %4752 = vmatprep.subr.bf16.mxu0 %v5383_v22 }
 0x5cf   :  { %v5085_v4 = vpop.eup %5084 }
 0x5d0   :  { %v1161_v5 = vadd.f32 1.0, %v5085_v4  ;;  %v5087_v51 = vpop.eup %5086 }
 0x5d1   :  { %v1160_v60 = vadd.f32 1.0, %v5087_v51 }
 0x5d2   :  { %5092 = vrcp.f32 %v1161_v5 }
 0x5d3   :  { %v5089_v53 = vpop.eup %5088  ;;  %5094 = vtanh.f32 %v1016_v46  ;;  %v4997_v46 = vld [vmem:[%s6809_s4 + $0x28] sm:$0xff]  }
 0x5d4   :  { %v1025_v59 = vadd.f32 1.0, %v5089_v53  ;;  %v5091_v61 = vpop.eup %5090 }
 0x5d6   :  { %5096 = vrcp.f32 %v1025_v59 }
 0x5d7   :  { %5098 = vrcp.f32 %v1160_v60  ;;  %v467_v60 = vadd.f32 %v5744_v6, %v5655_v54 }
 0x5dc   :  { %v5093_v62 = vpop.eup %5092 }
 0x5dd   :  { %v5095_v63 = vpop.eup %5094  ;;  %v1167_v21 = vsel %vm358_vm2, %v5091_v61, %v5093_v62  ;;  %v469_v61 = vadd.f32 %v5746_v7, %v5659_v56 }
 0x5e0   :  { %v5097_v18 = vpop.eup %5096 }
 0x5e1   :  { %v1028_v19 = vsel %vm5789_vm8, %v5095_v63, %v5097_v18  ;;  %v5099_v23 = vpop.eup %5098 }
 0x5e2   :  { %1031 = vrot.lane.b32.xlu0 %v1028_v19, %s5382_s3  ;;  %v1169_v25 = vmul.f32 %v5099_v23, %v1167_v21  ;;  %v1168_v33 = vmul.f32 %v5099_v23, %v5801_v42  ;;  %v1029_v34 = vmul.f32 %v1028_v19, %v5804_v45  ;;  %v4993_v42 = vld [vmem:[%s6809_s4 + $0x8] sm:$0xff]   ;;  %v4994_v45 = vld [vmem:[%s6809_s4 + $0x10] sm:$0xff]  }
 0x5e3   :  { %4753 = vmatpush3.bf16.msra.mxu0 %v4993_v42 }
 0x5e4   :  { %4754 = vmatprep.subr.bf16.mxu0 %v5383_v22 }
 0x5e6   :  { %1171 = vrot.lane.b32.xlu0 %v1169_v25, %s5382_s3 }
 0x5e7   :  { %4755 = vmatpush3.bf16.msra.mxu0 %v4994_v45 }
 0x5e8   :  { %4756 = vmatprep.subr.bf16.mxu0 %v5383_v22 }
 0x5eb   :  { %4757 = vmatpush3.bf16.msra.mxu0 %v4995_v44 }
 0x5ec   :  { %4758 = vmatprep.subr.bf16.mxu0 %v5383_v22 }
 0x5ef   :  { %4759 = vmatpush3.bf16.msra.mxu0 %v4996_v57 }
 0x5f0   :  { %4760 = vmatprep.subr.bf16.mxu0 %v5383_v22 }
 0x5f3   :  { %4761 = vmatpush3.bf16.msra.mxu0 %v4997_v46 }
 0x5f4   :  { %4762 = vmatprep.subr.bf16.mxu0 %v5383_v22 }
 0x5f7   :  { %4763 = vmatpush3.bf16.msra.mxu0 %v4998_v47 }
 0x5f8   :  { %4764 = vmatprep.subr.bf16.mxu0 %v5383_v22 }
 0x5fb   :  { %4765 = vmatpush3.bf16.msra.mxu0 %v4999_v48 }
 0x654   :  { %v1032_v26 = vpop.permute.xlu0 %1031 }
 0x655   :  { %v1034_v27 = vmul.f32 %v1032_v26, %v1028_v19 }
 0x657   :  { %1036 = vrot.lane.b32.xlu1 %v1034_v27, %s5385_s7 }
 0x658   :  { %v1172_v13 = vpop.permute.xlu0 %1171 }
 0x659   :  { %v5870_v24 = vadd.f32 %v1172_v13, %v1168_v33 }
 0x65b   :  { %5100 = vtanh.f32 %v5870_v24 }
 0x665   :  { %v5101_v38 = vpop.eup %5100 }
 0x666   :  { %v1176_v39 = vmul.f32 %v5101_v38, %v1167_v21 }
 0x668   :  { %v1177_v43 = vpack.c.bf16 %v1176_v39, %v1176_v39 }
 0x6c9   :  { %v1037_v28 = vpop.permute.xlu1 %1036 }
 0x6ca   :  { %v5874_v36 = vadd.f32 %v1037_v28, %v1029_v34 }
 0x6cc   :  { %5102 = vtanh.f32 %v5874_v36 }
 0x6d6   :  { %v5103_v41 = vpop.eup %5102 }
 0x6d7   :  { %1042 = vrot.lane.b32.xlu1 %v5103_v41, %s5382_s3 }
 0x6db   :  { %1181 = vrot.lane.b32.xlu1 %v1177_v43, %s5382_s3 }
 0x749   :  { %v1043_v58 = vpop.permute.xlu1 %1042 }
 0x74a   :  { %v1045_v55 = vmul.f32 %v1043_v58, %v1028_v19 }
 0x74c   :  { %v4574_v4 = vpack.c.bf16 %v1045_v55, %v1045_v55 }
 0x74d   :  { %v1182_v51 = vpop.permute.xlu1 %1181 }
 0x74e   :  { %1050 = vrot.lane.b32.xlu0 %v4574_v4, %s5386_s0 }
 0x752   :  { %1333 = vrot.lane.b32.xlu0 %v1177_v43, %s5382_s3 }
 0x7c0   :  { %v1051_v5 = vpop.permute.xlu0 %1050 }
 0x7c1   :  { %1053 = vst.msk [vmem:[#allocation4] sm:$0xf] %vm783_vm9, %v1051_v5 }
 0x7c2   :  { %1184 = vst.msk [vmem:[#allocation4] sm:$0xf] %vm644_vm4, %v1182_v51 }
 0x7c4   :  { %v1334_v53 = vpop.permute.xlu0 %1333 }
 0x7c5   :  { %4411 = vmatmul.mubr.msk.bf16.vlgmr.msra.gmra.mrb[12].mxu1 %vm565_vm5, %v1334_v53 }
 0x7c6   :  { %4786 = vmatprep.mubr.msk.bf16.mxu1 %vm5384_vm3, %v5383_v22 }
 0x7c9   :  { %v1185_v59 = vld [vmem:[#allocation4] sm:$0xf] }
 0x7ca   :  { %4767 = vmatmul.mubr.bf16.vlgmr.msra.gmra.mrb[24].mxu0 %v1185_v59 }
 0x7cb   :  { %1679 = vmatprep.mubr.bf16.mxu0 %v5381_v35 }
 0x898   :  { %v1412_v62 = vpop.f32.mrb[12].mxu1 }
 0x899   :  { %v1419_v63 = vadd.f32 %v1412_v62, %v467_v60  ;;  %v1414_v18 = vpop.f32.mrb[13].mxu1 }
 0x89a   :  { %v1420_v19 = vadd.f32 %v1414_v18, %v469_v61  ;;  %v1416_v21 = vpop.f32.mrb[14].mxu1  ;;  %v5954_v18 = vld [vmem:[%s6807_s2 + $0x4] ss:$8 sps:$4 sm:$0xff]  }
 0x89b   :  { %v1417_v23 = vpop.f32.mrb[15].mxu1  ;;  %v4412_v26 = vmul.f32 -1.442695, %v1419_v63  ;;  %v5000_v63 = vld [vmem:[%s6809_s4] sm:$0xff]   ;;  %1647 = vmatprep.subr.bf16.mxu0 %v5954_v18 }
 0x89c   :  { %v4413_v25 = vmul.f32 -1.442695, %v1420_v19  ;;  %4771 = vmatpush3.bf16.msra.mxu1 %v5000_v63 }
 0x89d   :  { %v1284_v27 = vpop.f32.mrb[24].mxu0  ;;  %4772 = vmatprep.subr.bf16.mxu1 %v5383_v22 }
 0x89e   :  { %5104 = vpow2.f32 %v4413_v25  ;;  %v1285_v13 = vadd.f32 %v5784_v40, %v1284_v27  ;;  %v4768_v33 = vpop.f32.mrb[25].mxu0  ;;  %v5970_v25 = vld [vmem:[%s6807_s2 + $0x10] ss:$8 sps:$4 sm:$0xff]  }
 0x89f   :  { %v1287_v34 = vpop.f32.mrb[26].mxu0  ;;  %5106 = vpow2.f32 %v4412_v26  ;;  %v5977_v26 = vld [vmem:[%s6807_s2 + $0x24] ss:$8 sps:$4 sm:$0xff]   ;;  %v5002_v27 = vld [vmem:[%s6809_s4 + $0x10] sm:$0xff]   ;;  %v5987_v33 = vld [vmem:[%s6807_s2 + $0x20] ss:$8 sps:$4 sm:$0xff]  }
 0x8a0   :  { %v4401_v28 = vmul.f32 -1.442695, %v1285_v13  ;;  %v4769_v38 = vpop.f32.mrb[27].mxu0  ;;  %v5006_v34 = vld [vmem:[%s6809_s4 + $0x18] sm:$0xff]  }
 0x8a1   :  { %v5014_v38 = vld [vmem:[%s6809_s4 + $0x28] sm:$0xff]  }
 0x8a2   :  { %5108 = vpow2.f32 %v4401_v28  ;;  %v5010_v28 = vld [vmem:[%s6809_s4 + $0x20] sm:$0xff]  }
 0x8a3   :  { %5110 = vtanh.f32 %v1420_v19  ;;  %v5962_v19 = vld [vmem:[%s6807_s2 + $0x14] ss:$8 sps:$4 sm:$0xff]  }
 0x8a8   :  { %v5105_v6 = vpop.eup %5104 }
 0x8a9   :  { %v1430_v7 = vadd.f32 1.0, %v5105_v6  ;;  %v5107_v37 = vpop.eup %5106  ;;  %v6008_v6 = vld [vmem:[%s6807_s2 + $0x34] ss:$8 sps:$4 sm:$0xff]  }
 0x8aa   :  { %v1429_v41 = vadd.f32 1.0, %v5107_v37  ;;  %v5018_v37 = vld [vmem:[%s6809_s4 + $0x30] sm:$0xff]  }
 0x8ab   :  { %5112 = vrcp.f32 %v1430_v7  ;;  %v6013_v7 = vld [vmem:[%s6807_s2 + $0x30] ss:$8 sps:$4 sm:$0xff]  }
 0x8ac   :  { %v5109_v42 = vpop.eup %5108  ;;  %5114 = vtanh.f32 %v1285_v13 }
 0x8ad   :  { %v1294_v39 = vadd.f32 1.0, %v5109_v42  ;;  %v5111_v45 = vpop.eup %5110  ;;  %v5019_v42 = vld [vmem:[%s6809_s4 + $0x38] sm:$0xff]  }
 0x8af   :  { %5116 = vrcp.f32 %v1294_v39 }
 0x8b0   :  { %5118 = vrcp.f32 %v1429_v41 }
 0x8b5   :  { %v5113_v43 = vpop.eup %5112 }
 0x8b6   :  { %v5115_v44 = vpop.eup %5114  ;;  %v1436_v47 = vsel %vm358_vm2, %v5111_v45, %v5113_v43 }
 0x8b9   :  { %v5117_v57 = vpop.eup %5116 }
 0x8ba   :  { %v5925_v46 = vsel %vm5789_vm8, %v5115_v44, %v5117_v57  ;;  %v5119_v48 = vpop.eup %5118 }
 0x8bb   :  { %1300 = vrot.lane.b32.xlu1 %v5925_v46, %s5382_s3  ;;  %v1438_v58 = vmul.f32 %v5119_v48, %v1436_v47  ;;  %v1437_v51 = vmul.f32 %v5119_v48, %v5870_v24  ;;  %v1298_v59 = vmul.f32 %v5925_v46, %v5874_v36  ;;  %v5949_v24 = vld [vmem:[%s6807_s2] ss:$8 sps:$4 sm:$0xff]   ;;  %v475_v48 = vadd.f32 %v5750_v9, %v5659_v56 }
 0x8bc   :  { %v5001_v36 = vld [vmem:[%s6809_s4 + $0x8] sm:$0xff]   ;;  %1648 = vmatpush1.bf16.msra.mxu0 %v5949_v24 }
 0x8bd   :  { %1649 = vmatprep.subr.bf16.mxu0 %v5962_v19  ;;  %4773 = vmatpush3.bf16.msra.mxu1 %v5001_v36 }
 0x8be   :  { %4774 = vmatprep.subr.bf16.mxu1 %v5383_v22 }
 0x8bf   :  { %1440 = vrot.lane.b32.xlu1 %v1438_v58, %s5382_s3 }
 0x8c0   :  { %1650 = vmatpush1.bf16.msra.mxu0 %v5970_v25 }
 0x8c1   :  { %1651 = vmatprep.subr.bf16.mxu0 %v5977_v26  ;;  %4775 = vmatpush3.bf16.msra.mxu1 %v5002_v27 }
 0x8c2   :  { %4776 = vmatprep.subr.bf16.mxu1 %v5383_v22 }
 0x8c4   :  { %1652 = vmatpush1.bf16.msra.mxu0 %v5987_v33 }
 0x8c5   :  { %4777 = vmatpush3.bf16.msra.mxu1 %v5006_v34  ;;  %1653 = vmatprep.subr.bf16.mxu0 %v6008_v6 }
 0x8c6   :  { %4778 = vmatprep.subr.bf16.mxu1 %v5383_v22 }
 0x8c8   :  { %1654 = vmatpush1.bf16.msra.mxu0 %v6013_v7 }
 0x8c9   :  { %4779 = vmatpush3.bf16.msra.mxu1 %v5010_v28  ;;  %4790 = vmatprep.subr.bf16.mxu0 %v5383_v22 }
 0x8ca   :  { %4780 = vmatprep.subr.bf16.mxu1 %v5383_v22 }
 0x8cd   :  { %4781 = vmatpush3.bf16.msra.mxu1 %v5014_v38 }
 0x8ce   :  { %4782 = vmatprep.subr.bf16.mxu1 %v5383_v22 }
 0x8d1   :  { %4783 = vmatpush3.bf16.msra.mxu1 %v5018_v37 }
 0x8d2   :  { %4784 = vmatprep.subr.bf16.mxu1 %v5383_v22 }
 0x8d5   :  { %4785 = vmatpush3.bf16.msra.mxu1 %v5019_v42 }
 0x8d6   :  { %1916 = vmatprep.subr.bf16.mxu1 %v5954_v18 }
 0x92d   :  { %v1301_v55 = vpop.permute.xlu1 %1300 }
 0x92e   :  { %v1303_v4 = vmul.f32 %v1301_v55, %v5925_v46 }
 0x930   :  { %1305 = vrot.lane.b32.xlu0 %v1303_v4, %s5385_s7 }
 0x931   :  { %v1441_v5 = vpop.permute.xlu1 %1440 }
 0x932   :  { %v5935_v53 = vadd.f32 %v1441_v5, %v1437_v51 }
 0x934   :  { %5120 = vtanh.f32 %v5935_v53 }
 0x93e   :  { %v5121_v62 = vpop.eup %5120 }
 0x93f   :  { %v1445_v21 = vmul.f32 %v5121_v62, %v1436_v47 }
 0x941   :  { %v1446_v13 = vpack.c.bf16 %v1445_v21, %v1445_v21 }
 0x9a2   :  { %v1306_v60 = vpop.permute.xlu0 %1305 }
 0x9a3   :  { %v5940_v61 = vadd.f32 %v1306_v60, %v1298_v59 }
 0x9a5   :  { %5122 = vtanh.f32 %v5940_v61 }
 0x9af   :  { %v5123_v23 = vpop.eup %5122 }
 0x9b0   :  { %1311 = vrot.lane.b32.xlu0 %v5123_v23, %s5382_s3 }
 0x9b4   :  { %1450 = vrot.lane.b32.xlu0 %v1446_v13, %s5382_s3 }
 0xa22   :  { %v1312_v39 = vpop.permute.xlu0 %1311 }
 0xa23   :  { %v1314_v41 = vmul.f32 %v1312_v39, %v5925_v46  ;;  %v473_v46 = vadd.f32 %v5748_v8, %v5655_v54 }
 0xa25   :  { %v4576_v45 = vpack.c.bf16 %v1314_v41, %v1314_v41 }
 0xa26   :  { %v1451_v44 = vpop.permute.xlu0 %1450 }
 0xa27   :  { %1319 = vrot.lane.b32.xlu1 %v4576_v45, %s5386_s0 }
 0xa2b   :  { %1602 = vrot.lane.b32.xlu1 %v1446_v13, %s5382_s3 }
 0xa99   :  { %v1320_v43 = vpop.permute.xlu1 %1319 }
 0xa9a   :  { %1322 = vst.msk [vmem:[#allocation4] sm:$0xf] %vm783_vm9, %v1320_v43 }
 0xa9b   :  { %1453 = vst.msk [vmem:[#allocation4] sm:$0xf] %vm644_vm4, %v1451_v44 }
 0xa9d   :  { %v1603_v57 = vpop.permute.xlu1 %1602 }
 0xa9e   :  { %4433 = vmatmul.mubr.msk.bf16.vlgmr.msra.gmra.mrb[28].mxu0 %vm565_vm5, %v1603_v57 }
 0xa9f   :  { %4806 = vmatprep.mubr.msk.bf16.mxu0 %vm5384_vm3, %v5383_v22 }
 0xaa2   :  { %v1454_v47 = vld [vmem:[#allocation4] sm:$0xf] }
 0xaa3   :  { %4787 = vmatmul.mubr.bf16.vlgmr.msra.gmra.mrb[16].mxu1 %v1454_v47 }
 0xaa4   :  { %1917 = vmatpush1.bf16.msra.mxu1 %v5949_v24  ;;  %1948 = vmatprep.mubr.bf16.mxu1 %v5381_v35 }
 0xaa5   :  { %1918 = vmatprep.subr.bf16.mxu1 %v5962_v19 }
 0xaa8   :  { %1919 = vmatpush1.bf16.msra.mxu1 %v5970_v25 }
 0xaa9   :  { %1920 = vmatprep.subr.bf16.mxu1 %v5977_v26 }
 0xaac   :  { %1921 = vmatpush1.bf16.msra.mxu1 %v5987_v33 }
 0xaad   :  { %1922 = vmatprep.subr.bf16.mxu1 %v6008_v6 }
 0xab0   :  { %1923 = vmatpush1.bf16.msra.mxu1 %v6013_v7 }
 0xab1   :  { %4810 = vmatprep.subr.bf16.mxu1 %v5383_v22 }
 0xb71   :  { %v1681_v58 = vpop.f32.mrb[28].mxu0 }
 0xb72   :  { %v1688_v55 = vadd.f32 %v1681_v58, %v473_v46  ;;  %v1683_v4 = vpop.f32.mrb[29].mxu0 }
 0xb73   :  { %v1689_v5 = vadd.f32 %v1683_v4, %v475_v48  ;;  %v1685_v51 = vpop.f32.mrb[30].mxu0 }
 0xb74   :  { %v1686_v59 = vpop.f32.mrb[31].mxu0  ;;  %v4434_v62 = vmul.f32 -1.442695, %v1688_v55 }
 0xb75   :  { %v4435_v60 = vmul.f32 -1.442695, %v1689_v5 }
 0xb76   :  { %v1553_v63 = vpop.f32.mrb[16].mxu1 }
 0xb77   :  { %5124 = vpow2.f32 %v4435_v60  ;;  %v1554_v36 = vadd.f32 %v5784_v40, %v1553_v63  ;;  %v4788_v21 = vpop.f32.mrb[17].mxu1 }
 0xb78   :  { %v1556_v23 = vpop.f32.mrb[18].mxu1  ;;  %5126 = vpow2.f32 %v4434_v62  ;;  %v5020_v62 = vld [vmem:[%s6809_s4] sm:$0xff]  }
 0xb79   :  { %v4423_v27 = vmul.f32 -1.442695, %v1554_v36  ;;  %v4789_v13 = vpop.f32.mrb[19].mxu1  ;;  %4791 = vmatpush3.bf16.msra.mxu0 %v5020_v62  ;;  %v5023_v23 = vld [vmem:[%s6809_s4 + $0x18] sm:$0xff]  }
 0xb7a   :  { %4792 = vmatprep.subr.bf16.mxu0 %v5383_v22  ;;  %v5025_v13 = vld [vmem:[%s6809_s4 + $0x28] sm:$0xff]  }
 0xb7b   :  { %5128 = vpow2.f32 %v4423_v27  ;;  %v5024_v27 = vld [vmem:[%s6809_s4 + $0x20] sm:$0xff]  }
 0xb7c   :  { %5130 = vtanh.f32 %v1689_v5 }
 0xb81   :  { %v5125_v8 = vpop.eup %5124 }
 0xb82   :  { %v1699_v9 = vadd.f32 1.0, %v5125_v8  ;;  %v5127_v34 = vpop.eup %5126  ;;  %v5026_v8 = vld [vmem:[%s6809_s4 + $0x30] sm:$0xff]  }
 0xb83   :  { %v1698_v37 = vadd.f32 1.0, %v5127_v34 }
 0xb84   :  { %5132 = vrcp.f32 %v1699_v9  ;;  %v5027_v9 = vld [vmem:[%s6809_s4 + $0x38] sm:$0xff]  }
 0xb85   :  { %v5129_v28 = vpop.eup %5128  ;;  %5134 = vtanh.f32 %v1554_v36 }
 0xb86   :  { %v1563_v38 = vadd.f32 1.0, %v5129_v28  ;;  %v5131_v42 = vpop.eup %5130 }
 0xb88   :  { %5136 = vrcp.f32 %v1563_v38 }
 0xb89   :  { %5138 = vrcp.f32 %v1698_v37 }
 0xb8e   :  { %v5133_v39 = vpop.eup %5132 }
 0xb8f   :  { %v5135_v41 = vpop.eup %5134  ;;  %v1705_v44 = vsel %vm358_vm2, %v5131_v42, %v5133_v39 }
 0xb92   :  { %v5137_v45 = vpop.eup %5136 }
 0xb93   :  { %v1566_v43 = vsel %vm5789_vm8, %v5135_v41, %v5137_v45  ;;  %v5139_v57 = vpop.eup %5138  ;;  %v477_v45 = vadd.f32 %v5752_v10, %v5655_v54 }
 0xb94   :  { %1569 = vrot.lane.b32.xlu0 %v1566_v43, %s5382_s3  ;;  %v1707_v47 = vmul.f32 %v5139_v57, %v1705_v44  ;;  %v1706_v55 = vmul.f32 %v5139_v57, %v5935_v53  ;;  %v1567_v5 = vmul.f32 %v1566_v43, %v5940_v61  ;;  %v5021_v53 = vld [vmem:[%s6809_s4 + $0x8] sm:$0xff]   ;;  %v5022_v61 = vld [vmem:[%s6809_s4 + $0x10] sm:$0xff]  }
 0xb95   :  { %4793 = vmatpush3.bf16.msra.mxu0 %v5021_v53 }
 0xb96   :  { %4794 = vmatprep.subr.bf16.mxu0 %v5383_v22 }
 0xb98   :  { %1709 = vrot.lane.b32.xlu0 %v1707_v47, %s5382_s3 }
 0xb99   :  { %4795 = vmatpush3.bf16.msra.mxu0 %v5022_v61 }
 0xb9a   :  { %4796 = vmatprep.subr.bf16.mxu0 %v5383_v22 }
 0xb9d   :  { %4797 = vmatpush3.bf16.msra.mxu0 %v5023_v23 }
 0xb9e   :  { %4798 = vmatprep.subr.bf16.mxu0 %v5383_v22 }
 0xba1   :  { %4799 = vmatpush3.bf16.msra.mxu0 %v5024_v27 }
 0xba2   :  { %4800 = vmatprep.subr.bf16.mxu0 %v5383_v22 }
 0xba5   :  { %4801 = vmatpush3.bf16.msra.mxu0 %v5025_v13 }
 0xba6   :  { %4802 = vmatprep.subr.bf16.mxu0 %v5383_v22 }
 0xba9   :  { %4803 = vmatpush3.bf16.msra.mxu0 %v5026_v8 }
 0xbaa   :  { %4804 = vmatprep.subr.bf16.mxu0 %v5383_v22 }
 0xbad   :  { %4805 = vmatpush3.bf16.msra.mxu0 %v5027_v9 }
 0xbae   :  { %2185 = vmatprep.subr.bf16.mxu0 %v5954_v18 }
 0xc06   :  { %v1570_v46 = vpop.permute.xlu0 %1569 }
 0xc07   :  { %v1572_v48 = vmul.f32 %v1570_v46, %v1566_v43 }
 0xc09   :  { %1574 = vrot.lane.b32.xlu1 %v1572_v48, %s5385_s7 }
 0xc0a   :  { %v1710_v58 = vpop.permute.xlu0 %1709 }
 0xc0b   :  { %v6056_v4 = vadd.f32 %v1710_v58, %v1706_v55 }
 0xc0d   :  { %5140 = vtanh.f32 %v6056_v4 }
 0xc17   :  { %v5141_v60 = vpop.eup %5140 }
 0xc18   :  { %v1714_v63 = vmul.f32 %v5141_v60, %v1705_v44 }
 0xc1a   :  { %v1715_v21 = vpack.c.bf16 %v1714_v63, %v1714_v63 }
 0xc7b   :  { %v1575_v51 = vpop.permute.xlu1 %1574 }
 0xc7c   :  { %v6060_v59 = vadd.f32 %v1575_v51, %v1567_v5 }
 0xc7e   :  { %5142 = vtanh.f32 %v6060_v59 }
 0xc88   :  { %v5143_v36 = vpop.eup %5142 }
 0xc89   :  { %1580 = vrot.lane.b32.xlu1 %v5143_v36, %s5382_s3 }
 0xc8d   :  { %1719 = vrot.lane.b32.xlu1 %v1715_v21, %s5382_s3 }
 0xcfb   :  { %v1581_v34 = vpop.permute.xlu1 %1580 }
 0xcfc   :  { %v1583_v28 = vmul.f32 %v1581_v34, %v1566_v43  ;;  %v479_v43 = vadd.f32 %v5754_v11, %v5659_v56 }
 0xcfe   :  { %v4578_v38 = vpack.c.bf16 %v1583_v28, %v1583_v28 }
 0xcff   :  { %v1720_v42 = vpop.permute.xlu1 %1719 }
 0xd00   :  { %1588 = vrot.lane.b32.xlu0 %v4578_v38, %s5386_s0 }
 0xd04   :  { %1871 = vrot.lane.b32.xlu0 %v1715_v21, %s5382_s3 }
 0xd72   :  { %v1589_v37 = vpop.permute.xlu0 %1588 }
 0xd73   :  { %1591 = vst.msk [vmem:[#allocation4] sm:$0xf] %vm783_vm9, %v1589_v37 }
 0xd74   :  { %1722 = vst.msk [vmem:[#allocation4] sm:$0xf] %vm644_vm4, %v1720_v42 }
 0xd76   :  { %v1872_v39 = vpop.permute.xlu0 %1871 }
 0xd77   :  { %4455 = vmatmul.mubr.msk.bf16.vlgmr.msra.gmra.mrb[20].mxu1 %vm565_vm5, %v1872_v39 }
 0xd78   :  { %4826 = vmatprep.mubr.msk.bf16.mxu1 %vm5384_vm3, %v5383_v22 }
 0xd7b   :  { %v1723_v41 = vld [vmem:[#allocation4] sm:$0xf] }
 0xd7c   :  { %4807 = vmatmul.mubr.bf16.vlgmr.msra.gmra.mrb[32].mxu0 %v1723_v41 }
 0xd7d   :  { %2186 = vmatpush1.bf16.msra.mxu0 %v5949_v24  ;;  %2217 = vmatprep.mubr.bf16.mxu0 %v5381_v35 }
 0xd7e   :  { %2187 = vmatprep.subr.bf16.mxu0 %v5962_v19 }
 0xd81   :  { %2188 = vmatpush1.bf16.msra.mxu0 %v5970_v25 }
 0xd82   :  { %2189 = vmatprep.subr.bf16.mxu0 %v5977_v26 }
 0xd85   :  { %2190 = vmatpush1.bf16.msra.mxu0 %v5987_v33 }
 0xd86   :  { %2191 = vmatprep.subr.bf16.mxu0 %v6008_v6 }
 0xd89   :  { %2192 = vmatpush1.bf16.msra.mxu0 %v6013_v7 }
 0xd8a   :  { %4830 = vmatprep.subr.bf16.mxu0 %v5383_v22 }
 0xe4a   :  { %v1950_v44 = vpop.f32.mrb[20].mxu1 }
 0xe4b   :  { %v1957_v57 = vadd.f32 %v1950_v44, %v477_v45  ;;  %v1952_v47 = vpop.f32.mrb[21].mxu1 }
 0xe4c   :  { %v1958_v46 = vadd.f32 %v1952_v47, %v479_v43  ;;  %v1954_v48 = vpop.f32.mrb[22].mxu1 }
 0xe4d   :  { %v1955_v58 = vpop.f32.mrb[23].mxu1  ;;  %v4456_v5 = vmul.f32 -1.442695, %v1957_v57  ;;  %v5028_v48 = vld [vmem:[%s6809_s4] sm:$0xff]  }
 0xe4e   :  { %v4457_v55 = vmul.f32 -1.442695, %v1958_v46  ;;  %4811 = vmatpush3.bf16.msra.mxu1 %v5028_v48 }
 0xe4f   :  { %v1822_v51 = vpop.f32.mrb[32].mxu0  ;;  %4812 = vmatprep.subr.bf16.mxu1 %v5383_v22 }
 0xe50   :  { %5144 = vpow2.f32 %v4457_v55  ;;  %v1823_v60 = vadd.f32 %v5784_v40, %v1822_v51  ;;  %v4808_v62 = vpop.f32.mrb[33].mxu0  ;;  %v5031_v51 = vld [vmem:[%s6809_s4 + $0x18] sm:$0xff]  }
 0xe51   :  { %v1825_v53 = vpop.f32.mrb[34].mxu0  ;;  %5146 = vpow2.f32 %v4456_v5  ;;  %v5033_v62 = vld [vmem:[%s6809_s4 + $0x28] sm:$0xff]  }
 0xe52   :  { %v4445_v63 = vmul.f32 -1.442695, %v1823_v60  ;;  %v4809_v36 = vpop.f32.mrb[35].mxu0  ;;  %v5034_v53 = vld [vmem:[%s6809_s4 + $0x30] sm:$0xff]  }
 0xe54   :  { %5148 = vpow2.f32 %v4445_v63  ;;  %v5035_v63 = vld [vmem:[%s6809_s4 + $0x38] sm:$0xff]  }
 0xe55   :  { %5150 = vtanh.f32 %v1958_v46 }
 0xe5a   :  { %v5145_v10 = vpop.eup %5144 }
 0xe5b   :  { %v1968_v11 = vadd.f32 1.0, %v5145_v10  ;;  %v5147_v61 = vpop.eup %5146 }
 0xe5c   :  { %v1967_v27 = vadd.f32 1.0, %v5147_v61 }
 0xe5d   :  { %5152 = vrcp.f32 %v1968_v11 }
 0xe5e   :  { %v5149_v21 = vpop.eup %5148  ;;  %5154 = vtanh.f32 %v1823_v60  ;;  %v5032_v60 = vld [vmem:[%s6809_s4 + $0x20] sm:$0xff]  }
 0xe5f   :  { %v1832_v23 = vadd.f32 1.0, %v5149_v21  ;;  %v5151_v13 = vpop.eup %5150 }
 0xe61   :  { %5156 = vrcp.f32 %v1832_v23 }
 0xe62   :  { %5158 = vrcp.f32 %v1967_v27  ;;  %v483_v27 = vadd.f32 %v5756_v12, %v5655_v54 }
 0xe67   :  { %v5153_v8 = vpop.eup %5152 }
 0xe68   :  { %v5155_v40 = vpop.eup %5154  ;;  %v1974_v28 = vsel %vm358_vm2, %v5151_v13, %v5153_v8 }
 0xe6b   :  { %v5157_v9 = vpop.eup %5156 }
 0xe6c   :  { %v1835_v34 = vsel %vm5789_vm8, %v5155_v40, %v5157_v9  ;;  %v5159_v38 = vpop.eup %5158 }
 0xe6d   :  { %1838 = vrot.lane.b32.xlu1 %v1835_v34, %s5382_s3  ;;  %v1976_v37 = vmul.f32 %v5159_v38, %v1974_v28  ;;  %v1975_v45 = vmul.f32 %v5159_v38, %v6056_v4  ;;  %v1836_v44 = vmul.f32 %v1835_v34, %v6060_v59  ;;  %v5029_v4 = vld [vmem:[%s6809_s4 + $0x8] sm:$0xff]   ;;  %v5030_v59 = vld [vmem:[%s6809_s4 + $0x10] sm:$0xff]  }
 0xe6e   :  { %4813 = vmatpush3.bf16.msra.mxu1 %v5029_v4 }
 0xe6f   :  { %4814 = vmatprep.subr.bf16.mxu1 %v5383_v22 }
 0xe71   :  { %1978 = vrot.lane.b32.xlu1 %v1976_v37, %s5382_s3 }
 0xe72   :  { %4815 = vmatpush3.bf16.msra.mxu1 %v5030_v59 }
 0xe73   :  { %4816 = vmatprep.subr.bf16.mxu1 %v5383_v22 }
 0xe76   :  { %4817 = vmatpush3.bf16.msra.mxu1 %v5031_v51 }
 0xe77   :  { %4818 = vmatprep.subr.bf16.mxu1 %v5383_v22 }
 0xe7a   :  { %4819 = vmatpush3.bf16.msra.mxu1 %v5032_v60 }
 0xe7b   :  { %4820 = vmatprep.subr.bf16.mxu1 %v5383_v22 }
 0xe7e   :  { %4821 = vmatpush3.bf16.msra.mxu1 %v5033_v62 }
 0xe7f   :  { %4822 = vmatprep.subr.bf16.mxu1 %v5383_v22 }
 0xe82   :  { %4823 = vmatpush3.bf16.msra.mxu1 %v5034_v53 }
 0xe83   :  { %4824 = vmatprep.subr.bf16.mxu1 %v5383_v22 }
 0xe86   :  { %4825 = vmatpush3.bf16.msra.mxu1 %v5035_v63 }
 0xe87   :  { %2454 = vmatprep.subr.bf16.mxu1 %v5954_v18 }
 0xedf   :  { %v1839_v42 = vpop.permute.xlu1 %1838 }
 0xee0   :  { %v1841_v39 = vmul.f32 %v1839_v42, %v1835_v34 }
 0xee2   :  { %1843 = vrot.lane.b32.xlu0 %v1841_v39, %s5385_s7 }
 0xee3   :  { %v1979_v41 = vpop.permute.xlu1 %1978 }
 0xee4   :  { %v6126_v43 = vadd.f32 %v1979_v41, %v1975_v45 }
 0xee6   :  { %5160 = vtanh.f32 %v6126_v43 }
 0xef0   :  { %v5161_v46 = vpop.eup %5160 }
 0xef1   :  { %v1983_v58 = vmul.f32 %v5161_v46, %v1974_v28 }
 0xef3   :  { %v1984_v5 = vpack.c.bf16 %v1983_v58, %v1983_v58 }
 0xf54   :  { %v1844_v57 = vpop.permute.xlu0 %1843 }
 0xf55   :  { %v6130_v47 = vadd.f32 %v1844_v57, %v1836_v44 }
 0xf57   :  { %5162 = vtanh.f32 %v6130_v47 }
 0xf61   :  { %v5163_v55 = vpop.eup %5162 }
 0xf62   :  { %1849 = vrot.lane.b32.xlu0 %v5163_v55, %s5382_s3 }
 0xf66   :  { %1988 = vrot.lane.b32.xlu0 %v1984_v5, %s5382_s3 }
 0xfd4   :  { %v1850_v36 = vpop.permute.xlu0 %1849 }
 0xfd5   :  { %v1852_v10 = vmul.f32 %v1850_v36, %v1835_v34 }
 0xfd7   :  { %v4580_v11 = vpack.c.bf16 %v1852_v10, %v1852_v10 }
 0xfd8   :  { %v1989_v21 = vpop.permute.xlu0 %1988 }
 0xfd9   :  { %1857 = vrot.lane.b32.xlu1 %v4580_v11, %s5386_s0 }
 0xfdd   :  { %2140 = vrot.lane.b32.xlu1 %v1984_v5, %s5382_s3 }
0x104b   :  { %v1858_v61 = vpop.permute.xlu1 %1857 }
0x104c   :  { %1860 = vst.msk [vmem:[#allocation4] sm:$0xf] %vm783_vm9, %v1858_v61 }
0x104d   :  { %1991 = vst.msk [vmem:[#allocation4] sm:$0xf] %vm644_vm4, %v1989_v21  ;;  %v5036_v21 = vld [vmem:[%s6809_s4] sm:$0xff]  }
0x104f   :  { %v2141_v23 = vpop.permute.xlu1 %2140 }
0x1050   :  { %4477 = vmatmul.mubr.msk.bf16.vlgmr.msra.gmra.mrb[36].mxu0 %vm565_vm5, %v2141_v23 }
0x1051   :  { %4846 = vmatprep.mubr.msk.bf16.mxu0 %vm5384_vm3, %v5383_v22  ;;  %4831 = vmatpush3.bf16.msra.mxu0 %v5036_v21 }
0x1052   :  { %4832 = vmatprep.subr.bf16.mxu0 %v5383_v22 }
0x1054   :  { %v1992_v18 = vld [vmem:[#allocation4] sm:$0xf] }
0x1055   :  { %4827 = vmatmul.mubr.bf16.vlgmr.msra.gmra.mrb[24].mxu1 %v1992_v18 }
0x1056   :  { %2455 = vmatpush1.bf16.msra.mxu1 %v5949_v24  ;;  %2486 = vmatprep.mubr.bf16.mxu1 %v5381_v35  ;;  %v485_v24 = vadd.f32 %v5758_v15, %v5659_v56 }
0x1057   :  { %2456 = vmatprep.subr.bf16.mxu1 %v5962_v19 }
0x105a   :  { %2457 = vmatpush1.bf16.msra.mxu1 %v5970_v25 }
0x105b   :  { %2458 = vmatprep.subr.bf16.mxu1 %v5977_v26 }
0x105e   :  { %2459 = vmatpush1.bf16.msra.mxu1 %v5987_v33 }
0x105f   :  { %2460 = vmatprep.subr.bf16.mxu1 %v6008_v6  ;;  %v6190_v6 = vld [vmem:[%s6810_s5] ss:$0 sm:$0xff] }
0x1062   :  { %2461 = vmatpush1.bf16.msra.mxu1 %v6013_v7 }
0x1063   :  { %4850 = vmatprep.subr.bf16.mxu1 %v5383_v22 }
0x1123   :  { %v2219_v13 = vpop.f32.mrb[36].mxu0 }
0x1124   :  { %v2226_v19 = vadd.f32 %v2219_v13, %v483_v27  ;;  %v2221_v8 = vpop.f32.mrb[37].mxu0  ;;  %v5040_v13 = vld [vmem:[%s6809_s4 + $0x20] sm:$0xff]  }
0x1125   :  { %v2227_v25 = vadd.f32 %v2221_v8, %v485_v24  ;;  %v2223_v40 = vpop.f32.mrb[38].mxu0  ;;  %v5039_v24 = vld [vmem:[%s6809_s4 + $0x18] sm:$0xff]   ;;  %v5042_v8 = vld [vmem:[%s6809_s4 + $0x30] sm:$0xff]  }
0x1126   :  { %v2224_v26 = vpop.f32.mrb[39].mxu0  ;;  %v4478_v33 = vmul.f32 -1.442695, %v2226_v19  ;;  %v5041_v19 = vld [vmem:[%s6809_s4 + $0x28] sm:$0xff]  }
0x1127   :  { %v4479_v9 = vmul.f32 -1.442695, %v2227_v25 }
0x1128   :  { %v2091_v34 = vpop.f32.mrb[24].mxu1 }
0x1129   :  { %5164 = vpow2.f32 %v4479_v9  ;;  %v2092_v12 = vadd.f32 %v6190_v6, %v2091_v34  ;;  %v4828_v7 = vpop.f32.mrb[25].mxu1 }
0x112a   :  { %v2094_v28 = vpop.f32.mrb[26].mxu1  ;;  %5166 = vpow2.f32 %v4478_v33 }
0x112b   :  { %v4467_v15 = vmul.f32 -1.442695, %v2092_v12  ;;  %v4829_v38 = vpop.f32.mrb[27].mxu1  ;;  %v487_v28 = vadd.f32 %v5760_v16, %v5655_v54 }
0x112d   :  { %5168 = vpow2.f32 %v4467_v15  ;;  %v489_v15 = vadd.f32 %v5762_v17, %v5659_v56 }
0x112e   :  { %5170 = vtanh.f32 %v2227_v25  ;;  %v5043_v25 = vld [vmem:[%s6809_s4 + $0x38] sm:$0xff]  }
0x1133   :  { %v5165_v37 = vpop.eup %5164 }
0x1134   :  { %v2237_v42 = vadd.f32 1.0, %v5165_v37  ;;  %v5167_v39 = vpop.eup %5166 }
0x1135   :  { %v2236_v44 = vadd.f32 1.0, %v5167_v39 }
0x1136   :  { %5172 = vrcp.f32 %v2237_v42 }
0x1137   :  { %v5169_v41 = vpop.eup %5168  ;;  %5174 = vtanh.f32 %v2092_v12 }
0x1138   :  { %v2101_v45 = vadd.f32 1.0, %v5169_v41  ;;  %v5171_v57 = vpop.eup %5170 }
0x113a   :  { %5176 = vrcp.f32 %v2101_v45 }
0x113b   :  { %5178 = vrcp.f32 %v2236_v44 }
0x1140   :  { %v5173_v46 = vpop.eup %5172 }
0x1141   :  { %v5175_v48 = vpop.eup %5174  ;;  %v2243_v55 = vsel %vm358_vm2, %v5171_v57, %v5173_v46 }
0x1144   :  { %v5177_v4 = vpop.eup %5176 }
0x1145   :  { %v2104_v58 = vsel %vm5789_vm8, %v5175_v48, %v5177_v4  ;;  %v5179_v59 = vpop.eup %5178 }
0x1146   :  { %2107 = vrot.lane.b32.xlu0 %v2104_v58, %s5382_s3  ;;  %v2245_v5 = vmul.f32 %v5179_v59, %v2243_v55  ;;  %v2244_v53 = vmul.f32 %v5179_v59, %v6126_v43  ;;  %v2105_v36 = vmul.f32 %v2104_v58, %v6130_v47  ;;  %v5037_v43 = vld [vmem:[%s6809_s4 + $0x8] sm:$0xff]   ;;  %v5038_v47 = vld [vmem:[%s6809_s4 + $0x10] sm:$0xff]  }
0x1147   :  { %4833 = vmatpush3.bf16.msra.mxu0 %v5037_v43 }
0x1148   :  { %4834 = vmatprep.subr.bf16.mxu0 %v5383_v22 }
0x114a   :  { %2247 = vrot.lane.b32.xlu0 %v2245_v5, %s5382_s3 }
0x114b   :  { %4835 = vmatpush3.bf16.msra.mxu0 %v5038_v47 }
0x114c   :  { %4836 = vmatprep.subr.bf16.mxu0 %v5383_v22 }
0x114f   :  { %4837 = vmatpush3.bf16.msra.mxu0 %v5039_v24 }
0x1150   :  { %4838 = vmatprep.subr.bf16.mxu0 %v5383_v22 }
0x1153   :  { %4839 = vmatpush3.bf16.msra.mxu0 %v5040_v13 }
0x1154   :  { %4840 = vmatprep.subr.bf16.mxu0 %v5383_v22 }
0x1157   :  { %4841 = vmatpush3.bf16.msra.mxu0 %v5041_v19 }
0x1158   :  { %4842 = vmatprep.subr.bf16.mxu0 %v5383_v22 }
0x115b   :  { %4843 = vmatpush3.bf16.msra.mxu0 %v5042_v8 }
0x115c   :  { %4844 = vmatprep.subr.bf16.mxu0 %v5383_v22 }
0x115f   :  { %4845 = vmatpush3.bf16.msra.mxu0 %v5043_v25  ;;  %v5044_v25 = vld [vmem:[%s6809_s4] sm:$0xff]  }
0x11b8   :  { %v2108_v51 = vpop.permute.xlu0 %2107 }
0x11b9   :  { %v2110_v60 = vmul.f32 %v2108_v51, %v2104_v58 }
0x11bb   :  { %2112 = vrot.lane.b32.xlu1 %v2110_v60, %s5385_s7 }
0x11bc   :  { %v2248_v62 = vpop.permute.xlu0 %2247 }
0x11bd   :  { %v6201_v63 = vadd.f32 %v2248_v62, %v2244_v53 }
0x11bf   :  { %5180 = vtanh.f32 %v6201_v63 }
0x11c9   :  { %v5181_v61 = vpop.eup %5180 }
0x11ca   :  { %v2252_v23 = vmul.f32 %v5181_v61, %v2243_v55 }
0x11cc   :  { %v2253_v27 = vpack.c.bf16 %v2252_v23, %v2252_v23 }
0x122d   :  { %v2113_v10 = vpop.permute.xlu1 %2112 }
0x122e   :  { %v6205_v11 = vadd.f32 %v2113_v10, %v2105_v36 }
0x1230   :  { %5182 = vtanh.f32 %v6205_v11 }
0x123a   :  { %v5183_v18 = vpop.eup %5182 }
0x123b   :  { %2118 = vrot.lane.b32.xlu1 %v5183_v18, %s5382_s3 }
0x123f   :  { %2257 = vrot.lane.b32.xlu1 %v2253_v27, %s5382_s3 }
0x12ad   :  { %v2119_v40 = vpop.permute.xlu1 %2118 }
0x12ae   :  { %v2121_v26 = vmul.f32 %v2119_v40, %v2104_v58  ;;  %v5045_v40 = vld [vmem:[%s6809_s4 + $0x8] sm:$0xff]  }
0x12b0   :  { %v4582_v9 = vpack.c.bf16 %v2121_v26, %v2121_v26 }
0x12b1   :  { %v2258_v34 = vpop.permute.xlu1 %2257 }
0x12b2   :  { %2126 = vrot.lane.b32.xlu0 %v4582_v9, %s5386_s0 }
0x12b6   :  { %2409 = vrot.lane.b32.xlu0 %v2253_v27, %s5382_s3 }
0x1324   :  { %v2127_v33 = vpop.permute.xlu0 %2126 }
0x1325   :  { %2129 = vst.msk [vmem:[#allocation4] sm:$0xf] %vm783_vm9, %v2127_v33  ;;  %v5047_v33 = vld [vmem:[%s6809_s4 + $0x18] sm:$0xff]  }
0x1326   :  { %2260 = vst.msk [vmem:[#allocation4] sm:$0xf] %vm644_vm4, %v2258_v34 }
0x1328   :  { %v2410_v12 = vpop.permute.xlu0 %2409 }
0x1329   :  { %4499 = vmatmul.mubr.msk.bf16.vlgmr.msra.gmra.mrb[28].mxu1 %vm565_vm5, %v2410_v12  ;;  %v5048_v12 = vld [vmem:[%s6809_s4 + $0x20] sm:$0xff]  }
0x132a   :  { %4866 = vmatprep.mubr.msk.bf16.mxu1 %vm5384_vm3, %v5383_v22  ;;  %4851 = vmatpush3.bf16.msra.mxu1 %v5044_v25 }
0x132b   :  { %4852 = vmatprep.subr.bf16.mxu1 %v5383_v22 }
0x132d   :  { %v2261_v7 = vld [vmem:[#allocation4] sm:$0xf] }
0x132e   :  { %4847 = vmatmul.mubr.bf16.vlgmr.msra.gmra.mrb[40].mxu0 %v2261_v7  ;;  %4853 = vmatpush3.bf16.msra.mxu1 %v5045_v40  ;;  %v5049_v7 = vld [vmem:[%s6809_s4 + $0x28] sm:$0xff]  }
0x132f   :  { %4854 = vmatprep.subr.bf16.mxu1 %v5383_v22 }
0x13fc   :  { %v2488_v38 = vpop.f32.mrb[28].mxu1 }
0x13fd   :  { %v2495_v37 = vadd.f32 %v2488_v38, %v487_v28  ;;  %v2490_v42 = vpop.f32.mrb[29].mxu1  ;;  %v5050_v28 = vld [vmem:[%s6809_s4 + $0x30] sm:$0xff]  }
0x13fe   :  { %v2496_v39 = vadd.f32 %v2490_v42, %v489_v15  ;;  %v2492_v41 = vpop.f32.mrb[30].mxu1  ;;  %v5051_v15 = vld [vmem:[%s6809_s4 + $0x38] sm:$0xff]  }
0x13ff   :  { %v2493_v45 = vpop.f32.mrb[31].mxu1  ;;  %v4500_v57 = vmul.f32 -1.442695, %v2495_v37 }
0x1400   :  { %v4501_v44 = vmul.f32 -1.442695, %v2496_v39 }
0x1401   :  { %v2360_v46 = vpop.f32.mrb[40].mxu0 }
0x1402   :  { %5184 = vpow2.f32 %v4501_v44  ;;  %v2361_v48 = vadd.f32 %v6190_v6, %v2360_v46  ;;  %v4848_v4 = vpop.f32.mrb[41].mxu0 }
0x1403   :  { %v2363_v58 = vpop.f32.mrb[42].mxu0  ;;  %5186 = vpow2.f32 %v4500_v57 }
0x1404   :  { %v4489_v55 = vmul.f32 -1.442695, %v2361_v48  ;;  %v4849_v59 = vpop.f32.mrb[43].mxu0 }
0x1406   :  { %5188 = vpow2.f32 %v4489_v55 }
0x1407   :  { %5190 = vtanh.f32 %v2496_v39 }
0x140c   :  { %v5185_v54 = vpop.eup %5184 }
0x140d   :  { %v2506_v56 = vadd.f32 1.0, %v5185_v54  ;;  %v5187_v16 = vpop.eup %5186 }
0x140e   :  { %v2505_v51 = vadd.f32 1.0, %v5187_v16 }
0x140f   :  { %5192 = vrcp.f32 %v2506_v56 }
0x1410   :  { %v5189_v17 = vpop.eup %5188  ;;  %5194 = vtanh.f32 %v2361_v48 }
0x1411   :  { %v2370_v5 = vadd.f32 1.0, %v5189_v17  ;;  %v5191_v60 = vpop.eup %5190 }
0x1413   :  { %5196 = vrcp.f32 %v2370_v5 }
0x1414   :  { %5198 = vrcp.f32 %v2505_v51 }
0x1419   :  { %v5193_v62 = vpop.eup %5192 }
0x141a   :  { %v5195_v53 = vpop.eup %5194  ;;  %v2512_v61 = vsel %vm358_vm2, %v5191_v60, %v5193_v62 }
0x141d   :  { %v5197_v36 = vpop.eup %5196 }
0x141e   :  { %v2373_v10 = vsel %vm5789_vm8, %v5195_v53, %v5197_v36  ;;  %v5199_v21 = vpop.eup %5198 }
0x141f   :  { %2376 = vrot.lane.b32.xlu1 %v2373_v10, %s5382_s3  ;;  %v2514_v43 = vmul.f32 %v5199_v21, %v2512_v61  ;;  %v2513_v27 = vmul.f32 %v5199_v21, %v6201_v63  ;;  %v2374_v13 = vmul.f32 %v2373_v10, %v6205_v11  ;;  %v5046_v63 = vld [vmem:[%s6809_s4 + $0x10] sm:$0xff]  }
0x1420   :  { %4855 = vmatpush3.bf16.msra.mxu1 %v5046_v63 }
0x1421   :  { %4856 = vmatprep.subr.bf16.mxu1 %v5383_v22 }
0x1423   :  { %2516 = vrot.lane.b32.xlu1 %v2514_v43, %s5382_s3 }
0x1424   :  { %4857 = vmatpush3.bf16.msra.mxu1 %v5047_v33 }
0x1425   :  { %4858 = vmatprep.subr.bf16.mxu1 %v5383_v22 }
0x1428   :  { %4859 = vmatpush3.bf16.msra.mxu1 %v5048_v12 }
0x1429   :  { %4860 = vmatprep.subr.bf16.mxu1 %v5383_v22 }
0x142c   :  { %4861 = vmatpush3.bf16.msra.mxu1 %v5049_v7 }
0x142d   :  { %4862 = vmatprep.subr.bf16.mxu1 %v5383_v22 }
0x1430   :  { %4863 = vmatpush3.bf16.msra.mxu1 %v5050_v28 }
0x1431   :  { %4864 = vmatprep.subr.bf16.mxu1 %v5383_v22 }
0x1434   :  { %4865 = vmatpush3.bf16.msra.mxu1 %v5051_v15 }
0x1491   :  { %v2377_v23 = vpop.permute.xlu1 %2376 }
0x1492   :  { %v2379_v18 = vmul.f32 %v2377_v23, %v2373_v10 }
0x1494   :  { %2381 = vrot.lane.b32.xlu0 %v2379_v18, %s5385_s7 }
0x1495   :  { %v2517_v47 = vpop.permute.xlu1 %2516 }
0x1496   :  { %v2519_v24 = vadd.f32 %v2517_v47, %v2513_v27 }
0x1498   :  { %5200 = vtanh.f32 %v2519_v24 }
0x14a2   :  { %v5201_v26 = vpop.eup %5200 }
0x14a3   :  { %v2521_v11 = vmul.f32 %v5201_v26, %v2512_v61 }
0x14a5   :  { %v4585_v34 = vpack.c.bf16 %v2521_v11, %v2521_v11 }
0x1506   :  { %v2382_v19 = vpop.permute.xlu0 %2381 }
0x1507   :  { %v2384_v8 = vadd.f32 %v2382_v19, %v2374_v13 }
0x1509   :  { %5202 = vtanh.f32 %v2384_v8 }
0x1513   :  { %v5203_v9 = vpop.eup %5202 }
0x1514   :  { %2387 = vrot.lane.b32.xlu0 %v5203_v9, %s5382_s3 }
0x1518   :  { %2526 = vrot.lane.b32.xlu0 %v4585_v34, %s5382_s3 }
0x1586   :  { %v2388_v38 = vpop.permute.xlu0 %2387 }
0x1587   :  { %v2390_v37 = vmul.f32 %v2388_v38, %v2373_v10 }
0x1589   :  { %v4584_v42 = vpack.c.bf16 %v2390_v37, %v2390_v37 }
0x158a   :  { %v2527_v41 = vpop.permute.xlu0 %2526 }
0x158b   :  { %2395 = vrot.lane.b32.xlu1 %v4584_v42, %s5386_s0 }
0x15fd   :  { %v2396_v39 = vpop.permute.xlu1 %2395 }
0x15fe   :  { %2398 = vst.msk [vmem:[#allocation4] sm:$0xf] %vm783_vm9, %v2396_v39 }
0x15ff   :  { %2529 = vst.msk [vmem:[#allocation4] sm:$0xf] %vm644_vm4, %v2527_v41 }
0x1606   :  { %v2530_v45 = vld [vmem:[#allocation4] sm:$0xf] }
0x1607   :  { %4867 = vmatmul.mubr.bf16.vlgmr.msra.gmra.mrb[32].mxu1 %v2530_v45 }
0x16da   :  { %v2629_v44 = vpop.f32.mrb[32].mxu1 }
0x16db   :  { %v2630_v57 = vadd.f32 %v6190_v6, %v2629_v44  ;;  %v4868_v46 = vpop.f32.mrb[33].mxu1 }
0x16dc   :  { %v2632_v48 = vpop.f32.mrb[34].mxu1 }
0x16dd   :  { %v4511_v4 = vmul.f32 -1.442695, %v2630_v57  ;;  %v4869_v58 = vpop.f32.mrb[35].mxu1 }
0x16df   :  { %5204 = vpow2.f32 %v4511_v4 }
0x16e0   :  { %5206 = vtanh.f32 %v2630_v57 }
0x16e9   :  { %v5205_v55 = vpop.eup %5204 }
0x16ea   :  { %v2639_v59 = vadd.f32 1.0, %v5205_v55  ;;  %v5207_v54 = vpop.eup %5206 }
0x16ec   :  { %5208 = vrcp.f32 %v2639_v59 }
0x16f6   :  { %v5209_v56 = vpop.eup %5208 }
0x16f7   :  { %v2642_v16 = vsel %vm5789_vm8, %v5207_v54, %v5209_v56 }
0x16f8   :  { %2645 = vrot.lane.b32.xlu1 %v2642_v16, %s5382_s3  ;;  %v2643_v6 = vmul.f32 %v2642_v16, %v2384_v8 }
0x176a   :  { %v2646_v17 = vpop.permute.xlu1 %2645 }
0x176b   :  { %v2648_v5 = vmul.f32 %v2646_v17, %v2642_v16 }
0x176d   :  { %2650 = vrot.lane.b32.xlu0 %v2648_v5, %s5385_s7 }
0x17df   :  { %v2651_v51 = vpop.permute.xlu0 %2650 }
0x17e0   :  { %v2653_v60 = vadd.f32 %v2651_v51, %v2643_v6 }
0x17e2   :  { %5210 = vtanh.f32 %v2653_v60 }
0x17ec   :  { %v5211_v62 = vpop.eup %5210 }
0x17ed   :  { %2656 = vrot.lane.b32.xlu1 %v5211_v62, %s5382_s3 }
0x185f   :  { %v2657_v53 = vpop.permute.xlu1 %2656 }
0x1860   :  { %v2659_v36 = vmul.f32 %v2657_v53, %v2642_v16 }
0x1862   :  { %v2660_v10 = vpack.c.bf16 %v2659_v36, %v2659_v36 }
0x1864   :  { %2664 = vrot.lane.b32.xlu0 %v2660_v10, %s5386_s0 }
0x18d6   :  { %v2665_v61 = vpop.permute.xlu0 %2664 }
0x18d7   :  { %2667 = vst.msk [vmem:[#allocation4] sm:$0xf] %vm783_vm9, %v2665_v61 }
0x18d8   :  { %5373 = dma.done.wait [#allocation10], 256 }
0x18d9   :  { %5374 = vsyncadd [#allocation10], 4294967040 }
0x18da   :  { %5375 = dma.done.wait [#allocation10 + $0x1], 256 }
0x18db   :  { %5376 = vsyncadd [#allocation10 + $0x1], 4294967040 }
0x18dc   :  { %5377 = dma.done.wait [#allocation10 + $0x2], 2048 }
0x18dd   :  { %5378 = vsyncadd [#allocation10 + $0x2], 4294965248  ;;  %2691 = vrot.lane.b32.xlu0 %v2660_v10, %s5385_s7  ;;  %4870 = vmatprep.subr.bf16.mxu0 %v5383_v22 }
0x18de   :  { %5379 = dma.done.wait [#allocation10 + $0x3], 512 }
0x18df   :  { %5380 = vsyncadd [#allocation10 + $0x3], 4294966784  ;;  %4871 = vmatpush3.bf16.msra.mxu0 %v5460_v0  ;;  %4874 = vmatprep.mubr.msk.bf16.mxu0 %vm5384_vm3, %v5383_v22  ;;  %2749 = vst [vmem:[#allocation5] sm:$0xf] %v5381_v35  ;;  %vm2693_vm10 = vcmask 261120   ;;  %v6350_v55 = vld [vmem:[#allocation8 + $0x8] sm:$0xff] }
0x18e0   :  { %4872 = vmatprep.subr.bf16.mxu0 %v5383_v22  ;;  %4886 = vmatprep.subr.bf16.mxu1 %v5383_v22  ;;  %v4513_v18 = vld [vmem:[%s6813_s8] ss:$0 sm:$0xff]  ;;  %v6352_v59 = vld [vmem:[#allocation8] sm:$0xff]  ;;  %v6361_v56 = vld [vmem:[#allocation8 + $0x10] sm:$0xff]  ;;  %vm2827_vm11 = vcmask 257024   ;;  %vm2919_vm12 = vcmask 781568  }
0x18e1   :  { %4887 = vmatpush3.bf16.msra.mxu1 %v5470_v2  ;;  %4890 = vmatprep.mubr.msk.bf16.mxu1 %vm5384_vm3, %v5383_v22  ;;  %v6354_v54 = vld [vmem:[#allocation8 + $0x18] sm:$0xff]  ;;  %v6364_v17 = vld [vmem:[#allocation8 + $0x28] sm:$0xff]  ;;  %v6372_v51 = vld [vmem:[#allocation8 + $0x20] sm:$0xff]  ;;  %vm3101_vm13 = vcmask 523268  }
0x18e2   :  { %4888 = vmatprep.subr.bf16.mxu1 %v5383_v22  ;;  %v6374_v60 = vld [vmem:[#allocation8 + $0x38] sm:$0xff]  ;;  %v6380_v62 = vld [vmem:[#allocation8 + $0x30] sm:$0xff]  ;;  %v6383_v53 = vld [vmem:[#allocation8 + $0x48] sm:$0xff] }
0x18e3   :  { %4873 = vmatpush3.bf16.msra.mxu0 %v5465_v1  ;;  %v6388_v36 = vld [vmem:[#allocation8 + $0x40] sm:$0xff]  ;;  %v6393_v10 = vld [vmem:[#allocation8 + $0x58] sm:$0xff]  ;;  %v6396_v61 = vld [vmem:[#allocation8 + $0x50] sm:$0xff] }
0x18e4   :  { %4878 = vmatprep.subr.bf16.mxu0 %v5383_v22 }
0x18e5   :  { %4889 = vmatpush3.bf16.msra.mxu1 %v5475_v3 }
0x18e6   :  { %3023 = vmatprep.subr.bf16.mxu1 %v6350_v55 }
0x194f   :  { %v2692_v0 = vpop.permute.xlu0 %2691 }
0x1950   :  { %4875 = vmatmul.mubr.msk.bf16.vlgmr.msra.gmra.mrb[44].mxu0 %vm2693_vm10, %v2692_v0  ;;  %v6401_v0 = vld [vmem:[#allocation8 + $0x68] sm:$0xff] }
0x1951   :  { %4879 = vmatpush3.bf16.msra.mxu0 %v5470_v2  ;;  %4882 = vmatprep.mubr.msk.bf16.mxu0 %vm5384_vm3, %v5383_v22 }
0x1952   :  { %4880 = vmatprep.subr.bf16.mxu0 %v5383_v22 }
0x1955   :  { %4881 = vmatpush3.bf16.msra.mxu0 %v5475_v3 }
0x1956   :  { %2846 = vmatprep.subr.bf16.mxu0 %v6350_v55 }
0x1958   :  { %4883 = vmatmul.mubr.bf16.vlgmr.msra.gmra.mrb[48].mxu0 %v5381_v35 }
0x1959   :  { %2878 = vmatprep.mubr.bf16.mxu0 %v5381_v35  ;;  %2847 = vmatpush1.bf16.msra.mxu0 %v6352_v59 }
0x195a   :  { %2848 = vmatprep.subr.bf16.mxu0 %v6354_v54 }
0x195d   :  { %2849 = vmatpush1.bf16.msra.mxu0 %v6361_v56 }
0x195e   :  { %2850 = vmatprep.subr.bf16.mxu0 %v6364_v17 }
0x1961   :  { %2851 = vmatpush1.bf16.msra.mxu0 %v6372_v51 }
0x1962   :  { %2852 = vmatprep.subr.bf16.mxu0 %v6374_v60 }
0x1965   :  { %2853 = vmatpush1.bf16.msra.mxu0 %v6380_v62 }
0x1966   :  { %2854 = vmatprep.subr.bf16.mxu0 %v6383_v53 }
0x1969   :  { %2855 = vmatpush1.bf16.msra.mxu0 %v6388_v36 }
0x196a   :  { %2856 = vmatprep.subr.bf16.mxu0 %v6393_v10 }
0x196d   :  { %2857 = vmatpush1.bf16.msra.mxu0 %v6396_v61 }
0x196e   :  { %2858 = vmatprep.subr.bf16.mxu0 %v6401_v0 }
0x1a23   :  { %v2731_v1 = vpop.f32.mrb[44].mxu0 }
0x1a24   :  { %v4876_v21 = vpop.f32.mrb[45].mxu0  ;;  %v6332_v47 = vadd.f32 %v4513_v18, %v2731_v1  ;;  %v6404_v1 = vld [vmem:[#allocation8 + $0x60] sm:$0xff] }
0x1a25   :  { %v2734_v43 = vpop.f32.mrb[46].mxu0  ;;  %2859 = vmatpush1.bf16.msra.mxu0 %v6404_v1  ;;  %v6409_v21 = vld [vmem:[#allocation8 + $0x78] sm:$0xff] }
0x1a26   :  { %v4877_v23 = vpop.f32.mrb[47].mxu0  ;;  %2860 = vmatprep.subr.bf16.mxu0 %v6409_v21  ;;  %v6412_v43 = vld [vmem:[#allocation8 + $0x70] sm:$0xff] }
0x1a29   :  { %2861 = vmatpush1.bf16.msra.mxu0 %v6412_v43 }
0x1a2a   :  { %4894 = vmatprep.subr.bf16.mxu0 %v5383_v22 }
0x1a2b   :  { %v2788_v27 = vpop.f32.mrb[48].mxu0 }
0x1a2c   :  { %v2794_v24 = vadd.f32 %v2788_v27, %v6332_v47  ;;  %v4884_v13 = vpop.f32.mrb[49].mxu0 }
0x1a2d   :  { %v2791_v19 = vpop.f32.mrb[50].mxu0 }
0x1a2e   :  { %v4515_v8 = vmul.f32 -1.442695, %v2794_v24  ;;  %v4885_v25 = vpop.f32.mrb[51].mxu0 }
0x1a30   :  { %5213 = vpow2.f32 %v4515_v8 }
0x1a31   :  { %5215 = vtanh.f32 %v2794_v24 }
0x1a3a   :  { %v5214_v40 = vpop.eup %5213 }
0x1a3b   :  { %v2799_v26 = vadd.f32 1.0, %v5214_v40  ;;  %v5216_v63 = vpop.eup %5215 }
0x1a3d   :  { %5217 = vrcp.f32 %v2799_v26 }
0x1a47   :  { %v5218_v11 = vpop.eup %5217 }
0x1a48   :  { %v2802_v9 = vsel %vm5789_vm8, %v5216_v63, %v5218_v11 }
0x1a49   :  { %2805 = vrot.lane.b32.xlu0 %v2802_v9, %s5382_s3  ;;  %v2803_v12 = vmul.f32 0.0, %v2802_v9 }
0x1abb   :  { %v2806_v33 = vpop.permute.xlu0 %2805 }
0x1abc   :  { %v2808_v34 = vmul.f32 %v2806_v33, %v2802_v9 }
0x1abe   :  { %2810 = vrot.lane.b32.xlu1 %v2808_v34, %s5385_s7 }
0x1b30   :  { %v2811_v7 = vpop.permute.xlu1 %2810 }
0x1b31   :  { %v6339_v28 = vadd.f32 %v2811_v7, %v2803_v12  ;;  %v2737_v7 = vld [vmem:[%s6815_s10] sm:$0x3] }
0x1b33   :  { %5219 = vtanh.f32 %v6339_v28 }
0x1b3d   :  { %v5220_v15 = vpop.eup %5219 }
0x1b3e   :  { %2816 = vrot.lane.b32.xlu1 %v5220_v15, %s5382_s3 }
0x1bb0   :  { %v2817_v38 = vpop.permute.xlu1 %2816 }
0x1bb1   :  { %v2819_v37 = vmul.f32 %v2817_v38, %v2802_v9  ;;  %v6466_v38 = vrot.slane %v2737_v7, %v381_v50 }
0x1bb3   :  { %v6343_v42 = vpack.c.bf16 %v2819_v37, %v2819_v37 }
0x1bb5   :  { %2927 = vrot.lane.b32.xlu0 %v6343_v42, %s5385_s7 }
0x1c27   :  { %v2928_v39 = vpop.permute.xlu0 %2927 }
0x1c28   :  { %4891 = vmatmul.mubr.msk.bf16.vlgmr.msra.gmra.mrb[36].mxu1 %vm2693_vm10, %v2928_v39 }
0x1c29   :  { %3055 = vmatprep.mubr.bf16.mxu1 %v5381_v35  ;;  %3024 = vmatpush1.bf16.msra.mxu1 %v6352_v59 }
0x1c2a   :  { %3025 = vmatprep.subr.bf16.mxu1 %v6354_v54 }
0x1c2d   :  { %3026 = vmatpush1.bf16.msra.mxu1 %v6361_v56 }
0x1c2e   :  { %3027 = vmatprep.subr.bf16.mxu1 %v6364_v17 }
0x1c31   :  { %3028 = vmatpush1.bf16.msra.mxu1 %v6372_v51 }
0x1c32   :  { %3029 = vmatprep.subr.bf16.mxu1 %v6374_v60 }
0x1c35   :  { %3030 = vmatpush1.bf16.msra.mxu1 %v6380_v62 }
0x1c36   :  { %3031 = vmatprep.subr.bf16.mxu1 %v6383_v53 }
0x1c39   :  { %3032 = vmatpush1.bf16.msra.mxu1 %v6388_v36 }
0x1c3a   :  { %3033 = vmatprep.subr.bf16.mxu1 %v6393_v10 }
0x1c3d   :  { %3034 = vmatpush1.bf16.msra.mxu1 %v6396_v61 }
0x1c3e   :  { %3035 = vmatprep.subr.bf16.mxu1 %v6401_v0 }
0x1c41   :  { %3036 = vmatpush1.bf16.msra.mxu1 %v6404_v1 }
0x1c42   :  { %3037 = vmatprep.subr.bf16.mxu1 %v6409_v21 }
0x1c45   :  { %3038 = vmatpush1.bf16.msra.mxu1 %v6412_v43 }
0x1c46   :  { %4902 = vmatprep.subr.bf16.mxu1 %v5383_v22 }
0x1cfb   :  { %v2966_v41 = vpop.f32.mrb[36].mxu1 }
0x1cfc   :  { %v2972_v45 = vadd.f32 %v2966_v41, %v6332_v47  ;;  %v4892_v44 = vpop.f32.mrb[37].mxu1 }
0x1cfd   :  { %v2969_v57 = vpop.f32.mrb[38].mxu1 }
0x1cfe   :  { %v4521_v46 = vmul.f32 -1.442695, %v2972_v45  ;;  %v4893_v48 = vpop.f32.mrb[39].mxu1 }
0x1d00   :  { %5221 = vpow2.f32 %v4521_v46 }
0x1d01   :  { %5223 = vtanh.f32 %v2972_v45 }
0x1d0a   :  { %v5222_v4 = vpop.eup %5221 }
0x1d0b   :  { %v2977_v58 = vadd.f32 1.0, %v5222_v4  ;;  %v5224_v16 = vpop.eup %5223 }
0x1d0d   :  { %5225 = vrcp.f32 %v2977_v58 }
0x1d17   :  { %v5226_v5 = vpop.eup %5225 }
0x1d18   :  { %v2980_v6 = vsel %vm5789_vm8, %v5224_v16, %v5226_v5 }
0x1d19   :  { %2983 = vrot.lane.b32.xlu1 %v2980_v6, %s5382_s3  ;;  %v2981_v27 = vmul.f32 %v2980_v6, %v6339_v28  ;;  %v6461_v28 = vrot.slane %v2737_v7, %v385_v52 }
0x1d8b   :  { %v2984_v23 = vpop.permute.xlu1 %2983 }
0x1d8c   :  { %v2986_v18 = vmul.f32 %v2984_v23, %v2980_v6 }
0x1d8e   :  { %2988 = vrot.lane.b32.xlu0 %v2986_v18, %s5385_s7 }
0x1d92   :  { %2824 = vrot.lane.b32.xlu0 %v6343_v42, %s5385_s7 }
0x1e00   :  { %v2989_v24 = vpop.permute.xlu0 %2988 }
0x1e01   :  { %v6423_v13 = vadd.f32 %v2989_v24, %v2981_v27 }
0x1e03   :  { %5227 = vtanh.f32 %v6423_v13 }
0x1e04   :  { %v2825_v19 = vpop.permute.xlu0 %2824 }
0x1e05   :  { %2828 = vst.msk [vmem:[#allocation5] sm:$0xf] %vm2827_vm11, %v2825_v19 }
0x1e0c   :  { %v2829_v8 = vld [vmem:[#allocation5] sm:$0xf] }
0x1e0d   :  { %v5228_v25 = vpop.eup %5227  ;;  %2879 = vmatmul.mubr.bf16.vlgmr.msra.gmra.mrb[52].mxu0 %v2829_v8 }
0x1e0e   :  { %2994 = vrot.lane.b32.xlu1 %v5228_v25, %s5382_s3  ;;  %4895 = vmatpush3.bf16.msra.mxu0 %v5470_v2 }
0x1e0f   :  { %4896 = vmatprep.subr.bf16.mxu0 %v5383_v22  ;;  %4898 = vmatprep.mubr.msk.bf16.mxu0 %vm5384_vm3, %v5383_v22 }
0x1e12   :  { %4897 = vmatpush3.bf16.msra.mxu0 %v5475_v3 }
0x1e13   :  { %3201 = vmatprep.subr.bf16.mxu0 %v6350_v55 }
0x1e80   :  { %v2995_v40 = vpop.permute.xlu1 %2994 }
0x1e81   :  { %v2997_v26 = vmul.f32 %v2995_v40, %v2980_v6 }
0x1e83   :  { %v6434_v63 = vpack.c.bf16 %v2997_v26, %v2997_v26 }
0x1e85   :  { %3105 = vrot.lane.b32.xlu1 %v6434_v63, %s5385_s7 }
0x1ee0   :  { %v2880_v11 = vpop.f32.mrb[52].mxu0 }
0x1ee1   :  { %v2882_v9 = vpop.f32.mrb[53].mxu0  ;;  %v2881_v42 = vadd.f32 %v2880_v11, %v6466_v38 }
0x1ee2   :  { %v2884_v33 = vpop.f32.mrb[54].mxu0  ;;  %v2883_v15 = vadd.f32 %v2882_v9, %v6461_v28 }
0x1ee3   :  { %v2885_v34 = vpop.f32.mrb[55].mxu0  ;;  %v4517_v39 = vmul.f32 -1.442695, %v2881_v42 }
0x1ee4   :  { %v4518_v37 = vmul.f32 -1.442695, %v2883_v15 }
0x1ee6   :  { %5229 = vpow2.f32 %v4518_v37 }
0x1ee7   :  { %5231 = vpow2.f32 %v4517_v39 }
0x1ef0   :  { %v5230_v52 = vpop.eup %5229 }
0x1ef1   :  { %v2896_v4 = vadd.f32 1.0, %v5230_v52  ;;  %v5232_v58 = vpop.eup %5231 }
0x1ef2   :  { %v2895_v16 = vadd.f32 1.0, %v5232_v58 }
0x1ef7   :  { %v3106_v12 = vpop.permute.xlu1 %3105 }
0x1ef8   :  { %4899 = vmatmul.mubr.msk.bf16.vlgmr.msra.gmra.mrb[56].mxu0 %vm2693_vm10, %v3106_v12 }
0x1ef9   :  { %3202 = vmatpush1.bf16.msra.mxu0 %v6352_v59  ;;  %3233 = vmatprep.mubr.bf16.mxu0 %v5381_v35 }
0x1efa   :  { %3203 = vmatprep.subr.bf16.mxu0 %v6354_v54 }
0x1efd   :  { %3204 = vmatpush1.bf16.msra.mxu0 %v6361_v56 }
0x1efe   :  { %3205 = vmatprep.subr.bf16.mxu0 %v6364_v17 }
0x1f01   :  { %3206 = vmatpush1.bf16.msra.mxu0 %v6372_v51 }
0x1f02   :  { %3207 = vmatprep.subr.bf16.mxu0 %v6374_v60 }
0x1f05   :  { %3208 = vmatpush1.bf16.msra.mxu0 %v6380_v62 }
0x1f06   :  { %3209 = vmatprep.subr.bf16.mxu0 %v6383_v53 }
0x1f09   :  { %3210 = vmatpush1.bf16.msra.mxu0 %v6388_v36 }
0x1f0a   :  { %3211 = vmatprep.subr.bf16.mxu0 %v6393_v10 }
0x1f0d   :  { %3212 = vmatpush1.bf16.msra.mxu0 %v6396_v61 }
0x1f0e   :  { %3213 = vmatprep.subr.bf16.mxu0 %v6401_v0 }
0x1f11   :  { %3214 = vmatpush1.bf16.msra.mxu0 %v6404_v1 }
0x1f12   :  { %3215 = vmatprep.subr.bf16.mxu0 %v6409_v21 }
0x1f15   :  { %3216 = vmatpush1.bf16.msra.mxu0 %v6412_v43 }
0x1f16   :  { %4910 = vmatprep.subr.bf16.mxu0 %v5383_v22 }
0x1fcb   :  { %v3144_v41 = vpop.f32.mrb[56].mxu0 }
0x1fcc   :  { %v3150_v45 = vadd.f32 %v3144_v41, %v6332_v47  ;;  %v4900_v44 = vpop.f32.mrb[57].mxu0 }
0x1fcd   :  { %v3147_v57 = vpop.f32.mrb[58].mxu0 }
0x1fce   :  { %v4527_v46 = vmul.f32 -1.442695, %v3150_v45  ;;  %v4901_v48 = vpop.f32.mrb[59].mxu0 }
0x1fd0   :  { %5233 = vpow2.f32 %v4527_v46 }
0x1fd1   :  { %5235 = vtanh.f32 %v2883_v15 }
0x1fd2   :  { %5237 = vrcp.f32 %v2896_v4 }
0x1fd3   :  { %5239 = vtanh.f32 %v3150_v45 }
0x1fda   :  { %v5234_v49 = vpop.eup %5233 }
0x1fdb   :  { %v3155_v50 = vadd.f32 1.0, %v5234_v49  ;;  %v5236_v5 = vpop.eup %5235 }
0x1fdc   :  { %v5238_v6 = vpop.eup %5237 }
0x1fdd   :  { %5241 = vrcp.f32 %v3155_v50  ;;  %v5240_v23 = vpop.eup %5239  ;;  %v2902_v24 = vsel %vm358_vm2, %v5236_v5, %v5238_v6 }
0x1fde   :  { %5243 = vrcp.f32 %v2895_v16 }
0x1fe7   :  { %v5242_v18 = vpop.eup %5241 }
0x1fe8   :  { %v3158_v27 = vsel %vm5789_vm8, %v5240_v23, %v5242_v18  ;;  %v5244_v19 = vpop.eup %5243 }
0x1fe9   :  { %3161 = vrot.lane.b32.xlu0 %v3158_v27, %s5382_s3  ;;  %v2904_v8 = vmul.f32 %v5244_v19, %v2902_v24  ;;  %v2903_v26 = vmul.f32 0.0, %v5244_v19  ;;  %v3159_v7 = vmul.f32 %v3158_v27, %v6423_v13 }
0x1fed   :  { %2906 = vrot.lane.b32.xlu0 %v2904_v8, %s5382_s3 }
0x205b   :  { %v3162_v25 = vpop.permute.xlu0 %3161 }
0x205c   :  { %v3164_v40 = vmul.f32 %v3162_v25, %v3158_v27 }
0x205e   :  { %3166 = vrot.lane.b32.xlu1 %v3164_v40, %s5385_s7 }
0x205f   :  { %v2907_v11 = vpop.permute.xlu0 %2906 }
0x2060   :  { %v6477_v9 = vadd.f32 %v2907_v11, %v2903_v26 }
0x2062   :  { %5245 = vtanh.f32 %v6477_v9 }
0x206c   :  { %v5246_v33 = vpop.eup %5245 }
0x206d   :  { %v2911_v34 = vmul.f32 %v5246_v33, %v2902_v24 }
0x206f   :  { %v6480_v12 = vpack.c.bf16 %v2911_v34, %v2911_v34 }
0x2071   :  { %2916 = vrot.lane.b32.xlu0 %v6480_v12, %s5386_s0 }
0x20d0   :  { %v3167_v15 = vpop.permute.xlu1 %3166 }
0x20d1   :  { %v6485_v37 = vadd.f32 %v3167_v15, %v3159_v7 }
0x20d3   :  { %5247 = vtanh.f32 %v6485_v37 }
0x20dd   :  { %v5248_v42 = vpop.eup %5247 }
0x20de   :  { %3172 = vrot.lane.b32.xlu1 %v5248_v42, %s5382_s3 }
0x20e2   :  { %3002 = vrot.lane.b32.xlu1 %v6434_v63, %s5385_s7 }
0x20e3   :  { %v2917_v39 = vpop.permute.xlu0 %2916 }
0x20e4   :  { %2920 = vst.msk [vmem:[#allocation5] sm:$0xf] %vm2919_vm12, %v2917_v39 }
0x2150   :  { %v3173_v41 = vpop.permute.xlu1 %3172 }
0x2151   :  { %v3175_v45 = vmul.f32 %v3173_v41, %v3158_v27 }
0x2153   :  { %v6492_v44 = vpack.c.bf16 %v3175_v45, %v3175_v45 }
0x2154   :  { %v3003_v13 = vpop.permute.xlu1 %3002 }
0x2155   :  { %3005 = vst.msk [vmem:[#allocation5] sm:$0xf] %vm2827_vm11, %v3003_v13  ;;  %3281 = vrot.lane.b32.xlu0 %v6492_v44, %s5385_s7 }
0x215c   :  { %v3006_v57 = vld [vmem:[#allocation5] sm:$0xf] }
0x215d   :  { %3056 = vmatmul.mubr.bf16.vlgmr.msra.gmra.mrb[40].mxu1 %v3006_v57 }
0x215e   :  { %4903 = vmatpush3.bf16.msra.mxu1 %v5470_v2  ;;  %4906 = vmatprep.mubr.msk.bf16.mxu1 %vm5384_vm3, %v5383_v22 }
0x215f   :  { %4904 = vmatprep.subr.bf16.mxu1 %v5383_v22 }
0x2162   :  { %4905 = vmatpush3.bf16.msra.mxu1 %v5475_v3 }
0x2163   :  { %3377 = vmatprep.subr.bf16.mxu1 %v6350_v55 }
0x21c7   :  { %v3282_v63 = vpop.permute.xlu0 %3281 }
0x21c8   :  { %4907 = vmatmul.mubr.msk.bf16.vlgmr.msra.gmra.mrb[44].mxu1 %vm2693_vm10, %v3282_v63 }
0x21c9   :  { %3378 = vmatpush1.bf16.msra.mxu1 %v6352_v59  ;;  %3409 = vmatprep.mubr.bf16.mxu1 %v5381_v35 }
0x21ca   :  { %3379 = vmatprep.subr.bf16.mxu1 %v6354_v54 }
0x21cd   :  { %3380 = vmatpush1.bf16.msra.mxu1 %v6361_v56 }
0x21ce   :  { %3381 = vmatprep.subr.bf16.mxu1 %v6364_v17 }
0x21d1   :  { %3382 = vmatpush1.bf16.msra.mxu1 %v6372_v51 }
0x21d2   :  { %3383 = vmatprep.subr.bf16.mxu1 %v6374_v60 }
0x21d5   :  { %3384 = vmatpush1.bf16.msra.mxu1 %v6380_v62 }
0x21d6   :  { %3385 = vmatprep.subr.bf16.mxu1 %v6383_v53 }
0x21d9   :  { %3386 = vmatpush1.bf16.msra.mxu1 %v6388_v36 }
0x21da   :  { %3387 = vmatprep.subr.bf16.mxu1 %v6393_v10 }
0x21dd   :  { %3388 = vmatpush1.bf16.msra.mxu1 %v6396_v61 }
0x21de   :  { %3389 = vmatprep.subr.bf16.mxu1 %v6401_v0 }
0x21e1   :  { %3390 = vmatpush1.bf16.msra.mxu1 %v6404_v1 }
0x21e2   :  { %3391 = vmatprep.subr.bf16.mxu1 %v6409_v21 }
0x21e5   :  { %3392 = vmatpush1.bf16.msra.mxu1 %v6412_v43 }
0x21e6   :  { %4918 = vmatprep.subr.bf16.mxu1 %v5383_v22 }
0x2230   :  { %v3057_v46 = vpop.f32.mrb[40].mxu1 }
0x2231   :  { %v3059_v48 = vpop.f32.mrb[41].mxu1  ;;  %v3058_v50 = vadd.f32 %v3057_v46, %v6466_v38 }
0x2232   :  { %v3061_v52 = vpop.f32.mrb[42].mxu1  ;;  %v3060_v58 = vadd.f32 %v3059_v48, %v6461_v28 }
0x2233   :  { %v3062_v4 = vpop.f32.mrb[43].mxu1  ;;  %v4523_v16 = vmul.f32 -1.442695, %v3058_v50 }
0x2234   :  { %v4524_v49 = vmul.f32 -1.442695, %v3060_v58 }
0x2236   :  { %5249 = vpow2.f32 %v4524_v49 }
0x2237   :  { %5251 = vpow2.f32 %v4523_v16 }
0x2240   :  { %v5250_v19 = vpop.eup %5249 }
0x2241   :  { %v3073_v8 = vadd.f32 1.0, %v5250_v19  ;;  %v5252_v25 = vpop.eup %5251 }
0x2242   :  { %v3072_v11 = vadd.f32 1.0, %v5252_v25 }
0x229b   :  { %v3320_v5 = vpop.f32.mrb[44].mxu1 }
0x229c   :  { %v3326_v6 = vadd.f32 %v3320_v5, %v6332_v47  ;;  %v4908_v23 = vpop.f32.mrb[45].mxu1 }
0x229d   :  { %v3323_v18 = vpop.f32.mrb[46].mxu1 }
0x229e   :  { %v4533_v27 = vmul.f32 -1.442695, %v3326_v6  ;;  %v4909_v24 = vpop.f32.mrb[47].mxu1 }
0x22a0   :  { %5253 = vpow2.f32 %v4533_v27 }
0x22a1   :  { %5255 = vtanh.f32 %v3060_v58 }
0x22a2   :  { %5257 = vrcp.f32 %v3073_v8 }
0x22a3   :  { %5259 = vtanh.f32 %v3326_v6 }
0x22aa   :  { %v5254_v40 = vpop.eup %5253 }
0x22ab   :  { %v3331_v26 = vadd.f32 1.0, %v5254_v40  ;;  %v5256_v33 = vpop.eup %5255 }
0x22ac   :  { %v5258_v34 = vpop.eup %5257 }
0x22ad   :  { %5261 = vrcp.f32 %v3331_v26  ;;  %v5260_v7 = vpop.eup %5259  ;;  %v3079_v39 = vsel %vm358_vm2, %v5256_v33, %v5258_v34 }
0x22ae   :  { %5263 = vrcp.f32 %v3072_v11 }
0x22b7   :  { %v5262_v15 = vpop.eup %5261 }
0x22b8   :  { %v3334_v42 = vsel %vm5789_vm8, %v5260_v7, %v5262_v15  ;;  %v5264_v41 = vpop.eup %5263 }
0x22b9   :  { %3337 = vrot.lane.b32.xlu1 %v3334_v42, %s5382_s3  ;;  %v3081_v45 = vmul.f32 %v5264_v41, %v3079_v39  ;;  %v3080_v63 = vmul.f32 %v5264_v41, %v6477_v9  ;;  %v3335_v49 = vmul.f32 %v3334_v42, %v6485_v37 }
0x22bd   :  { %3083 = vrot.lane.b32.xlu1 %v3081_v45, %s5382_s3 }
0x232b   :  { %v3338_v13 = vpop.permute.xlu1 %3337 }
0x232c   :  { %v3340_v57 = vmul.f32 %v3338_v13, %v3334_v42 }
0x232e   :  { %3342 = vrot.lane.b32.xlu0 %v3340_v57, %s5385_s7 }
0x232f   :  { %v3084_v46 = vpop.permute.xlu1 %3083 }
0x2330   :  { %v6532_v48 = vadd.f32 %v3084_v46, %v3080_v63 }
0x2332   :  { %5265 = vtanh.f32 %v6532_v48 }
0x233c   :  { %v5266_v52 = vpop.eup %5265 }
0x233d   :  { %v3088_v4 = vmul.f32 %v5266_v52, %v3079_v39 }
0x233f   :  { %v6535_v58 = vpack.c.bf16 %v3088_v4, %v3088_v4 }
0x2341   :  { %3093 = vrot.lane.b32.xlu1 %v6535_v58, %s5386_s0 }
0x23a0   :  { %v3343_v50 = vpop.permute.xlu0 %3342 }
0x23a1   :  { %v6540_v16 = vadd.f32 %v3343_v50, %v3335_v49 }
0x23a3   :  { %5267 = vtanh.f32 %v6540_v16 }
0x23ad   :  { %v5268_v9 = vpop.eup %5267 }
0x23ae   :  { %3348 = vrot.lane.b32.xlu0 %v5268_v9, %s5382_s3 }
0x23b2   :  { %3180 = vrot.lane.b32.xlu0 %v6492_v44, %s5385_s7 }
0x23b3   :  { %v3094_v5 = vpop.permute.xlu1 %3093 }
0x23b4   :  { %3096 = vst.msk [vmem:[#allocation5] sm:$0xf] %vm2919_vm12, %v3094_v5 }
0x2420   :  { %v3349_v6 = vpop.permute.xlu0 %3348 }
0x2421   :  { %v3351_v23 = vmul.f32 %v3349_v6, %v3334_v42 }
0x2423   :  { %v6547_v18 = vpack.c.bf16 %v3351_v23, %v3351_v23 }
0x2424   :  { %v3181_v27 = vpop.permute.xlu0 %3180 }
0x2425   :  { %3183 = vst.msk [vmem:[#allocation5] sm:$0xf] %vm2827_vm11, %v3181_v27  ;;  %3458 = vrot.lane.b32.xlu1 %v6547_v18, %s5385_s7 }
0x242c   :  { %v3184_v37 = vld [vmem:[#allocation5] sm:$0xf] }
0x242d   :  { %3234 = vmatmul.mubr.bf16.vlgmr.msra.gmra.mrb[60].mxu0 %v3184_v37 }
0x242e   :  { %4911 = vmatpush3.bf16.msra.mxu0 %v5470_v2  ;;  %4914 = vmatprep.mubr.msk.bf16.mxu0 %vm5384_vm3, %v5383_v22 }
0x242f   :  { %4912 = vmatprep.subr.bf16.mxu0 %v5383_v22 }
0x2432   :  { %4913 = vmatpush3.bf16.msra.mxu0 %v5475_v3 }
0x2433   :  { %3554 = vmatprep.subr.bf16.mxu0 %v6350_v55 }
0x2497   :  { %v3459_v44 = vpop.permute.xlu1 %3458 }
0x2498   :  { %4915 = vmatmul.mubr.msk.bf16.vlgmr.msra.gmra.mrb[64].mxu0 %vm2693_vm10, %v3459_v44 }
0x2499   :  { %3555 = vmatpush1.bf16.msra.mxu0 %v6352_v59  ;;  %3586 = vmatprep.mubr.bf16.mxu0 %v5381_v35 }
0x249a   :  { %3556 = vmatprep.subr.bf16.mxu0 %v6354_v54 }
0x249d   :  { %3557 = vmatpush1.bf16.msra.mxu0 %v6361_v56 }
0x249e   :  { %3558 = vmatprep.subr.bf16.mxu0 %v6364_v17 }
0x24a1   :  { %3559 = vmatpush1.bf16.msra.mxu0 %v6372_v51 }
0x24a2   :  { %3560 = vmatprep.subr.bf16.mxu0 %v6374_v60 }
0x24a5   :  { %3561 = vmatpush1.bf16.msra.mxu0 %v6380_v62 }
0x24a6   :  { %3562 = vmatprep.subr.bf16.mxu0 %v6383_v53 }
0x24a9   :  { %3563 = vmatpush1.bf16.msra.mxu0 %v6388_v36 }
0x24aa   :  { %3564 = vmatprep.subr.bf16.mxu0 %v6393_v10 }
0x24ad   :  { %3565 = vmatpush1.bf16.msra.mxu0 %v6396_v61 }
0x24ae   :  { %3566 = vmatprep.subr.bf16.mxu0 %v6401_v0 }
0x24b1   :  { %3567 = vmatpush1.bf16.msra.mxu0 %v6404_v1 }
0x24b2   :  { %3568 = vmatprep.subr.bf16.mxu0 %v6409_v21 }
0x24b5   :  { %3569 = vmatpush1.bf16.msra.mxu0 %v6412_v43 }
0x24b6   :  { %4926 = vmatprep.subr.bf16.mxu0 %v5383_v22 }
0x2500   :  { %v3235_v24 = vpop.f32.mrb[60].mxu0 }
0x2501   :  { %v3236_v19 = vadd.f32 %v3235_v24, %v6466_v38  ;;  %v3237_v8 = vpop.f32.mrb[61].mxu0 }
0x2502   :  { %v3238_v25 = vadd.f32 %v3237_v8, %v6461_v28  ;;  %v3239_v40 = vpop.f32.mrb[62].mxu0 }
0x2503   :  { %v4529_v26 = vmul.f32 -1.442695, %v3236_v19  ;;  %v3240_v11 = vpop.f32.mrb[63].mxu0 }
0x2504   :  { %v4530_v33 = vmul.f32 -1.442695, %v3238_v25 }
0x2505   :  { %5269 = vpow2.f32 %v4529_v26 }
0x2506   :  { %5271 = vpow2.f32 %v4530_v33 }
0x2507   :  { %5273 = vtanh.f32 %v3238_v25 }
0x250f   :  { %v5270_v34 = vpop.eup %5269 }
0x2510   :  { %v5272_v7 = vpop.eup %5271  ;;  %v3250_v15 = vadd.f32 1.0, %v5270_v34 }
0x2511   :  { %v3251_v42 = vadd.f32 1.0, %v5272_v7  ;;  %v5274_v39 = vpop.eup %5273 }
0x2513   :  { %5275 = vrcp.f32 %v3251_v42 }
0x2514   :  { %5277 = vrcp.f32 %v3250_v15 }
0x251d   :  { %v5276_v41 = vpop.eup %5275 }
0x251e   :  { %v5278_v45 = vpop.eup %5277  ;;  %v3257_v13 = vsel %vm358_vm2, %v5274_v39, %v5276_v41 }
0x251f   :  { %v3259_v57 = vmul.f32 %v5278_v45, %v3257_v13  ;;  %v3258_v37 = vmul.f32 %v5278_v45, %v6532_v48 }
0x2521   :  { %3261 = vrot.lane.b32.xlu1 %v3259_v57, %s5382_s3 }
0x256b   :  { %v3497_v63 = vpop.f32.mrb[64].mxu0 }
0x256c   :  { %v3503_v46 = vadd.f32 %v3497_v63, %v6332_v47  ;;  %v4916_v52 = vpop.f32.mrb[65].mxu0 }
0x256d   :  { %v3500_v4 = vpop.f32.mrb[66].mxu0 }
0x256e   :  { %v4539_v49 = vmul.f32 -1.442695, %v3503_v46  ;;  %v4917_v50 = vpop.f32.mrb[67].mxu0 }
0x2570   :  { %5279 = vpow2.f32 %v4539_v49 }
0x2571   :  { %5281 = vtanh.f32 %v3503_v46 }
0x257a   :  { %v5280_v9 = vpop.eup %5279 }
0x257b   :  { %v3508_v5 = vadd.f32 1.0, %v5280_v9  ;;  %v5282_v6 = vpop.eup %5281 }
0x257d   :  { %5283 = vrcp.f32 %v3508_v5 }
0x2587   :  { %v5284_v23 = vpop.eup %5283 }
0x2588   :  { %v3511_v27 = vsel %vm5789_vm8, %v5282_v6, %v5284_v23 }
0x2589   :  { %3514 = vrot.lane.b32.xlu0 %v3511_v27, %s5382_s3  ;;  %v3512_v11 = vmul.f32 %v3511_v27, %v6540_v16 }
0x2593   :  { %v3262_v44 = vpop.permute.xlu1 %3261 }
0x2594   :  { %v6586_v24 = vadd.f32 %v3262_v44, %v3258_v37 }
0x2596   :  { %5285 = vtanh.f32 %v6586_v24 }
0x25a0   :  { %v5286_v19 = vpop.eup %5285 }
0x25a1   :  { %v3266_v8 = vmul.f32 %v5286_v19, %v3257_v13 }
0x25a3   :  { %v6589_v25 = vpack.c.bf16 %v3266_v8, %v3266_v8 }
0x25a5   :  { %3271 = vrot.lane.b32.xlu1 %v6589_v25, %s5386_s0 }
0x25fb   :  { %v3515_v40 = vpop.permute.xlu0 %3514 }
0x25fc   :  { %v3517_v26 = vmul.f32 %v3515_v40, %v3511_v27 }
0x25fe   :  { %3519 = vrot.lane.b32.xlu0 %v3517_v26, %s5385_s7 }
0x2602   :  { %3356 = vrot.lane.b32.xlu0 %v6547_v18, %s5385_s7 }
0x2617   :  { %v3272_v48 = vpop.permute.xlu1 %3271 }
0x2618   :  { %3274 = vst.msk [vmem:[#allocation5] sm:$0xf] %vm2919_vm12, %v3272_v48 }
0x2670   :  { %v3520_v33 = vpop.permute.xlu0 %3519 }
0x2671   :  { %v6598_v34 = vadd.f32 %v3520_v33, %v3512_v11 }
0x2673   :  { %5287 = vtanh.f32 %v6598_v34 }
0x2674   :  { %v3357_v7 = vpop.permute.xlu0 %3356 }
0x2675   :  { %3359 = vst.msk [vmem:[#allocation5] sm:$0xf] %vm2827_vm11, %v3357_v7 }
0x267c   :  { %v3360_v15 = vld [vmem:[#allocation5] sm:$0xf] }
0x267d   :  { %v5288_v42 = vpop.eup %5287  ;;  %3410 = vmatmul.mubr.bf16.vlgmr.msra.gmra.mrb[48].mxu1 %v3360_v15 }
0x267e   :  { %3525 = vrot.lane.b32.xlu1 %v5288_v42, %s5382_s3  ;;  %4919 = vmatpush3.bf16.msra.mxu1 %v5470_v2 }
0x267f   :  { %4920 = vmatprep.subr.bf16.mxu1 %v5383_v22  ;;  %4922 = vmatprep.mubr.msk.bf16.mxu1 %vm5384_vm3, %v5383_v22 }
0x2682   :  { %4921 = vmatpush3.bf16.msra.mxu1 %v5475_v3 }
0x2683   :  { %3730 = vmatprep.subr.bf16.mxu1 %v6350_v55 }
0x26f0   :  { %v3526_v16 = vpop.permute.xlu1 %3525 }
0x26f1   :  { %v3528_v18 = vmul.f32 %v3526_v16, %v3511_v27 }
0x26f3   :  { %v6609_v39 = vpack.c.bf16 %v3528_v18, %v3528_v18 }
0x26f5   :  { %3634 = vrot.lane.b32.xlu0 %v6609_v39, %s5385_s7 }
0x2750   :  { %v3411_v41 = vpop.f32.mrb[48].mxu1 }
0x2751   :  { %v3412_v45 = vadd.f32 %v3411_v41, %v6466_v38  ;;  %v3413_v13 = vpop.f32.mrb[49].mxu1 }
0x2752   :  { %v3414_v57 = vadd.f32 %v3413_v13, %v6461_v28  ;;  %v3415_v63 = vpop.f32.mrb[50].mxu1 }
0x2753   :  { %v4535_v46 = vmul.f32 -1.442695, %v3412_v45  ;;  %v3416_v52 = vpop.f32.mrb[51].mxu1 }
0x2754   :  { %v4536_v4 = vmul.f32 -1.442695, %v3414_v57 }
0x2755   :  { %5289 = vpow2.f32 %v4535_v46 }
0x2756   :  { %5291 = vpow2.f32 %v4536_v4 }
0x2757   :  { %5293 = vtanh.f32 %v3414_v57 }
0x275f   :  { %v5290_v55 = vpop.eup %5289 }
0x2760   :  { %v5292_v49 = vpop.eup %5291  ;;  %v3426_v50 = vadd.f32 1.0, %v5290_v55 }
0x2761   :  { %v3427_v9 = vadd.f32 1.0, %v5292_v49  ;;  %v5294_v6 = vpop.eup %5293 }
0x2763   :  { %5295 = vrcp.f32 %v3427_v9 }
0x2764   :  { %5297 = vrcp.f32 %v3426_v50 }
0x2767   :  { %v3635_v5 = vpop.permute.xlu0 %3634 }
0x2768   :  { %4923 = vmatmul.mubr.msk.bf16.vlgmr.msra.gmra.mrb[52].mxu1 %vm2693_vm10, %v3635_v5 }
0x2769   :  { %3731 = vmatpush1.bf16.msra.mxu1 %v6352_v59  ;;  %3762 = vmatprep.mubr.bf16.mxu1 %v5381_v35 }
0x276a   :  { %3732 = vmatprep.subr.bf16.mxu1 %v6354_v54 }
0x276d   :  { %v5296_v23 = vpop.eup %5295  ;;  %3733 = vmatpush1.bf16.msra.mxu1 %v6361_v56 }
0x276e   :  { %v5298_v27 = vpop.eup %5297  ;;  %v3433_v37 = vsel %vm358_vm2, %v5294_v6, %v5296_v23  ;;  %3734 = vmatprep.subr.bf16.mxu1 %v6364_v17 }
0x276f   :  { %v3435_v44 = vmul.f32 %v5298_v27, %v3433_v37  ;;  %v3434_v59 = vmul.f32 %v5298_v27, %v6586_v24 }
0x2771   :  { %3437 = vrot.lane.b32.xlu1 %v3435_v44, %s5382_s3  ;;  %3735 = vmatpush1.bf16.msra.mxu1 %v6372_v51 }
0x2772   :  { %3736 = vmatprep.subr.bf16.mxu1 %v6374_v60 }
0x2775   :  { %3737 = vmatpush1.bf16.msra.mxu1 %v6380_v62 }
0x2776   :  { %3738 = vmatprep.subr.bf16.mxu1 %v6383_v53 }
0x2779   :  { %3739 = vmatpush1.bf16.msra.mxu1 %v6388_v36 }
0x277a   :  { %3740 = vmatprep.subr.bf16.mxu1 %v6393_v10 }
0x277d   :  { %3741 = vmatpush1.bf16.msra.mxu1 %v6396_v61 }
0x277e   :  { %3742 = vmatprep.subr.bf16.mxu1 %v6401_v0 }
0x2781   :  { %3743 = vmatpush1.bf16.msra.mxu1 %v6404_v1 }
0x2782   :  { %3744 = vmatprep.subr.bf16.mxu1 %v6409_v21 }
0x2785   :  { %3745 = vmatpush1.bf16.msra.mxu1 %v6412_v43 }
0x2786   :  { %4934 = vmatprep.subr.bf16.mxu1 %v5383_v22 }
0x27e3   :  { %v3438_v54 = vpop.permute.xlu1 %3437 }
0x27e4   :  { %v6637_v56 = vadd.f32 %v3438_v54, %v3434_v59 }
0x27e6   :  { %5299 = vtanh.f32 %v6637_v56 }
0x27f0   :  { %v5300_v17 = vpop.eup %5299 }
0x27f1   :  { %v3442_v51 = vmul.f32 %v5300_v17, %v3433_v37 }
0x27f3   :  { %v6640_v60 = vpack.c.bf16 %v3442_v51, %v3442_v51 }
0x27f5   :  { %3447 = vrot.lane.b32.xlu1 %v6640_v60, %s5386_s0 }
0x283b   :  { %v3673_v62 = vpop.f32.mrb[52].mxu1 }
0x283c   :  { %v3679_v53 = vadd.f32 %v3673_v62, %v6332_v47  ;;  %v4924_v36 = vpop.f32.mrb[53].mxu1 }
0x283d   :  { %v3676_v10 = vpop.f32.mrb[54].mxu1 }
0x283e   :  { %v4545_v61 = vmul.f32 -1.442695, %v3679_v53  ;;  %v4925_v0 = vpop.f32.mrb[55].mxu1 }
0x2840   :  { %5301 = vpow2.f32 %v4545_v61 }
0x2841   :  { %5303 = vtanh.f32 %v3679_v53 }
0x284a   :  { %v5302_v1 = vpop.eup %5301 }
0x284b   :  { %v3684_v21 = vadd.f32 1.0, %v5302_v1  ;;  %v5304_v43 = vpop.eup %5303 }
0x284d   :  { %5305 = vrcp.f32 %v3684_v21 }
0x2857   :  { %v5306_v24 = vpop.eup %5305 }
0x2858   :  { %v3687_v19 = vsel %vm5789_vm8, %v5304_v43, %v5306_v24 }
0x2859   :  { %3690 = vrot.lane.b32.xlu0 %v3687_v19, %s5382_s3  ;;  %v3688_v33 = vmul.f32 %v3687_v19, %v6598_v34 }
0x285d   :  { %3533 = vrot.lane.b32.xlu0 %v6609_v39, %s5385_s7 }
0x2867   :  { %v3448_v8 = vpop.permute.xlu1 %3447 }
0x2868   :  { %3450 = vst.msk [vmem:[#allocation5] sm:$0xf] %vm2919_vm12, %v3448_v8 }
0x28cb   :  { %v3691_v40 = vpop.permute.xlu0 %3690 }
0x28cc   :  { %v3693_v26 = vmul.f32 %v3691_v40, %v3687_v19 }
0x28ce   :  { %3695 = vrot.lane.b32.xlu1 %v3693_v26, %s5385_s7 }
0x28cf   :  { %v3534_v48 = vpop.permute.xlu0 %3533 }
0x28d0   :  { %3536 = vst.msk [vmem:[#allocation5] sm:$0xf] %vm2827_vm11, %v3534_v48 }
0x28d7   :  { %v3537_v11 = vld [vmem:[#allocation5] sm:$0xf] }
0x28d8   :  { %3587 = vmatmul.mubr.bf16.vlgmr.msra.gmra.mrb[68].mxu0 %v3537_v11 }
0x28d9   :  { %4927 = vmatpush3.bf16.msra.mxu0 %v5470_v2  ;;  %4930 = vmatprep.mubr.msk.bf16.mxu0 %vm5384_vm3, %v5383_v22 }
0x28da   :  { %4928 = vmatprep.subr.bf16.mxu0 %v5383_v22 }
0x28dd   :  { %4929 = vmatpush3.bf16.msra.mxu0 %v5475_v3 }
0x2940   :  { %v3696_v7 = vpop.permute.xlu1 %3695 }
0x2941   :  { %v6659_v15 = vadd.f32 %v3696_v7, %v3688_v33 }
0x2943   :  { %5307 = vtanh.f32 %v6659_v15 }
0x294d   :  { %v5308_v42 = vpop.eup %5307 }
0x294e   :  { %3701 = vrot.lane.b32.xlu0 %v5308_v42, %s5382_s3 }
0x29ab   :  { %v3588_v16 = vpop.f32.mrb[68].mxu0 }
0x29ac   :  { %v3589_v18 = vadd.f32 %v3588_v16, %v6466_v38  ;;  %v3590_v39 = vpop.f32.mrb[69].mxu0 }
0x29ad   :  { %v3591_v41 = vadd.f32 %v3590_v39, %v6461_v28  ;;  %v3592_v45 = vpop.f32.mrb[70].mxu0 }
0x29ae   :  { %v4541_v13 = vmul.f32 -1.442695, %v3589_v18  ;;  %v3593_v57 = vpop.f32.mrb[71].mxu0 }
0x29af   :  { %v4542_v63 = vmul.f32 -1.442695, %v3591_v41 }
0x29b0   :  { %5309 = vpow2.f32 %v4541_v13 }
0x29b1   :  { %5311 = vpow2.f32 %v4542_v63 }
0x29b2   :  { %5313 = vtanh.f32 %v3591_v41 }
0x29ba   :  { %v5310_v34 = vpop.eup %5309 }
0x29bb   :  { %v5312_v46 = vpop.eup %5311  ;;  %v3603_v52 = vadd.f32 1.0, %v5310_v34 }
0x29bc   :  { %v3604_v4 = vadd.f32 1.0, %v5312_v46  ;;  %v5314_v9 = vpop.eup %5313 }
0x29be   :  { %5315 = vrcp.f32 %v3604_v4 }
0x29bf   :  { %5317 = vrcp.f32 %v3603_v52 }
0x29c0   :  { %v3702_v55 = vpop.permute.xlu0 %3701 }
0x29c1   :  { %v3704_v49 = vmul.f32 %v3702_v55, %v3687_v19 }
0x29c3   :  { %v3705_v50 = vpack.c.bf16 %v3704_v49, %v3704_v49 }
0x29c5   :  { %3811 = vrot.lane.b32.xlu1 %v3705_v50, %s5385_s7 }
0x29c8   :  { %v5316_v5 = vpop.eup %5315 }
0x29c9   :  { %v5318_v6 = vpop.eup %5317  ;;  %v3610_v23 = vsel %vm358_vm2, %v5314_v9, %v5316_v5  ;;  %v3891_v9 = vld [vmem:[#allocation8] sm:$0xff]  ;;  %v3894_v5 = vld [vmem:[#allocation8 + $0x18] sm:$0xff] }
0x29ca   :  { %v3612_v27 = vmul.f32 %v5318_v6, %v3610_v23  ;;  %v3611_v44 = vmul.f32 %v5318_v6, %v6637_v56  ;;  %v3893_v6 = vld [vmem:[#allocation8 + $0x10] sm:$0xff] }
0x29cc   :  { %3614 = vrot.lane.b32.xlu0 %v3612_v27, %s5382_s3  ;;  %v3895_v27 = vld [vmem:[#allocation8 + $0x20] sm:$0xff] }
0x29d0   :  { %3709 = vrot.lane.b32.xlu0 %v3705_v50, %s5385_s7 }
0x2a37   :  { %v3812_v37 = vpop.permute.xlu1 %3811 }
0x2a38   :  { %4931 = vmatmul.mubr.msk.bf16.vlgmr.msra.gmra.mrb[72].mxu0 %vm2693_vm10, %v3812_v37  ;;  %v3898_v37 = vld [vmem:[#allocation8 + $0x38] sm:$0xff] }
0x2a39   :  { %3939 = vmatprep.mubr.bf16.mxu0 %v5381_v35 }
0x2a3e   :  { %v3615_v59 = vpop.permute.xlu0 %3614 }
0x2a3f   :  { %v6673_v54 = vadd.f32 %v3615_v59, %v3611_v44  ;;  %v3897_v44 = vld [vmem:[#allocation8 + $0x30] sm:$0xff]  ;;  %v3900_v59 = vld [vmem:[#allocation8 + $0x48] sm:$0xff] }
0x2a41   :  { %5319 = vtanh.f32 %v6673_v54 }
0x2a42   :  { %v3710_v36 = vpop.permute.xlu0 %3709 }
0x2a4b   :  { %v5320_v17 = vpop.eup %5319 }
0x2a4c   :  { %v3619_v51 = vmul.f32 %v5320_v17, %v3610_v23  ;;  %v3896_v23 = vld [vmem:[#allocation8 + $0x28] sm:$0xff]  ;;  %v3899_v17 = vld [vmem:[#allocation8 + $0x40] sm:$0xff] }
0x2a4e   :  { %v6676_v62 = vpack.c.bf16 %v3619_v51, %v3619_v51 }
0x2a50   :  { %3624 = vrot.lane.b32.xlu1 %v6676_v62, %s5386_s0 }
0x2ac2   :  { %v3625_v53 = vpop.permute.xlu1 %3624 }
0x2ac3   :  { %3627 = vst.msk [vmem:[#allocation5] sm:$0xf] %vm2919_vm12, %v3625_v53  ;;  %v3902_v53 = vld [vmem:[#allocation8 + $0x58] sm:$0xff] }
0x2ac4   :  { %3712 = vst.msk [vmem:[#allocation5] sm:$0xf] %vm2827_vm11, %v3710_v36 }
0x2acb   :  { %v3713_v10 = vld [vmem:[#allocation5] sm:$0xf] }
0x2acc   :  { %3763 = vmatmul.mubr.bf16.vlgmr.msra.gmra.mrb[56].mxu1 %v3713_v10 }
0x2acd   :  { %4935 = vmatpush3.bf16.msra.mxu1 %v5470_v2  ;;  %4938 = vmatprep.mubr.msk.bf16.mxu1 %vm5384_vm3, %v5383_v22 }
0x2ace   :  { %4936 = vmatprep.subr.bf16.mxu1 %v5383_v22 }
0x2ad1   :  { %4937 = vmatpush3.bf16.msra.mxu1 %v5475_v3 }
0x2b0b   :  { %v3850_v56 = vpop.f32.mrb[72].mxu0 }
0x2b0c   :  { %v3856_v61 = vadd.f32 %v3850_v56, %v6332_v47  ;;  %v4932_v0 = vpop.f32.mrb[73].mxu0 }
0x2b0d   :  { %v3853_v1 = vpop.f32.mrb[74].mxu0 }
0x2b0e   :  { %v4551_v21 = vmul.f32 -1.442695, %v3856_v61  ;;  %v4933_v43 = vpop.f32.mrb[75].mxu0 }
0x2b0f   :  { %v3903_v43 = vld [vmem:[#allocation8 + $0x60] sm:$0xff] }
0x2b10   :  { %5321 = vpow2.f32 %v4551_v21  ;;  %v3904_v21 = vld [vmem:[#allocation8 + $0x68] sm:$0xff] }
0x2b11   :  { %5323 = vtanh.f32 %v3856_v61  ;;  %v3901_v61 = vld [vmem:[#allocation8 + $0x50] sm:$0xff] }
0x2b1a   :  { %v5322_v24 = vpop.eup %5321 }
0x2b1b   :  { %v3861_v19 = vadd.f32 1.0, %v5322_v24  ;;  %v5324_v2 = vpop.eup %5323  ;;  %v3906_v24 = vld [vmem:[#allocation8 + $0x78] sm:$0xff] }
0x2b1d   :  { %5325 = vrcp.f32 %v3861_v19  ;;  %v3905_v19 = vld [vmem:[#allocation8 + $0x70] sm:$0xff] }
0x2b27   :  { %v5326_v8 = vpop.eup %5325 }
0x2b28   :  { %v3864_v40 = vsel %vm5789_vm8, %v5324_v2, %v5326_v8 }
0x2b29   :  { %3867 = vrot.lane.b32.xlu1 %v3864_v40, %s5382_s3  ;;  %v3865_v13 = vmul.f32 %v3864_v40, %v6659_v15  ;;  %v3892_v15 = vld [vmem:[#allocation8 + $0x8] sm:$0xff] }
0x2b2a   :  { %3907 = vmatprep.subr.bf16.mxu0 %v3892_v15  ;;  %4083 = vmatprep.subr.bf16.mxu1 %v3892_v15 }
0x2b2b   :  { %3908 = vmatpush1.bf16.msra.mxu0 %v3891_v9 }
0x2b2c   :  { %3909 = vmatprep.subr.bf16.mxu0 %v3894_v5 }
0x2b2f   :  { %3910 = vmatpush1.bf16.msra.mxu0 %v3893_v6 }
0x2b30   :  { %3911 = vmatprep.subr.bf16.mxu0 %v3896_v23 }
0x2b33   :  { %3912 = vmatpush1.bf16.msra.mxu0 %v3895_v27 }
0x2b34   :  { %3913 = vmatprep.subr.bf16.mxu0 %v3898_v37 }
0x2b37   :  { %3914 = vmatpush1.bf16.msra.mxu0 %v3897_v44 }
0x2b38   :  { %3915 = vmatprep.subr.bf16.mxu0 %v3900_v59 }
0x2b3b   :  { %3916 = vmatpush1.bf16.msra.mxu0 %v3899_v17 }
0x2b3c   :  { %3917 = vmatprep.subr.bf16.mxu0 %v3902_v53 }
0x2b3f   :  { %3918 = vmatpush1.bf16.msra.mxu0 %v3901_v61 }
0x2b40   :  { %3919 = vmatprep.subr.bf16.mxu0 %v3904_v21 }
0x2b43   :  { %3920 = vmatpush1.bf16.msra.mxu0 %v3903_v43 }
0x2b44   :  { %3921 = vmatprep.subr.bf16.mxu0 %v3906_v24 }
0x2b47   :  { %3922 = vmatpush1.bf16.msra.mxu0 %v3905_v19 }
0x2b48   :  { %4942 = vmatprep.subr.bf16.mxu0 %v5555_v29 }
0x2b9b   :  { %v3868_v3 = vpop.permute.xlu1 %3867 }
0x2b9c   :  { %v3870_v22 = vmul.f32 %v3868_v3, %v3864_v40 }
0x2b9e   :  { %3872 = vrot.lane.b32.xlu0 %v3870_v22, %s5385_s7 }
0x2b9f   :  { %v3764_v26 = vpop.f32.mrb[56].mxu1 }
0x2ba0   :  { %v3766_v48 = vpop.f32.mrb[57].mxu1  ;;  %v3765_v16 = vadd.f32 %v3764_v26, %v6466_v38 }
0x2ba1   :  { %v3768_v11 = vpop.f32.mrb[58].mxu1  ;;  %v3767_v7 = vadd.f32 %v3766_v48, %v6461_v28 }
0x2ba2   :  { %v3769_v33 = vpop.f32.mrb[59].mxu1  ;;  %v4547_v18 = vmul.f32 -1.442695, %v3765_v16 }
0x2ba3   :  { %v4548_v42 = vmul.f32 -1.442695, %v3767_v7 }
0x2ba5   :  { %5327 = vpow2.f32 %v4548_v42 }
0x2ba6   :  { %5329 = vpow2.f32 %v4547_v18 }
0x2baf   :  { %v5328_v39 = vpop.eup %5327 }
0x2bb0   :  { %v3780_v41 = vadd.f32 1.0, %v5328_v39  ;;  %v5330_v45 = vpop.eup %5329 }
0x2bb1   :  { %v3779_v63 = vadd.f32 1.0, %v5330_v45 }
0x2bb2   :  { %5331 = vrcp.f32 %v3780_v41 }
0x2bb3   :  { %5333 = vtanh.f32 %v3767_v7 }
0x2bbc   :  { %v5332_v46 = vpop.eup %5331 }
0x2bbd   :  { %v5334_v52 = vpop.eup %5333 }
0x2bbe   :  { %v3786_v55 = vsel %vm358_vm2, %v5334_v52, %v5332_v46 }
0x2c10   :  { %v3873_v57 = vpop.permute.xlu0 %3872 }
0x2c11   :  { %v6695_v34 = vadd.f32 %v3873_v57, %v3865_v13 }
0x2c13   :  { %5335 = vtanh.f32 %v6695_v34 }
0x2c14   :  { %5337 = vrcp.f32 %v3779_v63 }
0x2c1d   :  { %v5336_v4 = vpop.eup %5335 }
0x2c1e   :  { %3878 = vrot.lane.b32.xlu1 %v5336_v4, %s5382_s3  ;;  %v5338_v49 = vpop.eup %5337 }
0x2c1f   :  { %v3788_v50 = vmul.f32 %v5338_v49, %v3786_v55  ;;  %v3787_v56 = vmul.f32 %v5338_v49, %v6673_v54 }
0x2c22   :  { %3790 = vrot.lane.b32.xlu1 %v3788_v50, %s5382_s3 }
0x2c90   :  { %v3879_v51 = vpop.permute.xlu1 %3878 }
0x2c91   :  { %v3881_v36 = vmul.f32 %v3879_v51, %v3864_v40 }
0x2c93   :  { %v3882_v10 = vpack.c.bf16 %v3881_v36, %v3881_v36 }
0x2c94   :  { %v3791_v0 = vpop.permute.xlu1 %3790 }
0x2c95   :  { %v6703_v1 = vadd.f32 %v3791_v0, %v3787_v56  ;;  %3886 = vrot.lane.b32.xlu1 %v3882_v10, %s5385_s7  ;;  %3987 = vrot.lane.b32.xlu0 %v3882_v10, %s5385_s7 }
0x2c97   :  { %5339 = vtanh.f32 %v6703_v1 }
0x2ca1   :  { %v5340_v54 = vpop.eup %5339 }
0x2ca2   :  { %v3795_v2 = vmul.f32 %v5340_v54, %v3786_v55 }
0x2ca4   :  { %v6709_v8 = vpack.c.bf16 %v3795_v2, %v3795_v2 }
0x2ca6   :  { %3800 = vrot.lane.b32.xlu0 %v6709_v8, %s5386_s0 }
0x2d07   :  { %v3988_v40 = vpop.permute.xlu0 %3987  ;;  %v3887_v22 = vpop.permute.xlu1 %3886 }
0x2d08   :  { %4939 = vmatmul.mubr.msk.bf16.vlgmr.msra.gmra.mrb[60].mxu1 %vm2693_vm10, %v3988_v40 }
0x2d09   :  { %4084 = vmatpush1.bf16.msra.mxu1 %v3891_v9  ;;  %4115 = vmatprep.mubr.bf16.mxu1 %v5381_v35 }
0x2d0a   :  { %4085 = vmatprep.subr.bf16.mxu1 %v3894_v5 }
0x2d0d   :  { %4086 = vmatpush1.bf16.msra.mxu1 %v3893_v6 }
0x2d0e   :  { %4087 = vmatprep.subr.bf16.mxu1 %v3896_v23 }
0x2d11   :  { %4088 = vmatpush1.bf16.msra.mxu1 %v3895_v27 }
0x2d12   :  { %4089 = vmatprep.subr.bf16.mxu1 %v3898_v37 }
0x2d15   :  { %4090 = vmatpush1.bf16.msra.mxu1 %v3897_v44 }
0x2d16   :  { %4091 = vmatprep.subr.bf16.mxu1 %v3900_v59 }
0x2d18   :  { %v3801_v3 = vpop.permute.xlu0 %3800 }
0x2d19   :  { %3803 = vst.msk [vmem:[#allocation5] sm:$0xf] %vm2919_vm12, %v3801_v3  ;;  %4092 = vmatpush1.bf16.msra.mxu1 %v3899_v17 }
0x2d1a   :  { %3889 = vst.msk [vmem:[#allocation5] sm:$0xf] %vm2827_vm11, %v3887_v22  ;;  %4093 = vmatprep.subr.bf16.mxu1 %v3902_v53 }
0x2d1d   :  { %4094 = vmatpush1.bf16.msra.mxu1 %v3901_v61 }
0x2d1e   :  { %4095 = vmatprep.subr.bf16.mxu1 %v3904_v21 }
0x2d21   :  { %v3890_v26 = vld [vmem:[#allocation5] sm:$0xf]  ;;  %4096 = vmatpush1.bf16.msra.mxu1 %v3903_v43 }
0x2d22   :  { %3940 = vmatmul.mubr.bf16.vlgmr.msra.gmra.mrb[76].mxu0 %v3890_v26  ;;  %4097 = vmatprep.subr.bf16.mxu1 %v3906_v24 }
0x2d23   :  { %4943 = vmatpush3.bf16.msra.mxu0 %v5555_v29 }
0x2d24   :  { %4944 = vmatprep.subr.bf16.mxu0 %v5560_v30 }
0x2d25   :  { %4098 = vmatpush1.bf16.msra.mxu1 %v3905_v19 }
0x2d27   :  { %4945 = vmatpush3.bf16.msra.mxu0 %v5560_v30 }
0x2d28   :  { %4946 = vmatprep.subr.bf16.mxu0 %v5565_v31 }
0x2d2b   :  { %4947 = vmatpush3.bf16.msra.mxu0 %v5565_v31 }
0x2d2c   :  { %4948 = vmatprep.subr.bf16.mxu0 %v5570_v32 }
0x2d2f   :  { %4949 = vmatpush3.bf16.msra.mxu0 %v5570_v32 }
0x2ddb   :  { %v4026_v35 = vpop.f32.mrb[60].mxu1 }
0x2ddc   :  { %v4032_v48 = vadd.f32 %v4026_v35, %v6332_v47  ;;  %v4940_v11 = vpop.f32.mrb[61].mxu1 }
0x2ddd   :  { %v4029_v33 = vpop.f32.mrb[62].mxu1 }
0x2dde   :  { %v4557_v7 = vmul.f32 -1.442695, %v4032_v48  ;;  %v4941_v29 = vpop.f32.mrb[63].mxu1 }
0x2de0   :  { %5341 = vpow2.f32 %v4557_v7 }
0x2de1   :  { %5343 = vtanh.f32 %v4032_v48 }
0x2dea   :  { %v5342_v42 = vpop.eup %5341 }
0x2deb   :  { %v4037_v16 = vadd.f32 1.0, %v5342_v42  ;;  %v5344_v18 = vpop.eup %5343 }
0x2ded   :  { %5345 = vrcp.f32 %v4037_v16  ;;  %v3097_v16 = vrot.slane %v6535_v58, 4 }
0x2df5   :  { %v3941_v30 = vpop.f32.mrb[76].mxu0 }
0x2df6   :  { %v3942_v31 = vadd.f32 %v3941_v30, %v6466_v38  ;;  %v3943_v39 = vpop.f32.mrb[77].mxu0  ;;  %v3451_v30 = vrot.slane %v6640_v60, 4 }
0x2df7   :  { %v5346_v41 = vpop.eup %5345  ;;  %v3944_v32 = vadd.f32 %v3943_v39, %v6461_v28  ;;  %v3945_v45 = vpop.f32.mrb[78].mxu0 }
0x2df8   :  { %v4553_v13 = vmul.f32 -1.442695, %v3942_v31  ;;  %v3946_v47 = vpop.f32.mrb[79].mxu0  ;;  %v4040_v57 = vsel %vm5789_vm8, %v5344_v18, %v5346_v41  ;;  %v3804_v18 = vrot.slane %v6709_v8, 4 }
0x2df9   :  { %v4554_v63 = vmul.f32 -1.442695, %v3944_v32  ;;  %4043 = vrot.lane.b32.xlu0 %v4040_v57, %s5382_s3  ;;  %v4041_v51 = vmul.f32 %v4040_v57, %v6695_v34 }
0x2dfa   :  { %5347 = vpow2.f32 %v4553_v13 }
0x2dfb   :  { %5349 = vpow2.f32 %v4554_v63 }
0x2dfc   :  { %5351 = vtanh.f32 %v3944_v32 }
0x2e04   :  { %v5348_v46 = vpop.eup %5347 }
0x2e05   :  { %v5350_v52 = vpop.eup %5349  ;;  %v3956_v4 = vadd.f32 1.0, %v5348_v46 }
0x2e06   :  { %v3957_v55 = vadd.f32 1.0, %v5350_v52  ;;  %v5352_v49 = vpop.eup %5351 }
0x2e08   :  { %5353 = vrcp.f32 %v3957_v55  ;;  %v4562_v55 = vld [vmem:[%s6817_s12] ss:$0 sm:$0xff] }
0x2e09   :  { %5355 = vrcp.f32 %v3956_v4 }
0x2e12   :  { %v5354_v50 = vpop.eup %5353 }
0x2e13   :  { %v5356_v15 = vpop.eup %5355  ;;  %v3963_v9 = vsel %vm358_vm2, %v5352_v49, %v5354_v50 }
0x2e14   :  { %v3965_v20 = vmul.f32 %v5356_v15, %v3963_v9  ;;  %v3964_v23 = vmul.f32 %v5356_v15, %v6703_v1 }
0x2e16   :  { %3967 = vrot.lane.b32.xlu0 %v3965_v20, %s5382_s3 }
0x2e6b   :  { %v4044_v5 = vpop.permute.xlu0 %4043 }
0x2e6c   :  { %v4046_v6 = vmul.f32 %v4044_v5, %v4040_v57 }
0x2e6e   :  { %4048 = vrot.lane.b32.xlu1 %v4046_v6, %s5385_s7 }
0x2e88   :  { %v3968_v27 = vpop.permute.xlu0 %3967 }
0x2e89   :  { %v6735_v37 = vadd.f32 %v3968_v27, %v3964_v23 }
0x2e8b   :  { %5357 = vtanh.f32 %v6735_v37 }
0x2e95   :  { %v5358_v44 = vpop.eup %5357 }
0x2e96   :  { %v3972_v59 = vmul.f32 %v5358_v44, %v3963_v9 }
0x2e98   :  { %v3973_v17 = vpack.c.bf16 %v3972_v59, %v3972_v59 }
0x2e9a   :  { %3977 = vrot.lane.b32.xlu0 %v3973_v17, %s5386_s0 }
0x2ee0   :  { %v4049_v53 = vpop.permute.xlu1 %4048 }
0x2ee1   :  { %v4051_v36 = vadd.f32 %v4049_v53, %v4041_v51 }
0x2ee3   :  { %5359 = vtanh.f32 %v4051_v36 }
0x2eed   :  { %v5360_v10 = vpop.eup %5359 }
0x2eee   :  { %4054 = vrot.lane.b32.xlu1 %v5360_v10, %s5382_s3 }
0x2f0c   :  { %v3978_v56 = vpop.permute.xlu0 %3977 }
0x2f0d   :  { %3980 = vst.msk [vmem:[#allocation5] sm:$0xf] %vm2919_vm12, %v3978_v56 }
0x2f60   :  { %v4055_v61 = vpop.permute.xlu1 %4054 }
0x2f61   :  { %v4057_v0 = vmul.f32 %v4055_v61, %v4040_v57 }
0x2f63   :  { %v4601_v1 = vpack.c.bf16 %v4057_v0, %v4057_v0 }
0x2f65   :  { %4062 = vrot.lane.b32.xlu1 %v4601_v1, %s5385_s7 }
0x2f69   :  { %2921 = vrot.lane.b32.xlu1 %v6480_v12, %s5382_s3 }
0x2f6d   :  { %3275 = vrot.lane.b32.xlu1 %v6589_v25, %s5382_s3 }
0x2f71   :  { %3628 = vrot.lane.b32.xlu1 %v6676_v62, %s5382_s3 }
0x2f75   :  { %3981 = vrot.lane.b32.xlu1 %v3973_v17, %s5382_s3 }
0x2fd7   :  { %v4063_v34 = vpop.permute.xlu1 %4062 }
0x2fd8   :  { %4065 = vst.msk [vmem:[#allocation5] sm:$0xf] %vm2827_vm11, %v4063_v34 }
0x2fdb   :  { %v2922_v21 = vpop.permute.xlu1 %2921 }
0x2fdc   :  { %2924 = vst.msk [vmem:[#allocation3] sm:$0xf] %vm644_vm4, %v2922_v21 }
0x2fdf   :  { %v3276_v43 = vpop.permute.xlu1 %3275  ;;  %v4066_v24 = vld [vmem:[#allocation5] sm:$0xf] }
0x2fe0   :  { %3278 = vst.msk [vmem:[#allocation3 + $0x8] sm:$0xf] %vm644_vm4, %v3276_v43  ;;  %4116 = vmatmul.mubr.bf16.vlgmr.msra.gmra.mrb[64].mxu1 %v4066_v24 }
0x2fe3   :  { %v3629_v12 = vpop.permute.xlu1 %3628 }
0x2fe4   :  { %3631 = vst.msk [vmem:[#allocation3 + $0x10] sm:$0xf] %vm644_vm4, %v3629_v12 }
0x2fe7   :  { %v3982_v25 = vpop.permute.xlu1 %3981 }
0x2fe8   :  { %3984 = vst.msk [vmem:[#allocation3 + $0x18] sm:$0xf] %vm644_vm4, %v3982_v25 }
0x30b3   :  { %v4117_v62 = vpop.f32.mrb[64].mxu1 }
0x30b4   :  { %v4118_v19 = vadd.f32 %v4117_v62, %v6466_v38  ;;  %v4119_v54 = vpop.f32.mrb[65].mxu1 }
0x30b5   :  { %v4120_v2 = vadd.f32 %v4119_v54, %v6461_v28  ;;  %v4121_v40 = vpop.f32.mrb[66].mxu1 }
0x30b6   :  { %v4559_v3 = vmul.f32 -1.442695, %v4118_v19  ;;  %v4122_v22 = vpop.f32.mrb[67].mxu1 }
0x30b7   :  { %v4560_v26 = vmul.f32 -1.442695, %v4120_v2 }
0x30b8   :  { %5361 = vpow2.f32 %v4559_v3 }
0x30b9   :  { %5363 = vpow2.f32 %v4560_v26 }
0x30ba   :  { %5365 = vtanh.f32 %v4120_v2 }
0x30c2   :  { %v5362_v35 = vpop.eup %5361 }
0x30c3   :  { %v5364_v48 = vpop.eup %5363  ;;  %v4132_v11 = vadd.f32 1.0, %v5362_v35 }
0x30c4   :  { %v4133_v33 = vadd.f32 1.0, %v5364_v48  ;;  %v5366_v7 = vpop.eup %5365 }
0x30c6   :  { %5367 = vrcp.f32 %v4133_v33 }
0x30c7   :  { %5369 = vrcp.f32 %v4132_v11 }
0x30d0   :  { %v5368_v29 = vpop.eup %5367 }
0x30d1   :  { %v5370_v42 = vpop.eup %5369  ;;  %v4139_v38 = vsel %vm358_vm2, %v5366_v7, %v5368_v29 }
0x30d2   :  { %v4141_v28 = vmul.f32 %v5370_v42, %v4139_v38  ;;  %v4140_v31 = vmul.f32 %v5370_v42, %v6735_v37 }
0x30d4   :  { %4143 = vrot.lane.b32.xlu0 %v4141_v28, %s5382_s3 }
0x30d8   :  { %3098 = vrot.lane.b32.xlu0 %v3097_v16, %s5382_s3 }
0x30dc   :  { %3452 = vrot.lane.b32.xlu0 %v3451_v30, %s5382_s3 }
0x30e0   :  { %3805 = vrot.lane.b32.xlu0 %v3804_v18, %s5382_s3 }
0x3146   :  { %v4144_v39 = vpop.permute.xlu0 %4143 }
0x3147   :  { %v4146_v14 = vadd.f32 %v4144_v39, %v4140_v31 }
0x3149   :  { %5371 = vtanh.f32 %v4146_v14 }
0x314a   :  { %v3099_v41 = vpop.permute.xlu0 %3098 }
0x314b   :  { %3102 = vst.msk [vmem:[#allocation3] sm:$0xf0] %vm3101_vm13, %v3099_v41 }
0x314e   :  { %v3453_v58 = vpop.permute.xlu0 %3452 }
0x314f   :  { %3455 = vst.msk [vmem:[#allocation3 + $0x8] sm:$0xf0] %vm3101_vm13, %v3453_v58 }
0x3152   :  { %v3806_v32 = vpop.permute.xlu0 %3805  ;;  %v4162_v60 = vld [vmem:[#allocation3] sm:$0xff] }
0x3153   :  { %v5372_v45 = vpop.eup %5371  ;;  %3808 = vst.msk [vmem:[#allocation3 + $0x10] sm:$0xf0] %vm3101_vm13, %v3806_v32  ;;  %4950 = vmatprep.mubr.msk.bf16.mxu0 %vm565_vm5, %v4162_v60 }
0x3154   :  { %v4148_v8 = vmul.f32 %v5372_v45, %v4139_v38 }
0x3156   :  { %v4163_v13 = vld [vmem:[#allocation3 + $0x8] sm:$0xff]  ;;  %v4149_v47 = vpack.c.bf16 %v4148_v8, %v4148_v8 }
0x3157   :  { %4951 = vmatmul.mubr.msk.bf16.vlgmr.msra.gmra.mrb[80].mxu0 %vm565_vm5, %v4163_v13 }
0x3158   :  { %4153 = vrot.lane.b32.xlu1 %v4149_v47, %s5386_s0  ;;  %v4157_v57 = vrot.slane %v4149_v47, 4 }
0x315a   :  { %4158 = vrot.lane.b32.xlu0 %v4157_v57, %s5382_s3  ;;  %v4164_v63 = vld [vmem:[#allocation3 + $0x10] sm:$0xff] }
0x315b   :  { %4954 = vmatprep.mubr.msk.bf16.mxu0 %vm565_vm5, %v4164_v63 }
0x31ca   :  { %v4154_v46 = vpop.permute.xlu1 %4153 }
0x31cb   :  { %4156 = vst.msk [vmem:[#allocation5] sm:$0xf] %vm2919_vm12, %v4154_v46 }
0x31cc   :  { %v4159_v52 = vpop.permute.xlu0 %4158 }
0x31cd   :  { %4161 = vst.msk [vmem:[#allocation3 + $0x18] sm:$0xf0] %vm3101_vm13, %v4159_v52 }
0x31d4   :  { %v4165_v4 = vld [vmem:[#allocation3 + $0x18] sm:$0xff] }
0x31d5   :  { %4955 = vmatmul.mubr.msk.bf16.gmra.mrb[84].mxu0 %vm565_vm5, %v4165_v4 }
0x322a   :  { %v4952_v49 = vpop.f32.mrb[80].mxu0 }
0x322b   :  { %v4232_v50 = vadd.f32 %v4952_v49, %v4562_v55  ;;  %v4223_v15 = vpop.f32.mrb[81].mxu0 }
0x322c   :  { %v4224_v9 = vadd.f32 %v4562_v55, %v4223_v15  ;;  %v4953_v20 = vpop.f32.mrb[82].mxu0 }
0x322d   :  { %4256 = vst [vmem:[%s6818_s13 + $0x10] sm:$0xff] %v4232_v50  ;;  %v4235_v5 = vadd.f32 %v4953_v20, %v4562_v55  ;;  %v4226_v6 = vpop.f32.mrb[83].mxu0 }
0x322e   :  { %4254 = vst [vmem:[%s6818_s13] sm:$0xff] %v4224_v9  ;;  %v4227_v23 = vadd.f32 %v4562_v55, %v4226_v6 }
0x322f   :  { %4257 = vst [vmem:[%s6818_s13 + $0x18] sm:$0xff] %v4235_v5 }
0x3230   :  { %4255 = vst [vmem:[%s6818_s13 + $0x8] sm:$0xff] %v4227_v23 }
0x32a8   :  { %v4956_v27 = vpop.f32.mrb[84].mxu0 }
0x32a9   :  { %v4248_v37 = vadd.f32 %v4956_v27, %v4562_v55  ;;  %v4239_v44 = vpop.f32.mrb[85].mxu0 }
0x32aa   :  { %v4240_v59 = vadd.f32 %v4562_v55, %v4239_v44  ;;  %v4957_v17 = vpop.f32.mrb[86].mxu0 }
0x32ab   :  { %4260 = vst [vmem:[%s6818_s13 + $0x30] sm:$0xff] %v4248_v37  ;;  %v4251_v51 = vadd.f32 %v4957_v17, %v4562_v55  ;;  %v4242_v53 = vpop.f32.mrb[87].mxu0 }
0x32ac   :  { %4258 = vst [vmem:[%s6818_s13 + $0x20] sm:$0xff] %v4240_v59  ;;  %v4243_v36 = vadd.f32 %v4562_v55, %v4242_v53 }
0x32ad   :  { %4261 = vst [vmem:[%s6818_s13 + $0x38] sm:$0xff] %v4251_v51 }
0x32ae   :  { %4259 = vst [vmem:[%s6818_s13 + $0x28] sm:$0xff] %v4243_v36 }
0x32af   :  { %4266 = vsyncmov [#allocation10] }
0x32b2   :  { %s4267_s16 = vpop.sfrf %4266 }
0x32b3   :  { %p4567_p0 = scmp.ne.s32.totalorder %s4267_s16, 0 }
0x32b5   :  { %4271 = shalt.err (%p4567_p0)  }
0x32b6   :  { %4273 = vsyncmov [#allocation10 + $0x1] }
0x32b9   :  { %s4274_s17 = vpop.sfrf %4273 }
0x32ba   :  { %p4568_p1 = scmp.ne.s32.totalorder %s4274_s17, 0 }
0x32bc   :  { %4278 = shalt.err (%p4568_p1)  }
0x32bd   :  { %4280 = vsyncmov [#allocation10 + $0x2] }
0x32c0   :  { %s4281_s18 = vpop.sfrf %4280 }
0x32c1   :  { %p4569_p2 = scmp.ne.s32.totalorder %s4281_s18, 0 }
0x32c3   :  { %4285 = shalt.err (%p4569_p2)  }
0x32c4   :  { %4287 = vsyncmov [#allocation10 + $0x3] }
0x32c7   :  { %s4288_s19 = vpop.sfrf %4287 }
0x32c8   :  { %p4570_p3 = scmp.ne.s32.totalorder %s4288_s19, 0 }
0x32ca   :  { %4292 = shalt.err (%p4570_p3)  }

</bundles_post_ra>
